<compile_context>
chip_gen: v5e
topology: v5e:2x2
jax: 0.10.0
libtpu: 0.0.40
codegen_flags: <defaults>
</compile_context>

<pallas_src>
import jax
import jax.numpy as jnp
from jax import lax
from jax.experimental import pallas as pl
from jax.experimental.pallas import tpu as pltpu


# ---------------------------------------------------------------------------
# Kernel 1: 3x3 conv (pre-padded, channel-major row-tile) + bias + ReLU,
#           lane-dense (Cout, TH*W) output (already NCHW-flat), plus
#           per-(batch, row-tile) partial sums for the BatchNorm statistics.
# ---------------------------------------------------------------------------
def conv_relu_stats_kernel(x_ref, w_ref, b_ref, y_ref, psum_ref, psq_ref):
    # x_ref   : (1, 1, 2C, TH+2, W+2) bf16  padded channel-major row-tile
    # w_ref   : (Cout, 9*2C)          f32   transposed im2col conv weights
    # b_ref   : (Cout, 1)             f32   conv bias
    # y_ref   : (1, Cout, TH*W)       bf16  relu(conv(x)), channel-major
    # psum_ref: (1, 1, Cout, 1)       f32   partial sum        (for BN stats)
    # psq_ref : (1, 1, Cout, 1)       f32   partial sum of squares
    Cin, THp, Wp = x_ref.shape[2], x_ref.shape[3], x_ref.shape[4]
    TH, W = THp - 2, Wp - 2
    THW = TH * W
    Cout = y_ref.shape[1]

    xt = x_ref[...][0, 0]                                   # (2C, TH+2, W+2)

    # im2col along the SUBLANE axis: the 9 shifted (2C, TH, W) slabs stack to
    # (9*2C, TH*W); the flattened spatial axis sits on the 128-lane axis, so
    # the matmul result below is lane-dense and needs no output transpose.
    slabs = [xt[:, dy:dy + TH, dx:dx + W].reshape(Cin, THW)
             for dy in range(3) for dx in range(3)]
    patches = jnp.concatenate(slabs, axis=0).astype(jnp.float32)  # (9*2C, THW)

    # Single deep-K (K = 9*2C) matmul, f32 operands / f32 accumulation.
    # Operands are upcast to f32 here: bf16 x bf16 -> f32 dots are not
    # supported by the interpret-mode CPU dot thunk (previous compile error).
    acc = jnp.dot(w_ref[...], patches,
                  preferred_element_type=jnp.float32)             # (Cout, THW)
    acc = jnp.maximum(acc + b_ref[...], 0.0)                      # bias + ReLU

    y_ref[...] = acc.astype(y_ref.dtype).reshape(1, Cout, THW)
    # Per-grid-step partial stats (no resident accumulator) so both grid axes
    # stay 'parallel' (megacore-safe); reduced in the wrapper.
    psum_ref[...] = jnp.sum(acc, axis=1, keepdims=True).reshape(1, 1, Cout, 1)
    psq_ref[...] = jnp.sum(acc * acc, axis=1, keepdims=True).reshape(1, 1, Cout, 1)


# ---------------------------------------------------------------------------
# Kernel 2: BatchNorm affine apply  o = y * scale + shift  over (N*C, HW).
# ---------------------------------------------------------------------------
def bn_apply_kernel(y_ref, scale_ref, shift_ref, o_ref):
    # y_ref: (N*C, T) bf16   scale_ref / shift_ref: (N*C, 1) f32
    o_ref[...] = y_ref[...].astype(jnp.float32) * scale_ref[...] + shift_ref[...]


# ---------------------------------------------------------------------------
# Tiling helpers
# ---------------------------------------------------------------------------
def _choose_row_tile(H, W, Cin, bytes_budget=4 << 20):
    """Largest row-tile TH that divides H, keeps the flattened output
    lane-dense (TH*W % 128 == 0) and keeps the bf16 input block within a
    per-step VMEM budget (v7x-friendly)."""
    for th in range(H, 0, -1):
        if H % th:
            continue
        blk_bytes = (th + 2) * (W + 2) * Cin * 2   # bf16 input block
        if (th * W) % 128 == 0 and blk_bytes <= bytes_budget:
            return th
    return H   # fall back to a single tile (block == full dims, always legal)


def _choose_bn_tile(hw):
    """Largest lane-dense (multiple-of-128) tile of the flattened spatial dim."""
    for t in (32768, 16384, 8192, 4096, 2048, 1024, 512, 256, 128):
        if hw % t == 0:
            return t
    return hw   # tiny feature map: single full-width block


# ---------------------------------------------------------------------------
# Wrapper
# ---------------------------------------------------------------------------
def up_concat_forward(msi, hsi, w_hwio, bias, gamma, beta, eps=1e-5,
                      row_tile=None):
    """UpConcat.forward. msi/hsi are NCHW float32; returns NCHW float32."""
    N, C, H, W = msi.shape
    sx = H // hsi.shape[2]
    sy = W // hsi.shape[3]
    Cin = 2 * C
    HW = H * W

    # Glue (fused by XLA into one bf16 output pass under jit): nearest
    # upsample, channel concat, bf16 cast, 1-pixel zero pad.  Layout stays
    # channel-major (NCHW) so the kernel's im2col stacks along sublanes.
    hsi_up = jnp.repeat(jnp.repeat(hsi, sx, axis=2), sy, axis=3)
    x = jnp.concatenate([hsi_up, msi], axis=1).astype(jnp.bfloat16)  # (N,2C,H,W)
    x_pad = jnp.pad(x, ((0, 0), (0, 0), (1, 1), (1, 1)))             # (N,2C,H+2,W+2)

    # Row-tiling with a duplicated 2-row halo built in the wrapper (cheap:
    # 2/TH extra HBM), which keeps the BlockSpecs plain Blocked indexing.
    if row_tile is None:
        TH = _choose_row_tile(H, W, Cin)
    else:
        assert H % row_tile == 0, (H, row_tile)
        TH = row_tile
    n_h = H // TH
    assert n_h == 1 or (TH * W) % 128 == 0, (TH, W)
    x_tiles = jnp.stack(
        [lax.dynamic_slice_in_dim(x_pad, t * TH, TH + 2, axis=2)
         for t in range(n_h)], axis=1)                  # (N, n_h, 2C, TH+2, W+2)

    # Conv params reshaped once in the wrapper to the kernel's 2D layouts.
    w2d = jnp.transpose(w_hwio.reshape(9 * Cin, C)).astype(jnp.float32)  # (C, 9*2C)
    b2d = bias.reshape(C, 1).astype(jnp.float32)

    y, psum, psq = pl.pallas_call(
        conv_relu_stats_kernel,
        out_shape=(
            jax.ShapeDtypeStruct((N, C, HW), jnp.bfloat16),   # NCHW-flat acts
            jax.ShapeDtypeStruct((N, n_h, C, 1), jnp.float32),
            jax.ShapeDtypeStruct((N, n_h, C, 1), jnp.float32),
        ),
        grid_spec=pltpu.PrefetchScalarGridSpec(
            num_scalar_prefetch=0,
            grid=(N, n_h),
            in_specs=[
                pl.BlockSpec((1, 1, Cin, TH + 2, W + 2),
                             lambda n, h: (n, h, 0, 0, 0)),
                pl.BlockSpec((C, 9 * Cin), lambda n, h: (0, 0)),
                pl.BlockSpec((C, 1), lambda n, h: (0, 0)),
            ],
            out_specs=[
                pl.BlockSpec((1, C, TH * W), lambda n, h: (n, 0, h)),
                pl.BlockSpec((1, 1, C, 1), lambda n, h: (n, h, 0, 0)),
                pl.BlockSpec((1, 1, C, 1), lambda n, h: (n, h, 0, 0)),
            ],
        ),
        compiler_params=pltpu.CompilerParams(
            dimension_semantics=("parallel", "parallel")),
    )(x_tiles, w2d, b2d)

    # BatchNorm2d training-mode statistics (biased variance), tiny scalar work.
    count = jnp.float32(N * HW)
    mean = jnp.sum(psum, axis=(0, 1)) / count                          # (C, 1)
    var = jnp.maximum(jnp.sum(psq, axis=(0, 1)) / count - mean * mean, 0.0)
    scale = gamma.reshape(C, 1) * lax.rsqrt(var + eps)
    shift = beta.reshape(C, 1) - mean * scale
    # TODO(synk): nn.BatchNorm2d running_mean/running_var buffer updates
    # (training-mode side effect, momentum + unbiased var) are not modeled.

    # BN affine apply: flattened (N*C, HW) view, sublane-full and lane-dense
    # blocks, per-row scale/shift vectors built once in the wrapper.
    NC = N * C
    y_flat = y.reshape(NC, HW)
    scale_rows = jnp.broadcast_to(scale.reshape(1, C, 1), (N, C, 1)).reshape(NC, 1)
    shift_rows = jnp.broadcast_to(shift.reshape(1, C, 1), (N, C, 1)).reshape(NC, 1)

    T = _choose_bn_tile(HW)
    out_flat = pl.pallas_call(
        bn_apply_kernel,
        out_shape=jax.ShapeDtypeStruct((NC, HW), jnp.float32),
        grid_spec=pltpu.PrefetchScalarGridSpec(
            num_scalar_prefetch=0,
            grid=(HW // T,),
            in_specs=[
                pl.BlockSpec((NC, T), lambda t: (0, t)),
                pl.BlockSpec((NC, 1), lambda t: (0, 0)),
                pl.BlockSpec((NC, 1), lambda t: (0, 0)),
            ],
            out_specs=pl.BlockSpec((NC, T), lambda t: (0, t)),
        ),
        compiler_params=pltpu.CompilerParams(
            dimension_semantics=("parallel",)),
    )(y_flat, scale_rows, shift_rows)

    # (N*C, H*W) -> (N, C, H, W) is a free row-major reshape (already NCHW).
    return out_flat.reshape(N, C, H, W)


# ---------------------------------------------------------------------------
# Pure-JAX reference (correctness check only).
# ---------------------------------------------------------------------------
def reference(msi, hsi, w_hwio, bias, gamma, beta, eps=1e-5,
              y_round_dtype=None):
    sx = msi.shape[2] // hsi.shape[2]
    sy = msi.shape[3] // hsi.shape[3]
    hsi_up = jnp.repeat(jnp.repeat(hsi, sx, axis=2), sy, axis=3)
    x = jnp.concatenate([hsi_up, msi], axis=1)
    y = lax.conv_general_dilated(
        x, w_hwio, window_strides=(1, 1), padding=((1, 1), (1, 1)),
        dimension_numbers=("NCHW", "HWIO", "NCHW"),
        precision=lax.Precision.HIGHEST)
    y = jnp.maximum(y + bias.reshape(1, -1, 1, 1), 0.0)
    mean = y.mean(axis=(0, 2, 3), keepdims=True)
    var = y.var(axis=(0, 2, 3), keepdims=True)      # biased, as in BN training
    if y_round_dtype is not None:                   # mirror bf16 y intermediate
        y = y.astype(y_round_dtype).astype(jnp.float32)
    return ((y - mean) * lax.rsqrt(var + eps)
            * gamma.reshape(1, -1, 1, 1) + beta.reshape(1, -1, 1, 1))


if __name__ == "__main__":
    key = jax.random.PRNGKey(0)
    k1, k2, k3, k4, k5, k6 = jax.random.split(key, 6)

    N, C, H, W = 2, 4, 16, 16      # in_channels = 4
    sx = sy = 2                    # hsi is 2x coarser spatially
    msi = jax.random.normal(k1, (N, C, H, W), jnp.float32)
    hsi = jax.random.normal(k2, (N, C, H // sx, W // sy), jnp.float32)

    # Deterministic synthetic parameters (conv weight in HWIO layout).
    w_hwio = 0.1 * jax.random.normal(k3, (3, 3, 2 * C, C), jnp.float32)
    bias = 0.1 * jax.random.normal(k4, (C,), jnp.float32)
    gamma = 1.0 + 0.1 * jax.random.normal(k5, (C,), jnp.float32)
    beta = 0.1 * jax.random.normal(k6, (C,), jnp.float32)

    fwd = jax.jit(up_concat_forward, static_argnames=("row_tile",))
    out = jax.block_until_ready(fwd(msi, hsi, w_hwio, bias, gamma, beta))
    # Also exercise the multi-row-tile path (partial-stat reduction).
    out_tiled = jax.block_until_ready(
        fwd(msi, hsi, w_hwio, bias, gamma, beta, row_tile=8))

    # Matched reference: bf16-rounded conv inputs, f32 weights/accumulation,
    # bf16-rounded y intermediate (exactly what the kernels compute).
    bf = lambda a: a.astype(jnp.bfloat16).astype(jnp.float32)
    ref_matched = reference(bf(msi), bf(hsi), w_hwio, bias, gamma, beta,
                            y_round_dtype=jnp.bfloat16)
    ref_f32 = reference(msi, hsi, w_hwio, bias, gamma, beta)

    assert out.shape == (N, C, H, W), out.shape
    assert bool(jnp.all(jnp.isfinite(out)))
    assert bool(jnp.allclose(out, out_tiled, rtol=1e-3, atol=1e-3)), (
        float(jnp.max(jnp.abs(out - out_tiled))))
    for o in (out, out_tiled):
        assert bool(jnp.allclose(o, ref_matched, rtol=1e-2, atol=1e-2)), (
            float(jnp.max(jnp.abs(o - ref_matched))))
        assert bool(jnp.allclose(o, ref_f32, rtol=7e-2, atol=7e-2)), (
            float(jnp.max(jnp.abs(o - ref_f32))))

    print("KERNEL_OK")
</pallas_src>

<mosaic_0001>
module attributes {stable_mosaic.version = 11 : i64} {
  func.func @conv_relu_stats_kernel(%arg0: i32, %arg1: i32, %arg2: memref<1x1x8x18x18xbf16, #tpu.memory_space<vmem>>, %arg3: memref<4x72xf32, #tpu.memory_space<vmem>>, %arg4: memref<4x1xf32, #tpu.memory_space<vmem>>, %arg5: memref<1x4x256xbf16, #tpu.memory_space<vmem>>, %arg6: memref<1x1x4x1xf32, #tpu.memory_space<vmem>>, %arg7: memref<1x1x4x1xf32, #tpu.memory_space<vmem>>) attributes {dimension_semantics = [#tpu.dimension_semantics<parallel>, #tpu.dimension_semantics<parallel>], iteration_bounds = array<i64: 2, 1>, scalar_prefetch = 0 : i64, scratch_operands = 0 : i64, tpu.core_type = #tpu.core_type<tc>, window_params = [{transform_indices = @transform_0, window_bounds = array<i64: 1, 1, 8, 18, 18>}, {pipeline_mode = #tpu.pipeline_mode<synchronous>, transform_indices = @transform_1, window_bounds = array<i64: 4, 72>}, {pipeline_mode = #tpu.pipeline_mode<synchronous>, transform_indices = @transform_2, window_bounds = array<i64: 4, 1>}, {transform_indices = @transform_3, window_bounds = array<i64: 1, 4, 256>}, {transform_indices = @transform_4, window_bounds = array<i64: 1, 1, 4, 1>}, {transform_indices = @transform_5, window_bounds = array<i64: 1, 1, 4, 1>}]} {
    %c0 = arith.constant 0 : index
    %c0_0 = arith.constant 0 : index
    %c0_1 = arith.constant 0 : index
    %c0_2 = arith.constant 0 : index
    %c0_3 = arith.constant 0 : index
    %0 = vector.load %arg2[%c0, %c0_0, %c0_1, %c0_2, %c0_3] : memref<1x1x8x18x18xbf16, #tpu.memory_space<vmem>>, vector<1x1x8x18x18xbf16>
    %1 = vector.shape_cast %0 : vector<1x1x8x18x18xbf16> to vector<8x18x18xbf16>
    %2 = vector.extract_strided_slice %1 {offsets = [0, 0, 0], sizes = [8, 16, 16], strides = [1, 1, 1]} : vector<8x18x18xbf16> to vector<8x16x16xbf16>
    %3 = vector.shape_cast %2 : vector<8x16x16xbf16> to vector<8x256xbf16>
    %4 = vector.extract_strided_slice %1 {offsets = [0, 0, 1], sizes = [8, 16, 16], strides = [1, 1, 1]} : vector<8x18x18xbf16> to vector<8x16x16xbf16>
    %5 = vector.shape_cast %4 : vector<8x16x16xbf16> to vector<8x256xbf16>
    %6 = vector.extract_strided_slice %1 {offsets = [0, 0, 2], sizes = [8, 16, 16], strides = [1, 1, 1]} : vector<8x18x18xbf16> to vector<8x16x16xbf16>
    %7 = vector.shape_cast %6 : vector<8x16x16xbf16> to vector<8x256xbf16>
    %8 = vector.extract_strided_slice %1 {offsets = [0, 1, 0], sizes = [8, 16, 16], strides = [1, 1, 1]} : vector<8x18x18xbf16> to vector<8x16x16xbf16>
    %9 = vector.shape_cast %8 : vector<8x16x16xbf16> to vector<8x256xbf16>
    %10 = vector.extract_strided_slice %1 {offsets = [0, 1, 1], sizes = [8, 16, 16], strides = [1, 1, 1]} : vector<8x18x18xbf16> to vector<8x16x16xbf16>
    %11 = vector.shape_cast %10 : vector<8x16x16xbf16> to vector<8x256xbf16>
    %12 = vector.extract_strided_slice %1 {offsets = [0, 1, 2], sizes = [8, 16, 16], strides = [1, 1, 1]} : vector<8x18x18xbf16> to vector<8x16x16xbf16>
    %13 = vector.shape_cast %12 : vector<8x16x16xbf16> to vector<8x256xbf16>
    %14 = vector.extract_strided_slice %1 {offsets = [0, 2, 0], sizes = [8, 16, 16], strides = [1, 1, 1]} : vector<8x18x18xbf16> to vector<8x16x16xbf16>
    %15 = vector.shape_cast %14 : vector<8x16x16xbf16> to vector<8x256xbf16>
    %16 = vector.extract_strided_slice %1 {offsets = [0, 2, 1], sizes = [8, 16, 16], strides = [1, 1, 1]} : vector<8x18x18xbf16> to vector<8x16x16xbf16>
    %17 = vector.shape_cast %16 : vector<8x16x16xbf16> to vector<8x256xbf16>
    %18 = vector.extract_strided_slice %1 {offsets = [0, 2, 2], sizes = [8, 16, 16], strides = [1, 1, 1]} : vector<8x18x18xbf16> to vector<8x16x16xbf16>
    %19 = vector.shape_cast %18 : vector<8x16x16xbf16> to vector<8x256xbf16>
    %20 = tpu.concatenate %3, %5, %7, %9, %11, %13, %15, %17, %19 in 0 : vector<8x256xbf16>, vector<8x256xbf16>, vector<8x256xbf16>, vector<8x256xbf16>, vector<8x256xbf16>, vector<8x256xbf16>, vector<8x256xbf16>, vector<8x256xbf16>, vector<8x256xbf16> -> vector<72x256xbf16>
    %21 = arith.extf %20 : vector<72x256xbf16> to vector<72x256xf32>
    %c0_4 = arith.constant 0 : index
    %c0_5 = arith.constant 0 : index
    %22 = vector.load %arg3[%c0_4, %c0_5] : memref<4x72xf32, #tpu.memory_space<vmem>>, vector<4x72xf32>
    %cst = arith.constant dense<0.000000e+00> : vector<4x256xf32>
    %23 = tpu.matmul %22, %21, %cst {dimension_numbers = #tpu.dot_dimension_numbers<[1], [0], [0], [1], [0, 0, 1, 1], [], []>} : vector<4x72xf32>, vector<72x256xf32>, vector<4x256xf32> -> vector<4x256xf32>
    %c0_6 = arith.constant 0 : index
    %c0_7 = arith.constant 0 : index
    %24 = vector.load %arg4[%c0_6, %c0_7] : memref<4x1xf32, #tpu.memory_space<vmem>>, vector<4x1xf32>
    %25 = vector.broadcast %24 : vector<4x1xf32> to vector<4x256xf32>
    %26 = arith.addf %23, %25 : vector<4x256xf32>
    %cst_8 = arith.constant 0.000000e+00 : f32
    %27 = vector.broadcast %cst_8 : f32 to vector<4x256xf32>
    %28 = arith.maximumf %26, %27 : vector<4x256xf32>
    %29 = arith.truncf %28 : vector<4x256xf32> to vector<4x256xbf16>
    %30 = vector.shape_cast %29 : vector<4x256xbf16> to vector<1x4x256xbf16>
    %c0_9 = arith.constant 0 : index
    %c0_10 = arith.constant 0 : index
    %c0_11 = arith.constant 0 : index
    %31 = vector.load %arg5[%c0_9, %c0_10, %c0_11] : memref<1x4x256xbf16, #tpu.memory_space<vmem>>, vector<1x4x256xbf16>
    tpu.vector_store %arg5[%c0_9, %c0_10, %c0_11], %30 {strides = array<i32>} : memref<1x4x256xbf16, #tpu.memory_space<vmem>>, vector<1x4x256xbf16>,
    %cst_12 = arith.constant dense<0.000000e+00> : vector<4xf32>
    %32 = vector.multi_reduction <add>, %28, %cst_12 [1] : vector<4x256xf32> to vector<4xf32>
    %33 = vector.shape_cast %32 : vector<4xf32> to vector<4x1xf32>
    %34 = vector.shape_cast %33 : vector<4x1xf32> to vector<1x1x4x1xf32>
    %c0_13 = arith.constant 0 : index
    %c0_14 = arith.constant 0 : index
    %c0_15 = arith.constant 0 : index
    %c0_16 = arith.constant 0 : index
    %35 = vector.load %arg6[%c0_13, %c0_14, %c0_15, %c0_16] : memref<1x1x4x1xf32, #tpu.memory_space<vmem>>, vector<1x1x4x1xf32>
    tpu.vector_store %arg6[%c0_13, %c0_14, %c0_15, %c0_16], %34 {strides = array<i32>} : memref<1x1x4x1xf32, #tpu.memory_space<vmem>>, vector<1x1x4x1xf32>,
    %36 = arith.mulf %28, %28 : vector<4x256xf32>
    %cst_17 = arith.constant dense<0.000000e+00> : vector<4xf32>
    %37 = vector.multi_reduction <add>, %36, %cst_17 [1] : vector<4x256xf32> to vector<4xf32>
    %38 = vector.shape_cast %37 : vector<4xf32> to vector<4x1xf32>
    %39 = vector.shape_cast %38 : vector<4x1xf32> to vector<1x1x4x1xf32>
    %c0_18 = arith.constant 0 : index
    %c0_19 = arith.constant 0 : index
    %c0_20 = arith.constant 0 : index
    %c0_21 = arith.constant 0 : index
    %40 = vector.load %arg7[%c0_18, %c0_19, %c0_20, %c0_21] : memref<1x1x4x1xf32, #tpu.memory_space<vmem>>, vector<1x1x4x1xf32>
    tpu.vector_store %arg7[%c0_18, %c0_19, %c0_20, %c0_21], %39 {strides = array<i32>} : memref<1x1x4x1xf32, #tpu.memory_space<vmem>>, vector<1x1x4x1xf32>,
    return
  }
  func.func @transform_0(%arg0: i32, %arg1: i32) -> (i32, i32, i32, i32, i32) {
    %c0_i32 = arith.constant 0 : i32
    %c0_i32_0 = arith.constant 0 : i32
    %c0_i32_1 = arith.constant 0 : i32
    %c0_i32_2 = arith.constant 0 : i32
    return %arg0, %arg1, %c0_i32, %c0_i32_0, %c0_i32_1 : i32, i32, i32, i32, i32
  }
  func.func @transform_1(%arg0: i32, %arg1: i32) -> (i32, i32) {
    %c0_i32 = arith.constant 0 : i32
    %c0_i32_0 = arith.constant 0 : i32
    %c0_i32_1 = arith.constant 0 : i32
    return %c0_i32, %c0_i32_0 : i32, i32
  }
  func.func @transform_2(%arg0: i32, %arg1: i32) -> (i32, i32) {
    %c0_i32 = arith.constant 0 : i32
    %c0_i32_0 = arith.constant 0 : i32
    %c0_i32_1 = arith.constant 0 : i32
    return %c0_i32, %c0_i32_0 : i32, i32
  }
  func.func @transform_3(%arg0: i32, %arg1: i32) -> (i32, i32, i32) {
    %c0_i32 = arith.constant 0 : i32
    %c0_i32_0 = arith.constant 0 : i32
    return %arg0, %c0_i32, %arg1 : i32, i32, i32
  }
  func.func @transform_4(%arg0: i32, %arg1: i32) -> (i32, i32, i32, i32) {
    %c0_i32 = arith.constant 0 : i32
    %c0_i32_0 = arith.constant 0 : i32
    %c0_i32_1 = arith.constant 0 : i32
    return %arg0, %arg1, %c0_i32, %c0_i32_0 : i32, i32, i32, i32
  }
  func.func @transform_5(%arg0: i32, %arg1: i32) -> (i32, i32, i32, i32) {
    %c0_i32 = arith.constant 0 : i32
    %c0_i32_0 = arith.constant 0 : i32
    %c0_i32_1 = arith.constant 0 : i32
    return %arg0, %arg1, %c0_i32, %c0_i32_0 : i32, i32, i32, i32
  }
}

module attributes {stable_mosaic.version = 11 : i64} {
  func.func @bn_apply_kernel(%arg0: i32, %arg1: memref<8x256xbf16, #tpu.memory_space<vmem>>, %arg2: memref<8x1xf32, #tpu.memory_space<vmem>>, %arg3: memref<8x1xf32, #tpu.memory_space<vmem>>, %arg4: memref<8x256xf32, #tpu.memory_space<vmem>>) attributes {dimension_semantics = [#tpu.dimension_semantics<parallel>], iteration_bounds = array<i64: 1>, scalar_prefetch = 0 : i64, scratch_operands = 0 : i64, tpu.core_type = #tpu.core_type<tc>, window_params = [{transform_indices = @transform_0, window_bounds = array<i64: 8, 256>}, {pipeline_mode = #tpu.pipeline_mode<synchronous>, transform_indices = @transform_1, window_bounds = array<i64: 8, 1>}, {pipeline_mode = #tpu.pipeline_mode<synchronous>, transform_indices = @transform_2, window_bounds = array<i64: 8, 1>}, {transform_indices = @transform_3, window_bounds = array<i64: 8, 256>}]} {
    %c0 = arith.constant 0 : index
    %c0_0 = arith.constant 0 : index
    %0 = vector.load %arg1[%c0, %c0_0] : memref<8x256xbf16, #tpu.memory_space<vmem>>, vector<8x256xbf16>
    %1 = arith.extf %0 : vector<8x256xbf16> to vector<8x256xf32>
    %c0_1 = arith.constant 0 : index
    %c0_2 = arith.constant 0 : index
    %2 = vector.load %arg2[%c0_1, %c0_2] : memref<8x1xf32, #tpu.memory_space<vmem>>, vector<8x1xf32>
    %3 = vector.broadcast %2 : vector<8x1xf32> to vector<8x256xf32>
    %4 = arith.mulf %1, %3 : vector<8x256xf32>
    %c0_3 = arith.constant 0 : index
    %c0_4 = arith.constant 0 : index
    %5 = vector.load %arg3[%c0_3, %c0_4] : memref<8x1xf32, #tpu.memory_space<vmem>>, vector<8x1xf32>
    %6 = vector.broadcast %5 : vector<8x1xf32> to vector<8x256xf32>
    %7 = arith.addf %4, %6 : vector<8x256xf32>
    %c0_5 = arith.constant 0 : index
    %c0_6 = arith.constant 0 : index
    %8 = vector.load %arg4[%c0_5, %c0_6] : memref<8x256xf32, #tpu.memory_space<vmem>>, vector<8x256xf32>
    tpu.vector_store %arg4[%c0_5, %c0_6], %7 {strides = array<i32>} : memref<8x256xf32, #tpu.memory_space<vmem>>, vector<8x256xf32>,
    return
  }
  func.func @transform_0(%arg0: i32) -> (i32, i32) {
    %c0_i32 = arith.constant 0 : i32
    %c0_i32_0 = arith.constant 0 : i32
    return %c0_i32, %arg0 : i32, i32
  }
  func.func @transform_1(%arg0: i32) -> (i32, i32) {
    %c0_i32 = arith.constant 0 : i32
    %c0_i32_0 = arith.constant 0 : i32
    %c0_i32_1 = arith.constant 0 : i32
    return %c0_i32, %c0_i32_0 : i32, i32
  }
  func.func @transform_2(%arg0: i32) -> (i32, i32) {
    %c0_i32 = arith.constant 0 : i32
    %c0_i32_0 = arith.constant 0 : i32
    %c0_i32_1 = arith.constant 0 : i32
    return %c0_i32, %c0_i32_0 : i32, i32
  }
  func.func @transform_3(%arg0: i32) -> (i32, i32) {
    %c0_i32 = arith.constant 0 : i32
    %c0_i32_0 = arith.constant 0 : i32
    return %c0_i32, %arg0 : i32, i32
  }
}

</mosaic_0001>

<bundles_post_ra>
// kernel: up_concat_forward.3
= control target key start
LH: loop header
LB: loop body
LE: loop exit
PB: predicated region body
PF: predicated region fallthrough
CT: control target
= control target key end

     0   :  { %v41_v0 = vmov 0   ;;  %s77_s1 = inlined_call_operand.vmem [shape: f32[8,1], index: 1, kind: input, shape index: {}]   ;;  %s78_s2 = inlined_call_operand.vmem [shape: f32[8,1], index: 2, kind: input, shape index: {}]   ;;  %s79_s0 = inlined_call_operand.vmem [shape: bf16[8,256], index: 0, kind: input, shape index: {}]   ;;  %s80_s3 = inlined_call_operand.vmem [shape: f32[8,256], index: 3, kind: output, shape index: {}]  }
   0x1   :  { %40 = vset.pattern.permute.xlu0 %v41_v0  ;;  %v17_v1 = vld [vmem:[%s77_s1] sm:$0xff] }
   0x2   :  { %20 = vperm.xlu0 %40, %v17_v1   ;;  %v25_v2 = vld [vmem:[%s78_s2] sm:$0xff] }
   0x3   :  { %v14_v4 = vld [vmem:[%s79_s0] sm:$0xff] }
   0x4   :  { %v15_v5 = vunpack.c.l.bf16 %v14_v4  ;;  %v16_v6 = vunpack.c.h.bf16 %v14_v4 }
   0xa   :  { %28 = vperm.xlu0 %40, %v25_v2  }
  0x74   :  { %v21_v3 = vpop.permute.xlu0 %20 }
  0x75   :  { %v23_v7 = vmul.f32 %v21_v3, %v15_v5  ;;  %v24_v8 = vmul.f32 %v21_v3, %v16_v6 }
  0x7c   :  { %v29_v9 = vpop.permute.xlu0 %28 }
  0x7d   :  { %v31_v10 = vadd.f32 %v29_v9, %v23_v7  ;;  %v32_v11 = vadd.f32 %v29_v9, %v24_v8 }
  0x7f   :  { %33 = vst [vmem:[%s80_s3] sm:$0xff] %v31_v10 }
  0x80   :  { %34 = vst [vmem:[%s80_s3 + $0x8] sm:$0xff] %v32_v11 }

// kernel: up_concat_forward.2
= control target key start
LH: loop header
LB: loop body
LE: loop exit
PB: predicated region body
PF: predicated region fallthrough
CT: control target
= control target key end

     0   :  { %s3608_s18 = smov 0   ;;  %s3610_s19 = smov 0   ;;  %s5684_s0 = inlined_call_operand.vmem [shape: bf16[2,1,8,18,18], index: 0, kind: input, shape index: {}]   ;;  %s5685_s1 = inlined_call_operand.vmem [shape: f32[4,72], index: 1, kind: input, shape index: {}]   ;;  %s5686_s2 = inlined_call_operand.vmem [shape: f32[4,1], index: 2, kind: input, shape index: {}]   ;;  %s5687_s3 = inlined_call_operand.vmem [shape: bf16[2,4,256], index: 3, kind: output, shape index: {0}]   ;;  %s5688_s4 = inlined_call_operand.vmem [shape: f32[2,1,4,1], index: 4, kind: output, shape index: {1}]   ;;  %s5689_s5 = inlined_call_operand.vmem [shape: f32[2,1,4,1], index: 5, kind: output, shape index: {2}]  }
   0x1   :  { %s3612_s20 = smov 0  }
   0x2 LB: > { %s28_s21 = sadd.s32 1, %s3560_s19  ;;  %p3458_p0 = scmp.ge.s32.totalorder %s3564_s20, 1  ;;  %s3564_s20 = sphi %s3612_s20, %s16_s20   ;;  %s3560_s19 = sphi %s3610_s19, %s5841_s19   ;;  %s3556_s18 = sphi %s3608_s18, %s5840_s18  }
   0x3   : > { %p30_p1 = scmp.ge.s32.totalorder %s28_s21, 2  ;;  %p216_p2 = scmp.lt.s32.totalorder %s3564_s20, 3 }
   0x5   : > { %s5843_s21 = smov (%p30_p1, %s28_s21), 0  ;;  %p217_p3 = pnand %p3458_p0, %p216_p2 }
   0x7   : > { %220 = sbr.rel (%p217_p3) target bundleno = 1478 (0x5c6), region = 32 }
   0xc   : > { %p266_p4 = scmp.lt.s32.totalorder %s3556_s18, 1  ;;  %v3566_v0 = vmov 1983009808   ;;  %vm325_vm0 = vcmask 1047556   ;;  %v3567_v5 = vmov 1934713408  }
   0xd   : > { %v328_v1 = vunpack.c.l.s4 %v3566_v0  ;;  %v342_v6 = vunpack.c.l.s4 %v3567_v5  ;;  %s3568_s26 = smov 64   ;;  %s3569_s27 = smov 80   ;;  %vm1182_vm1 = vsmask.f32 3328  ;;  %vm1183_vm2 = vsmask.f32 7440 }
   0xe   : > { %s5845_s18 = smov (!%p266_p4, %s3556_s18), 1  ;;  %s3570_s28 = smov 16   ;;  %vm4089_vm3 = vmor %vm1182_vm1, %vm1183_vm2  ;;  %vm541_vm4 = vcmask 130048   ;;  %vm545_vm5 = vcmask 261120   ;;  %vm548_vm6 = vcmask 392192   ;;  %vm551_vm7 = vcmask 523264  }
   0xf   : > { %s3477_s22 = smul.u32 96, %s5845_s18  ;;  %v3652_v10 = vunpack.c.0.s8 %v328_v1  ;;  %v3666_v18 = vunpack.c.0.s8 %v342_v6  ;;  %s3571_s29 = smov 32   ;;  %vm554_vm8 = vcmask 654336   ;;  %vm557_vm9 = vcmask 785408  }
  0x10   : > { %s3572_s30 = smov 96   ;;  %s3573_s6 = smov 112   ;;  %vm560_vm10 = vcmask 916480   ;;  %vm3162_vm11 = vcmask 1043456   ;;  %vm2235_vm12 = vcmask 1042432   ;;  %vm2236_vm13 = vcmask 1046532  }
  0x11   : > { %s3632_s25 = scalar_lea.vmem %s5684_s0, %s3477_s22  ;;  %s3574_s7 = smov 48   ;;  %vm4588_vm14 = vmor %vm2235_vm12, %vm2236_vm13  ;;  %vm3212_vm15 = vcmask 588800   ;;  %vm3272_vm1 = vcmask 3072  }
  0x12   : > { %v3635_v2 = vld [vmem:[%s3632_s25] sm:$0xf]  ;;  %v3638_v3 = vld [vmem:[%s3632_s25 + $0xc] sm:$0xf]  ;;  %v3641_v4 = vld [vmem:[%s3632_s25 + $0x18] sm:$0xf] }
  0x13   : > { %v3644_v7 = vld [vmem:[%s3632_s25 + $0x24] sm:$0xf]  ;;  %v3647_v8 = vld [vmem:[%s3632_s25 + $0x30] sm:$0xf]  ;;  %v3650_v9 = vld [vmem:[%s3632_s25 + $0x3c] sm:$0xf] }
  0x14   : > { %v3655_v11 = vld [vmem:[%s3632_s25 + $0x48] sm:$0xf]  ;;  %v3658_v12 = vld [vmem:[%s3632_s25 + $0x54] sm:$0xf]  ;;  %v324_v13 = vrot.slane %v3647_v8, 4  ;;  %v353_v14 = vrot.slane %v3650_v9, 4 }
  0x15   : > { %v331_v15 = vrot.slane %v3655_v11, 4  ;;  %v359_v16 = vrot.slane %v3658_v12, 4  ;;  %v3671_v20 = vld [vmem:[%s3632_s25 + $0x4] sm:$0xf]  ;;  %v3674_v21 = vld [vmem:[%s3632_s25 + $0x1c] sm:$0xf] }
  0x16   : > { %v326_v17 = vsel %vm325_vm0, %v324_v13, %v3635_v2  ;;  %v354_v19 = vsel %vm325_vm0, %v353_v14, %v3638_v3  ;;  %v3677_v22 = vld [vmem:[%s3632_s25 + $0x34] sm:$0xf]  ;;  %v3686_v27 = vld [vmem:[%s3632_s25 + $0x40] sm:$0xf]  ;;  %v3689_v28 = vld [vmem:[%s3632_s25 + $0x4c] sm:$0xf] }
  0x17   : > { %v330_v23 = vperm.slane %v326_v17, %v3652_v10  ;;  %v332_v24 = vsel %vm325_vm0, %v331_v15, %v3641_v4  ;;  %v358_v25 = vperm.slane %v354_v19, %v3652_v10  ;;  %v360_v26 = vsel %vm325_vm0, %v359_v16, %v3644_v7  ;;  %v3692_v29 = vld [vmem:[%s3632_s25 + $0x58] sm:$0xf]  ;;  %v3701_v40 = vld [vmem:[%s3632_s25 + $0x10] sm:$0xf]  ;;  %v3716_v51 = vld [vmem:[%s3632_s25 + $0x28] sm:$0xf] }
  0x18   : > { %v336_v30 = vperm.slane %v332_v24, %v3652_v10  ;;  %v364_v31 = vperm.slane %v360_v26, %v3652_v10  ;;  %v381_v32 = vrot.slane %v3677_v22, 4  ;;  %v387_v33 = vrot.slane %v3689_v28, 4  ;;  %s3575_s8 = smov 127   ;;  %s3576_s9 = smov 126  }
  0x19   : > { %v339_v34 = vrot.slane %v330_v23, 4  ;;  %v367_v35 = vrot.slane %v358_v25, 4  ;;  %v409_v36 = vrot.slane %v3686_v27, 4  ;;  %v415_v37 = vrot.slane %v3692_v29, 4  ;;  %s3476_s14 = sshll.u32 %s5845_s18, 2 }
  0x1a   : > { %v337_v38 = vrot.slane %v336_v30, 4  ;;  %v365_v39 = vrot.slane %v364_v31, 4  ;;  %v382_v41 = vsel %vm325_vm0, %v381_v32, %v3671_v20  ;;  %v388_v42 = vsel %vm325_vm0, %v387_v33, %v3674_v21  ;;  %s283_s17 = scalar_lea.vmem %s5687_s3, %s3476_s14  ;;  %s291_s23 = scalar_lea.vmem %s5688_s4, %s3476_s14 }
  0x1b   : > { %v340_v43 = vsel %vm325_vm0, %v336_v30, %v339_v34  ;;  %v368_v44 = vsel %vm325_vm0, %v364_v31, %v367_v35  ;;  %v386_v45 = vperm.slane %v382_v41, %v3652_v10  ;;  %v392_v46 = vperm.slane %v388_v42, %v3652_v10 }
  0x1c   : > { %v348_v47 = vperm.slane %v340_v43, %v3666_v18  ;;  %v376_v48 = vperm.slane %v368_v44, %v3666_v18  ;;  %v338_v49 = vsel %vm325_vm0, %v337_v38, %v330_v23  ;;  %v366_v50 = vsel %vm325_vm0, %v365_v39, %v358_v25 }
  0x1d   : > { %v3719_v52 = vperm.slane %v338_v49, %v3666_v18  ;;  %v3722_v53 = vperm.slane %v366_v50, %v3666_v18  ;;  %v395_v54 = vrot.slane %v386_v45, 4  ;;  %v410_v55 = vsel %vm325_vm0, %v409_v36, %v3701_v40 }
  0x1e   : > { %v451_v56 = vpack.i.b16 %v376_v48, %v348_v47  ;;  %v452_v57 = vshrl.u32 %v348_v47, 16  ;;  %v453_v58 = vshrl.u32 %v376_v48, 16  ;;  %v414_v59 = vperm.slane %v410_v55, %v3652_v10 }
  0x1f   : > { %5710 = vst [vmem:[#allocation2_spill] sm:$0xff] %v3719_v52  ;;  %v440_v60 = vshrl.u32 %v3719_v52, 16  ;;  %v441_v61 = vshrl.u32 %v3722_v53, 16  ;;  %v396_v62 = vsel %vm325_vm0, %v392_v46, %v395_v54  ;;  %v416_v63 = vsel %vm325_vm0, %v415_v37, %v3716_v51 }
  0x20   : > { %5711 = vst [vmem:[#allocation3_spill] sm:$0xff] %v3722_v53  ;;  %v497_v0 = vunpack.c.l.b16 %v451_v56  ;;  %v454_v1 = vpack.i.b16 %v453_v58, %v452_v57  ;;  %v3733_v5 = vperm.slane %v396_v62, %v3666_v18  ;;  %v420_v6 = vperm.slane %v416_v63, %v3652_v10 }
  0x21   : > { %v442_v13 = vpack.i.b16 %v441_v61, %v440_v60  ;;  %v423_v14 = vrot.slane %v414_v59, 4  ;;  %v349_v15 = vrot.slane %v3719_v52, 4  ;;  %v377_v16 = vrot.slane %v3722_v53, 4 }
  0x22   : > { %v498_v17 = vpack.c.b16 %v497_v0, %v497_v0  ;;  %v501_v19 = vunpack.c.l.b16 %v454_v1  ;;  %v476_v23 = vshrl.u32 %v3733_v5, 16  ;;  %v393_v24 = vrot.slane %v392_v46, 4 }
  0x23   : > { %v485_v25 = vunpack.c.l.b16 %v442_v13  ;;  %v424_v26 = vsel %vm325_vm0, %v420_v6, %v423_v14  ;;  %v350_v30 = vsel %vm325_vm0, 0, %v349_v15  ;;  %v378_v31 = vsel %vm325_vm0, 0, %v377_v16 }
  0x24   : > { %499 = vrot.lane.b32.xlu1 %v498_v17, %s3568_s26  ;;  %v502_v32 = vpack.c.b16 %v501_v19, %v501_v19  ;;  %v432_v33 = vperm.slane %v424_v26, %v3666_v18  ;;  %v445_v34 = vpack.i.b16 %v378_v31, %v350_v30  ;;  %v394_v35 = vsel %vm325_vm0, %v393_v24, %v386_v45 }
  0x25   : > { %v486_v36 = vpack.c.b16 %v485_v25, %v485_v25  ;;  %v3746_v37 = vperm.slane %v394_v35, %v3666_v18  ;;  %v421_v38 = vrot.slane %v420_v6, 4  ;;  %v351_v39 = vrot.slane %v348_v47, 4 }
  0x26   : > { %503 = vrot.lane.b32.xlu2 %v502_v32, %s3569_s27  ;;  %v475_v41 = vpack.i.b16 %v432_v33, %v3733_v5  ;;  %v477_v42 = vshrl.u32 %v432_v33, 16  ;;  %v379_v43 = vrot.slane %v376_v48, 4  ;;  %v489_v44 = vunpack.c.l.b16 %v445_v34 }
  0x27   : > { %5712 = vst [vmem:[#allocation4_spill] sm:$0xff] %v3746_v37  ;;  %487 = vrot.lane.b32.xlu0 %v486_v36, %s3570_s28  ;;  %v422_v46 = vsel %vm325_vm0, %v421_v38, %v414_v59  ;;  %v352_v45 = vsel %vm325_vm0, 0, %v351_v39  ;;  %v464_v47 = vshrl.u32 %v3746_v37, 16  ;;  %v446_v57 = vshrl.u32 %v350_v30, 16 }
  0x28   : > { %v525_v49 = vunpack.c.l.b16 %v475_v41  ;;  %v478_v50 = vpack.i.b16 %v477_v42, %v476_v23  ;;  %v3754_v54 = vperm.slane %v422_v46, %v3666_v18  ;;  %v380_v55 = vsel %vm325_vm0, 0, %v379_v43 }
  0x29   : > { %v458_v56 = vshrl.u32 %v352_v45, 16  ;;  %v405_v48 = vrot.slane %v3746_v37, 4  ;;  %v459_v59 = vshrl.u32 %v380_v55, 16  ;;  %v490_v62 = vpack.c.b16 %v489_v44, %v489_v44 }
  0x2a   : > { %5713 = vst [vmem:[#allocation5_spill] sm:$0xff] %v3754_v54  ;;  %v526_v58 = vpack.c.b16 %v525_v49, %v525_v49  ;;  %v529_v60 = vunpack.c.l.b16 %v478_v50  ;;  %v465_v61 = vshrl.u32 %v3754_v54, 16  ;;  %v457_v63 = vpack.i.b16 %v380_v55, %v352_v45 }
  0x2b   : > { %v447_v0 = vshrl.u32 %v378_v31, 16  ;;  %v433_v1 = vrot.slane %v3754_v54, 4  ;;  %v460_v14 = vpack.i.b16 %v459_v59, %v458_v56  ;;  %v406_v15 = vsel %vm325_vm0, 0, %v405_v48 }
  0x2c   : > { %527 = vrot.lane.b32.xlu1 %v526_v58, %s3568_s26  ;;  %v530_v6 = vpack.c.b16 %v529_v60, %v529_v60  ;;  %v466_v13 = vpack.i.b16 %v465_v61, %v464_v47  ;;  %v407_v17 = vrot.slane %v3733_v5, 4  ;;  %v505_v23 = vunpack.c.l.b16 %v457_v63 }
  0x2d   : > { %v434_v16 = vsel %vm325_vm0, 0, %v433_v1  ;;  %v509_v24 = vunpack.c.l.b16 %v460_v14  ;;  %v470_v25 = vshrl.u32 %v406_v15, 16  ;;  %v435_v30 = vrot.slane %v432_v33, 4 }
  0x2e   : > { %531 = vrot.lane.b32.xlu2 %v530_v6, %s3569_s27  ;;  %v513_v19 = vunpack.c.l.b16 %v466_v13  ;;  %v471_v26 = vshrl.u32 %v434_v16, 16  ;;  %v448_v32 = vpack.i.b16 %v447_v0, %v446_v57  ;;  %v408_v34 = vsel %vm325_vm0, 0, %v407_v17 }
  0x2f   : > { %491 = vrot.lane.b32.xlu0 %v490_v62, %s3571_s29  ;;  %v436_v35 = vsel %vm325_vm0, 0, %v435_v30  ;;  %v506_v36 = vpack.c.b16 %v505_v23, %v505_v23  ;;  %v469_v38 = vpack.i.b16 %v434_v16, %v406_v15  ;;  %v510_v5 = vpack.c.b16 %v509_v24, %v509_v24 }
  0x30   : > { %v514_v31 = vpack.c.b16 %v513_v19, %v513_v19  ;;  %v472_v39 = vpack.i.b16 %v471_v26, %v470_v25  ;;  %v493_v41 = vunpack.c.l.b16 %v448_v32  ;;  %v482_v42 = vshrl.u32 %v408_v34, 16 }
  0x31   : > { %v483_v43 = vshrl.u32 %v436_v35, 16  ;;  %v517_v44 = vunpack.c.l.b16 %v469_v38  ;;  %v481_v47 = vpack.i.b16 %v436_v35, %v408_v34 }
  0x32   : > { %v521_v33 = vunpack.c.l.b16 %v472_v39  ;;  %v494_v46 = vpack.c.b16 %v493_v41, %v493_v41 }
  0x33   : > { %v484_v45 = vpack.i.b16 %v483_v43, %v482_v42  ;;  %v518_v49 = vpack.c.b16 %v517_v44, %v517_v44  ;;  %v533_v56 = vunpack.c.l.b16 %v481_v47 }
  0x34   : > { %515 = vrot.lane.b32.xlu1 %v514_v31, %s3570_s28  ;;  %v522_v50 = vpack.c.b16 %v521_v33, %v521_v33 }
  0x35   : > { %v537_v55 = vunpack.c.l.b16 %v484_v45  ;;  %v534_v48 = vpack.c.b16 %v533_v56, %v533_v56 }
  0x36   : > { %507 = vrot.lane.b32.xlu2 %v506_v36, %s3572_s30 }
  0x37   : > { %511 = vrot.lane.b32.xlu0 %v510_v5, %s3573_s6  ;;  %v538_v57 = vpack.c.b16 %v537_v55, %v537_v55 }
  0x3c   : > { %495 = vrot.lane.b32.xlu1 %v494_v46, %s3574_s7 }
  0x3e   : > { %519 = vrot.lane.b32.xlu2 %v518_v49, %s3571_s29 }
  0x3f   : > { %523 = vrot.lane.b32.xlu0 %v522_v50, %s3574_s7 }
  0x44   : > { %539 = vrot.lane.b32.xlu1 %v538_v57, %s3573_s6 }
  0x46   : > { %594 = vrot.lane.b32.xlu2 %v3635_v2, %s3575_s8 }
  0x47   : > { %535 = vrot.lane.b32.xlu0 %v534_v48, %s3572_s30 }
  0x4c   : > { %598 = vrot.lane.b32.xlu1 %v3638_v3, %s3575_s8 }
  0x4e   : > { %600 = vrot.lane.b32.xlu2 %v3701_v40, %s3575_s8 }
  0x4f   : > { %596 = vrot.lane.b32.xlu0 %v3671_v20, %s3575_s8 }
  0x54   : > { %604 = vrot.lane.b32.xlu1 %v3674_v21, %s3575_s8 }
  0x56   : > { %606 = vrot.lane.b32.xlu2 %v3644_v7, %s3575_s8 }
  0x57   : > { %602 = vrot.lane.b32.xlu0 %v3641_v4, %s3575_s8 }
  0x5c   : > { %610 = vrot.lane.b32.xlu1 %v3647_v8, %s3575_s8 }
  0x5e   : > { %612 = vrot.lane.b32.xlu2 %v3677_v22, %s3575_s8 }
  0x5f   : > { %608 = vrot.lane.b32.xlu0 %v3716_v51, %s3575_s8 }
  0x64   : > { %616 = vrot.lane.b32.xlu1 %v3686_v27, %s3575_s8 }
  0x66   : > { %618 = vrot.lane.b32.xlu2 %v3655_v11, %s3575_s8 }
  0x67   : > { %614 = vrot.lane.b32.xlu0 %v3650_v9, %s3575_s8 }
  0x6c   : > { %622 = vrot.lane.b32.xlu1 %v3658_v12, %s3575_s8 }
  0x6e   : > { %624 = vrot.lane.b32.xlu2 %v3692_v29, %s3575_s8 }
  0x6f   : > { %620 = vrot.lane.b32.xlu0 %v3689_v28, %s3575_s8 }
  0x74   : > { %892 = vrot.lane.b32.xlu1 %v3638_v3, %s3576_s9 }
  0x76   : > { %888 = vrot.lane.b32.xlu2 %v3635_v2, %s3576_s9 }
  0x77   : > { %890 = vrot.lane.b32.xlu0 %v3671_v20, %s3576_s9 }
  0x7c   : > { %898 = vrot.lane.b32.xlu1 %v3674_v21, %s3576_s9 }
  0x7e   : > { %894 = vrot.lane.b32.xlu2 %v3701_v40, %s3576_s9 }
  0x7f   : > { %896 = vrot.lane.b32.xlu0 %v3641_v4, %s3576_s9 }
  0x80   : > { %v3821_v58 = vpop.permute.xlu2 %503 }
  0x81   : > { %5714 = vst [vmem:[#allocation6_spill] sm:$0xff] %v3821_v58 }
  0x84   : > { %904 = vrot.lane.b32.xlu1 %v3647_v8, %s3576_s9 }
  0x86   : > { %900 = vrot.lane.b32.xlu2 %v3644_v7, %s3576_s9 }
  0x87   : > { %902 = vrot.lane.b32.xlu0 %v3716_v51, %s3576_s9 }
  0x88   : > { %v3829_v3 = vpop.permute.xlu2 %531 }
  0x89   : > { %5715 = vst [vmem:[#allocation7_spill] sm:$0xff] %v3829_v3 }
  0x8c   : > { %910 = vrot.lane.b32.xlu1 %v3686_v27, %s3576_s9 }
  0x8e   : > { %906 = vrot.lane.b32.xlu2 %v3677_v22, %s3576_s9 }
  0x8f   : > { %908 = vrot.lane.b32.xlu0 %v3650_v9, %s3576_s9 }
  0x90   : > { %v3837_v4 = vpop.permute.xlu2 %507 }
  0x91   : > { %5716 = vst [vmem:[#allocation8_spill] sm:$0xff] %v3837_v4 }
  0x96   : > { %v3839_v8 = vpop.permute.xlu1 %499  ;;  %912 = vrot.lane.b32.xlu2 %v3655_v11, %s3576_s9 }
  0x97   : > { %5717 = vst [vmem:[#allocation9_spill] sm:$0xff] %v3839_v8 }
  0x98   : > { %v3845_v60 = vpop.permute.xlu2 %519 }
  0x99   : > { %v3843_v7 = vpop.permute.xlu0 %487  ;;  %5719 = vst [vmem:[#allocation11_spill] sm:$0xff] %v3845_v60 }
  0x9a   : > { %5718 = vst [vmem:[#allocation10_spill] sm:$0xff] %v3843_v7 }
  0x9e   : > { %v3847_v61 = vpop.permute.xlu1 %527 }
  0x9f   : > { %5720 = vst [vmem:[#allocation12_spill] sm:$0xff] %v3847_v61 }
  0xa0   : > { %v595_v59 = vpop.permute.xlu2 %594 }
  0xa1   : > { %v3849_v27 = vpop.permute.xlu0 %491 }
  0xa2   : > { %5721 = vst [vmem:[#allocation13_spill] sm:$0xff] %v3849_v27 }
  0xa6   : > { %v3851_v22 = vpop.permute.xlu1 %515 }
  0xa7   : > { %5722 = vst [vmem:[#allocation14_spill] sm:$0xff] %v3851_v22 }
  0xa8   : > { %v601_v9 = vpop.permute.xlu2 %600 }
  0xa9   : > { %v3853_v62 = vpop.permute.xlu0 %511 }
  0xaa   : > { %5723 = vst [vmem:[#allocation15_spill] sm:$0xff] %v3853_v62 }
  0xae   : > { %v3855_v63 = vpop.permute.xlu1 %495 }
  0xaf   : > { %5724 = vst [vmem:[#allocation16_spill] sm:$0xff] %v3855_v63 }
  0xb0   : > { %v607_v11 = vpop.permute.xlu2 %606 }
  0xb1   : > { %v3857_v0 = vpop.permute.xlu0 %523 }
  0xb2   : > { %5725 = vst [vmem:[#allocation17_spill] sm:$0xff] %v3857_v0 }
  0xb6   : > { %v3859_v1 = vpop.permute.xlu1 %539 }
  0xb7   : > { %5726 = vst [vmem:[#allocation18_spill] sm:$0xff] %v3859_v1 }
  0xb8   : > { %v613_v15 = vpop.permute.xlu2 %612 }
  0xb9   : > { %v3861_v6 = vpop.permute.xlu0 %535  ;;  %v698_v35 = vrot.slane %v613_v15, 4 }
  0xba   : > { %5727 = vst [vmem:[#allocation19_spill] sm:$0xff] %v3861_v6 }
  0xbe   : > { %v599_v13 = vpop.permute.xlu1 %598 }
  0xc0   : > { %v619_v19 = vpop.permute.xlu2 %618 }
  0xc1   : > { %v597_v14 = vpop.permute.xlu0 %596  ;;  %v648_v26 = vrot.slane %v619_v19, 4 }
  0xc2   : > { %v699_v33 = vsel %vm325_vm0, %v698_v35, %v597_v14 }
  0xc3   : > { %v703_v56 = vperm.slane %v699_v33, %v3652_v10 }
  0xc6   : > { %v605_v16 = vpop.permute.xlu1 %604 }
  0xc8   : > { %v625_v30 = vpop.permute.xlu2 %624 }
  0xc9   : > { %v603_v17 = vpop.permute.xlu0 %602  ;;  %v732_v38 = vrot.slane %v625_v30, 4 }
  0xca   : > { %v649_v36 = vsel %vm325_vm0, %v648_v26, %v603_v17 }
  0xcb   : > { %v653_v44 = vperm.slane %v649_v36, %v3652_v10 }
  0xcd   : > { %v654_v57 = vrot.slane %v653_v44, 4 }
  0xce   : > { %v611_v23 = vpop.permute.xlu1 %610 }
  0xcf   : > { %v642_v25 = vrot.slane %v611_v23, 4 }
  0xd1   : > { %v609_v24 = vpop.permute.xlu0 %608  ;;  %v643_v31 = vsel %vm325_vm0, %v642_v25, %v595_v59  ;;  %v712_v25 = vrot.slane %v703_v56, 4 }
  0xd2   : > { %v647_v5 = vperm.slane %v643_v31, %v3652_v10  ;;  %v733_v49 = vsel %vm325_vm0, %v732_v38, %v609_v24 }
  0xd3   : > { %v737_v59 = vperm.slane %v733_v49, %v3652_v10 }
  0xd4   : > { %v656_v45 = vrot.slane %v647_v5, 4 }
  0xd6   : > { %v617_v32 = vpop.permute.xlu1 %616 }
  0xd7   : > { %v726_v34 = vrot.slane %v617_v32, 4 }
  0xd9   : > { %v727_v39 = vsel %vm325_vm0, %v726_v34, %v601_v9  ;;  %v615_v41 = vpop.permute.xlu0 %614  ;;  %v655_v9 = vsel %vm325_vm0, %v654_v57, %v647_v5 }
  0xda   : > { %v731_v42 = vperm.slane %v727_v39, %v3652_v10  ;;  %v670_v43 = vrot.slane %v615_v41, 4  ;;  %v3883_v32 = vperm.slane %v655_v9, %v3666_v18 }
  0xdc   : > { %v671_v46 = vsel %vm325_vm0, %v670_v43, %v599_v13  ;;  %v740_v50 = vrot.slane %v731_v42, 4  ;;  %v657_v13 = vsel %vm325_vm0, %v653_v44, %v656_v45  ;;  %5728 = vst [vmem:[#allocation20_spill] sm:$0xff] %v3883_v32  ;;  %v738_v43 = vrot.slane %v737_v59, 4 }
  0xdd   : > { %v675_v47 = vperm.slane %v671_v46, %v3652_v10  ;;  %v665_v34 = vperm.slane %v657_v13, %v3666_v18  ;;  %v757_v33 = vshrl.u32 %v3883_v32, 16 }
  0xde   : > { %v623_v55 = vpop.permute.xlu1 %622  ;;  %v741_v24 = vsel %vm325_vm0, %v737_v59, %v740_v50  ;;  %v739_v59 = vsel %vm325_vm0, %v738_v43, %v731_v42 }
  0xdf   : > { %v676_v48 = vrot.slane %v623_v55, 4  ;;  %v684_v17 = vrot.slane %v675_v47, 4  ;;  %v749_v36 = vperm.slane %v741_v24, %v3666_v18  ;;  %v668_v13 = vrot.slane %v665_v34, 4 }
  0xe1   : > { %v677_v15 = vsel %vm325_vm0, %v676_v48, %v607_v11  ;;  %v621_v14 = vpop.permute.xlu0 %620  ;;  %v794_v45 = vshrl.u32 %v749_v36, 16 }
  0xe2   : > { %v681_v19 = vperm.slane %v677_v15, %v3652_v10  ;;  %v704_v23 = vrot.slane %v621_v14, 4  ;;  %v769_v14 = vshrl.u32 %v665_v34, 16 }
  0xe4   : > { %v682_v26 = vrot.slane %v681_v19, 4  ;;  %v705_v30 = vsel %vm325_vm0, %v704_v23, %v605_v16  ;;  %v685_v31 = vsel %vm325_vm0, %v681_v19, %v684_v17 }
  0xe5   : > { %v709_v11 = vperm.slane %v705_v30, %v3652_v10  ;;  %v693_v35 = vperm.slane %v685_v31, %v3666_v18 }
  0xe6   : > { %v683_v38 = vsel %vm325_vm0, %v682_v26, %v675_v47 }
  0xe7   : > { %v710_v5 = vrot.slane %v709_v11, 4  ;;  %v768_v39 = vpack.i.b16 %v693_v35, %v665_v34  ;;  %v713_v41 = vsel %vm325_vm0, %v709_v11, %v712_v25  ;;  %v3892_v16 = vperm.slane %v683_v38, %v3666_v18 }
  0xe8   : > { %v721_v44 = vperm.slane %v713_v41, %v3666_v18  ;;  %v696_v50 = vrot.slane %v693_v35, 4  ;;  %v770_v47 = vshrl.u32 %v693_v35, 16  ;;  %v669_v35 = vsel %vm325_vm0, 0, %v668_v13 }
  0xe9   : > { %5729 = vst [vmem:[#allocation21_spill] sm:$0xff] %v3892_v16  ;;  %v814_v46 = vunpack.c.l.b16 %v768_v39  ;;  %v758_v49 = vshrl.u32 %v3892_v16, 16  ;;  %v711_v48 = vsel %vm325_vm0, %v710_v5, %v703_v56  ;;  %v752_v56 = vrot.slane %v749_v36, 4 }
  0xea   : > { %v792_v55 = vpack.i.b16 %v749_v36, %v721_v44  ;;  %v793_v57 = vshrl.u32 %v721_v44, 16  ;;  %v724_v23 = vrot.slane %v721_v44, 4  ;;  %v697_v24 = vsel %vm325_vm0, 0, %v696_v50 }
  0xeb   : > { %v815_v9 = vpack.c.b16 %v814_v46, %v814_v46  ;;  %v759_v15 = vpack.i.b16 %v758_v49, %v757_v33  ;;  %v3902_v25 = vperm.slane %v711_v48, %v3666_v18  ;;  %v771_v31 = vpack.i.b16 %v770_v47, %v769_v14 }
  0xec   : > { %v842_v17 = vunpack.c.l.b16 %v792_v55  ;;  %v795_v19 = vpack.i.b16 %v794_v45, %v793_v57  ;;  %v3906_v34 = vperm.slane %v739_v59, %v3666_v18  ;;  %v774_v38 = vpack.i.b16 %v697_v24, %v669_v35 }
  0xed   : > { %816 = vrot.lane.b32.xlu0 %v815_v9, %s3568_s26  ;;  %5730 = vst [vmem:[#allocation22_spill] sm:$0xff] %v3902_v25  ;;  %v802_v11 = vunpack.c.l.b16 %v759_v15  ;;  %v725_v5 = vsel %vm325_vm0, 0, %v724_v23  ;;  %v722_v39 = vrot.slane %v3902_v25, 4  ;;  %v818_v41 = vunpack.c.l.b16 %v771_v31 }
  0xee   : > { %v843_v26 = vpack.c.b16 %v842_v17, %v842_v17  ;;  %v846_v30 = vunpack.c.l.b16 %v795_v19  ;;  %5731 = vst [vmem:[#allocation23_spill] sm:$0xff] %v3906_v34  ;;  %v753_v43 = vsel %vm325_vm0, 0, %v752_v56  ;;  %v781_v36 = vshrl.u32 %v3902_v25, 16  ;;  %v4268_v25 = vld [vmem:[%s3632_s25 + $0x38] sm:$0x1] }
  0xef   : > { %v803_v44 = vpack.c.b16 %v802_v11, %v802_v11  ;;  %v798_v33 = vpack.i.b16 %v753_v43, %v725_v5  ;;  %v750_v46 = vrot.slane %v3906_v34, 4  ;;  %v822_v45 = vunpack.c.l.b16 %v774_v38  ;;  %5753 = vst [vmem:[#allocation40_spill] sm:$0xff] %v4268_v25 }
  0xf0   : > { %844 = vrot.lane.b32.xlu1 %v843_v26, %s3568_s26  ;;  %v847_v42 = vpack.c.b16 %v846_v30, %v846_v30  ;;  %v782_v49 = vshrl.u32 %v3906_v34, 16  ;;  %v723_v55 = vsel %vm325_vm0, 0, %v722_v39  ;;  %v694_v57 = vrot.slane %v3892_v16, 4 }
  0xf1   : > { %v819_v47 = vpack.c.b16 %v818_v41, %v818_v41  ;;  %v850_v15 = vunpack.c.l.b16 %v798_v33  ;;  %v751_v14 = vsel %vm325_vm0, 0, %v750_v46  ;;  %v776_v13 = vshrl.u32 %v697_v24, 16 }
  0xf2   : > { %848 = vrot.lane.b32.xlu2 %v847_v42, %s3569_s27  ;;  %v783_v48 = vpack.i.b16 %v782_v49, %v781_v36  ;;  %v666_v59 = vrot.slane %v3883_v32, 4  ;;  %v823_v17 = vpack.c.b16 %v822_v45, %v822_v45  ;;  %v786_v19 = vpack.i.b16 %v751_v14, %v723_v55 }
  0xf3   : > { %v775_v23 = vshrl.u32 %v669_v35, 16  ;;  %v695_v26 = vsel %vm325_vm0, 0, %v694_v57  ;;  %v851_v31 = vpack.c.b16 %v850_v15, %v850_v15  ;;  %v788_v46 = vshrl.u32 %v751_v14, 16 }
  0xf4   : > { %v830_v30 = vunpack.c.l.b16 %v783_v48  ;;  %v667_v11 = vsel %vm325_vm0, 0, %v666_v59  ;;  %v834_v42 = vunpack.c.l.b16 %v786_v19  ;;  %v764_v38 = vshrl.u32 %v695_v26, 16 }
  0xf5   : > { %804 = vrot.lane.b32.xlu0 %v803_v44, %s3570_s28  ;;  %v777_v56 = vpack.i.b16 %v776_v13, %v775_v23  ;;  %v762_v39 = vpack.i.b16 %v695_v26, %v667_v11  ;;  %v763_v41 = vshrl.u32 %v667_v11, 16  ;;  %v787_v44 = vshrl.u32 %v723_v55, 16 }
  0xf6   : > { %v831_v24 = vpack.c.b16 %v830_v30, %v830_v30  ;;  %v835_v35 = vpack.c.b16 %v834_v42, %v834_v42  ;;  %v799_v49 = vshrl.u32 %v725_v5, 16  ;;  %v800_v15 = vshrl.u32 %v753_v43, 16  ;;  %v889_v5 = vpop.permute.xlu2 %888 }
  0xf7   : > { %v826_v36 = vunpack.c.l.b16 %v777_v56  ;;  %v765_v33 = vpack.i.b16 %v764_v38, %v763_v41  ;;  %v806_v45 = vunpack.c.l.b16 %v762_v39  ;;  %v893_v56 = vpop.permute.xlu1 %892 }
  0xf8   : > { %820 = vrot.lane.b32.xlu1 %v819_v47, %s3569_s27  ;;  %v789_v47 = vpack.i.b16 %v788_v46, %v787_v44  ;;  %v801_v59 = vpack.i.b16 %v800_v15, %v799_v49 }
  0xf9   : > { %v827_v57 = vpack.c.b16 %v826_v36, %v826_v36  ;;  %v810_v48 = vunpack.c.l.b16 %v765_v33  ;;  %v807_v13 = vpack.c.b16 %v806_v45, %v806_v45 }
  0xfa   : > { %824 = vrot.lane.b32.xlu2 %v823_v17, %s3572_s30  ;;  %v838_v17 = vunpack.c.l.b16 %v789_v47  ;;  %v854_v19 = vunpack.c.l.b16 %v801_v59 }
  0xfb   : > { %v811_v55 = vpack.c.b16 %v810_v48, %v810_v48 }
  0xfc   : > { %v839_v14 = vpack.c.b16 %v838_v17, %v838_v17  ;;  %v855_v23 = vpack.c.b16 %v854_v19, %v854_v19 }
  0xfd   : > { %852 = vrot.lane.b32.xlu0 %v851_v31, %s3572_s30  ;;  %v891_v31 = vpop.permute.xlu0 %890 }
  0xfe   : > { %v895_v43 = vpop.permute.xlu2 %894 }
  0xff   : > { %v899_v38 = vpop.permute.xlu1 %898 }
 0x100   : > { %832 = vrot.lane.b32.xlu1 %v831_v24, %s3570_s28 }
 0x102   : > { %836 = vrot.lane.b32.xlu2 %v835_v35, %s3571_s29 }
 0x105   : > { %828 = vrot.lane.b32.xlu0 %v827_v57, %s3573_s6  ;;  %v897_v42 = vpop.permute.xlu0 %896 }
 0x106   : > { %v3943_v26 = vpop.permute.xlu2 %900 }
 0x108   : > { %808 = vrot.lane.b32.xlu1 %v807_v13, %s3571_s29 }
 0x10a   : > { %812 = vrot.lane.b32.xlu2 %v811_v55, %s3574_s7 }
 0x10d   : > { %840 = vrot.lane.b32.xlu0 %v839_v14, %s3574_s7  ;;  %v903_v39 = vpop.permute.xlu0 %902 }
 0x10e   : > { %v907_v30 = vpop.permute.xlu2 %906 }
 0x110   : > { %856 = vrot.lane.b32.xlu1 %v855_v23, %s3573_s6 }
 0x112   : > { %918 = vrot.lane.b32.xlu2 %v3692_v29, %s3576_s9  ;;  %v905_v29 = vpop.permute.xlu1 %904 }
 0x113   : > { %v936_v48 = vrot.slane %v905_v29, 4 }
 0x115   : > { %914 = vrot.lane.b32.xlu0 %v3689_v28, %s3576_s9  ;;  %v909_v28 = vpop.permute.xlu0 %908  ;;  %v937_v55 = vsel %vm325_vm0, %v936_v48, %v889_v5 }
 0x116   : > { %v913_v11 = vpop.permute.xlu2 %912  ;;  %v941_v23 = vperm.slane %v937_v55, %v3652_v10 }
 0x117   : > { %v942_v57 = vrot.slane %v913_v11, 4 }
 0x118   : > { %916 = vrot.lane.b32.xlu1 %v3658_v12, %s3576_s9  ;;  %v950_v62 = vrot.slane %v941_v23, 4 }
 0x119   : > { %v943_v13 = vsel %vm325_vm0, %v942_v57, %v897_v42  ;;  %v992_v42 = vrot.slane %v907_v30, 4 }
 0x11a   : > { %v911_v36 = vpop.permute.xlu1 %910  ;;  %v947_v19 = vperm.slane %v943_v13, %v3652_v10  ;;  %v964_v13 = vrot.slane %v909_v28, 4 }
 0x11b   : > { %v1020_v11 = vrot.slane %v911_v36, 4  ;;  %v993_v36 = vsel %vm325_vm0, %v992_v42, %v891_v31 }
 0x11c   : > { %v948_v9 = vrot.slane %v947_v19, 4  ;;  %v965_v30 = vsel %vm325_vm0, %v964_v13, %v893_v56 }
 0x11d   : > { %v1021_v57 = vsel %vm325_vm0, %v1020_v11, %v895_v43 }
 0x11e   : > { %v949_v5 = vsel %vm325_vm0, %v948_v9, %v941_v23  ;;  %v1025_v55 = vperm.slane %v1021_v57, %v3652_v10  ;;  %v997_v9 = vperm.slane %v993_v36, %v3652_v10 }
 0x120   : > { %v1034_v23 = vrot.slane %v1025_v55, 4 }
 0x14c   : > { %v3945_v24 = vpop.permute.xlu2 %848 }
 0x14d   : > { %5732 = vst [vmem:[#allocation24_spill] sm:$0xff] %v3945_v24 }
 0x154   : > { %v3947_v41 = vpop.permute.xlu2 %824 }
 0x155   : > { %5733 = vst [vmem:[#allocation25_spill] sm:$0xff] %v3947_v41 }
 0x15c   : > { %v3951_v12 = vpop.permute.xlu2 %836 }
 0x15d   : > { %5735 = vst [vmem:[#allocation27_spill] sm:$0xff] %v3951_v12 }
 0x15f   : > { %v3949_v44 = vpop.permute.xlu0 %816 }
 0x160   : > { %5734 = vst [vmem:[#allocation26_spill] sm:$0xff] %v3949_v44 }
 0x162   : > { %v3953_v35 = vpop.permute.xlu1 %844 }
 0x163   : > { %5736 = vst [vmem:[#allocation28_spill] sm:$0xff] %v3953_v35 }
 0x164   : > { %v3957_v46 = vpop.permute.xlu2 %812 }
 0x165   : > { %5738 = vst [vmem:[#allocation30_spill] sm:$0xff] %v3957_v46 }
 0x167   : > { %v3955_v33 = vpop.permute.xlu0 %804 }
 0x168   : > { %5737 = vst [vmem:[#allocation29_spill] sm:$0xff] %v3955_v33 }
 0x16a   : > { %v3959_v45 = vpop.permute.xlu1 %820 }
 0x16b   : > { %5739 = vst [vmem:[#allocation31_spill] sm:$0xff] %v3959_v45 }
 0x16c   : > { %v919_v15 = vpop.permute.xlu2 %918 }
 0x16d   : > { %v1026_v59 = vrot.slane %v919_v15, 4 }
 0x16f   : > { %v3961_v49 = vpop.permute.xlu0 %852  ;;  %v1027_v50 = vsel %vm325_vm0, %v1026_v59, %v903_v39  ;;  %v951_v39 = vsel %vm325_vm0, %v947_v19, %v950_v62  ;;  %v969_v19 = vperm.slane %v965_v30, %v3652_v10 }
 0x170   : > { %5740 = vst [vmem:[#allocation32_spill] sm:$0xff] %v3961_v49  ;;  %v1031_v29 = vperm.slane %v1027_v50, %v3652_v10  ;;  %v3985_v50 = vperm.slane %v949_v5, %v3666_v18  ;;  %v3988_v59 = vperm.slane %v951_v39, %v3666_v18  ;;  %v1006_v39 = vrot.slane %v997_v9, 4 }
 0x172   : > { %v3963_v47 = vpop.permute.xlu1 %832  ;;  %v1032_v48 = vrot.slane %v1031_v29, 4  ;;  %v960_v57 = vrot.slane %v3985_v50, 4  ;;  %v1035_v31 = vsel %vm325_vm0, %v1031_v29, %v1034_v23 }
 0x173   : > { %5741 = vst [vmem:[#allocation33_spill] sm:$0xff] %v3963_v47  ;;  %v1043_v36 = vperm.slane %v1035_v31, %v3666_v18 }
 0x174   : > { %v1033_v43 = vsel %vm325_vm0, %v1032_v48, %v1025_v55  ;;  %v962_v48 = vrot.slane %v3988_v59, 4  ;;  %v961_v55 = vsel %vm325_vm0, 0, %v960_v57  ;;  %v1063_v57 = vshrl.u32 %v3988_v59, 16 }
 0x175   : > { %v3995_v62 = vperm.slane %v1033_v43, %v3666_v18  ;;  %v1088_v3 = vshrl.u32 %v1043_v36, 16 }
 0x177   : > { %v3966_v17 = vpop.permute.xlu0 %828  ;;  %v1044_v29 = vrot.slane %v3995_v62, 4 }
 0x178   : > { %5742 = vst [vmem:[#allocation34_spill] sm:$0xff] %v3966_v17 }
 0x17a   : > { %v3970_v14 = vpop.permute.xlu1 %808 }
 0x17b   : > { %5743 = vst [vmem:[#allocation35_spill] sm:$0xff] %v3970_v14 }
 0x17f   : > { %v3975_v1 = vpop.permute.xlu0 %840 }
 0x180   : > { %5744 = vst [vmem:[#allocation36_spill] sm:$0xff] %v3975_v1 }
 0x182   : > { %v3979_v15 = vpop.permute.xlu1 %856 }
 0x183   : > { %5745 = vst [vmem:[#allocation37_spill] sm:$0xff] %v3979_v15 }
 0x187   : > { %v915_v28 = vpop.permute.xlu0 %914 }
 0x188   : > { %v998_v11 = vrot.slane %v915_v28, 4 }
 0x18a   : > { %v999_v42 = vsel %vm325_vm0, %v998_v11, %v899_v38  ;;  %v917_v5 = vpop.permute.xlu1 %916  ;;  %v978_v38 = vrot.slane %v969_v19, 4  ;;  %v1051_v11 = vshrl.u32 %v3985_v50, 16 }
 0x18b   : > { %v1003_v56 = vperm.slane %v999_v42, %v3652_v10  ;;  %v970_v13 = vrot.slane %v917_v5, 4  ;;  %v963_v42 = vsel %vm325_vm0, 0, %v962_v48  ;;  %v1057_v5 = vshrl.u32 %v961_v55, 16 }
 0x18c   : > { %v1069_v6 = vshrl.u32 %v963_v42, 16  ;;  %v1045_v48 = vsel %vm325_vm0, 0, %v1044_v29 }
 0x18d   : > { %v1004_v28 = vrot.slane %v1003_v56, 4  ;;  %v971_v43 = vsel %vm325_vm0, %v970_v13, %v3943_v26  ;;  %v1007_v30 = vsel %vm325_vm0, %v1003_v56, %v1006_v39  ;;  %v1046_v56 = vrot.slane %v1043_v36, 4 }
 0x18e   : > { %v975_v23 = vperm.slane %v971_v43, %v3652_v10  ;;  %v4014_v4 = vperm.slane %v1007_v30, %v3666_v18  ;;  %v1082_v15 = vshrl.u32 %v1045_v48, 16 }
 0x18f   : > { %v1005_v31 = vsel %vm325_vm0, %v1004_v28, %v997_v9  ;;  %v1076_v28 = vshrl.u32 %v3995_v62, 16 }
 0x190   : > { %v976_v26 = vrot.slane %v975_v23, 4  ;;  %v979_v13 = vsel %vm325_vm0, %v975_v23, %v978_v38  ;;  %v4018_v39 = vperm.slane %v1005_v31, %v3666_v18  ;;  %v1086_v58 = vpack.i.b16 %v1043_v36, %v4014_v4 }
 0x191   : > { %v987_v43 = vperm.slane %v979_v13, %v3666_v18  ;;  %v1087_v0 = vshrl.u32 %v4014_v4, 16  ;;  %v1018_v36 = vrot.slane %v4014_v4, 4 }
 0x192   : > { %v977_v17 = vsel %vm325_vm0, %v976_v26, %v969_v19  ;;  %v1075_v9 = vshrl.u32 %v4018_v39, 16  ;;  %v1016_v30 = vrot.slane %v4018_v39, 4  ;;  %v4033_v19 = vsel %vm325_vm0, 0, %v1046_v56 }
 0x193   : > { %v4027_v38 = vperm.slane %v977_v17, %v3666_v18  ;;  %v1064_v23 = vshrl.u32 %v987_v43, 16  ;;  %v990_v31 = vrot.slane %v987_v43, 4  ;;  %v1062_v13 = vpack.i.b16 %v987_v43, %v3988_v59 }
 0x194   : > { %v1017_v29 = vsel %vm325_vm0, 0, %v1016_v30  ;;  %v1077_v8 = vpack.i.b16 %v1076_v28, %v1075_v9  ;;  %v4041_v45 = vunpack.c.l.b16 %v1086_v58 }
 0x195   : > { %v1052_v26 = vshrl.u32 %v4027_v38, 16  ;;  %v988_v61 = vrot.slane %v4027_v38, 4  ;;  %v1065_v41 = vpack.i.b16 %v1064_v23, %v1063_v57  ;;  %v991_v17 = vsel %vm325_vm0, 0, %v990_v31 }
 0x196   : > { %v1080_v49 = vpack.i.b16 %v1045_v48, %v1017_v29  ;;  %v1081_v30 = vshrl.u32 %v1017_v29, 16  ;;  %v1068_v63 = vpack.i.b16 %v991_v17, %v963_v42  ;;  %v1070_v60 = vshrl.u32 %v991_v17, 16 }
 0x197   : > { %v1053_v59 = vpack.i.b16 %v1052_v26, %v1051_v11  ;;  %v989_v43 = vsel %vm325_vm0, 0, %v988_v61  ;;  %v1108_v57 = vunpack.c.l.b16 %v1062_v13  ;;  %v1112_v9 = vunpack.c.l.b16 %v1065_v41 }
 0x198   : > { %v1056_v56 = vpack.i.b16 %v989_v43, %v961_v55  ;;  %v1058_v24 = vshrl.u32 %v989_v43, 16  ;;  %v1124_v28 = vunpack.c.l.b16 %v1077_v8  ;;  %v1071_v31 = vpack.i.b16 %v1070_v60, %v1069_v6  ;;  %v3526_v60 = vld [vmem:[%s3632_s25 + $0x4] sm:$0xf] }
 0x199   : > { %v1096_v27 = vunpack.c.l.b16 %v1053_v59  ;;  %v4043_v44 = vunpack.c.l.b16 %v1080_v49  ;;  %v1116_v11 = vunpack.c.l.b16 %v1068_v63  ;;  %v1083_v26 = vpack.i.b16 %v1082_v15, %v1081_v30  ;;  %v3515_v59 = vld [vmem:[%s3632_s25 + $0xc] sm:$0xf] }
 0x19a   : > { %v1100_v23 = vunpack.c.l.b16 %v1056_v56  ;;  %v1059_v48 = vpack.i.b16 %v1058_v24, %v1057_v5  ;;  %v4045_v61 = vpack.i.b16 %v1088_v3, %v1087_v0  ;;  %v1120_v55 = vunpack.c.l.b16 %v1071_v31 }
 0x19b   : > { %v1097_v4 = vpack.c.b16 %v1096_v27, %v1096_v27  ;;  %v1094_v42 = vshrl.u32 %v4033_v19, 16  ;;  %v1109_v13 = vpack.c.b16 %v1108_v57, %v1108_v57  ;;  %v1113_v41 = vpack.c.b16 %v1112_v9, %v1112_v9 }
 0x19c   : > { %v1101_v58 = vpack.c.b16 %v1100_v23, %v1100_v23  ;;  %v1104_v29 = vunpack.c.l.b16 %v1059_v48  ;;  %v4049_v8 = vpack.c.b16 %v1124_v28, %v1124_v28  ;;  %v1129_v3 = vpack.c.b16 %v4043_v44, %v4043_v44 }
 0x19d   : > { %1098 = vrot.lane.b32.xlu0 %v1097_v4, %s3570_s28  ;;  %v1132_v63 = vunpack.c.l.b16 %v1083_v26  ;;  %v4057_v0 = vsel %vm325_vm0, 0, %v1018_v36  ;;  %v1117_v6 = vpack.c.b16 %v1116_v11, %v1116_v11  ;;  %v1186_v49 = vshrl.u32 %v3635_v2, 16 }
 0x19e   : > { %1102 = vrot.lane.b32.xlu1 %v1101_v58, %s3571_s29  ;;  %v1105_v27 = vpack.c.b16 %v1104_v29, %v1104_v29  ;;  %v1189_v15 = vshll.u32 %v3635_v2, 16  ;;  %v4063_v5 = vpack.c.b16 %v1120_v55, %v1120_v55  ;;  %v1195_v17 = vshll.u32 %v3671_v20, 16  ;;  %v3516_v20 = vld [vmem:[%s3632_s25 + $0x18] sm:$0xf]  ;;  %v3517_v29 = vld [vmem:[%s3632_s25 + $0x24] sm:$0xf] }
 0x19f   : > { %v1210_v43 = vshrl.u32 %v3515_v59, 16  ;;  %v1188_v30 = vrot.slane %v1186_v49, 4  ;;  %v1213_v57 = vshll.u32 %v3515_v59, 16  ;;  %v4069_v9 = vpack.c.b16 %v1132_v63, %v1132_v63 }
 0x1a0   : > { %1106 = vrot.lane.b32.xlu2 %v1105_v27, %s3574_s7  ;;  %v1191_v56 = vrot.slane %v1189_v15, 5  ;;  %v1093_v2 = vshrl.u32 %v4057_v0, 16  ;;  %v1219_v23 = vshll.u32 %v3701_v40, 16  ;;  %v1234_v4 = vshrl.u32 %v3516_v20, 16 }
 0x1a1   : > { %v1212_v28 = vrot.slane %v1210_v43, 4  ;;  %v1215_v31 = vrot.slane %v1213_v57, 5  ;;  %v4074_v11 = vrot.slane %v1195_v17, 5  ;;  %v1237_v26 = vshll.u32 %v3516_v20, 16  ;;  %v3518_v57 = vld [vmem:[%s3632_s25 + $0x30] sm:$0xf] }
 0x1a2   : > { %v1192_v48 = vor.u32 %v1191_v56, %v1188_v30  ;;  %v1243_v58 = vshll.u32 %v3674_v21, 16  ;;  %v1258_v55 = vshrl.u32 %v3517_v29, 16  ;;  %v1236_v49 = vrot.slane %v1234_v4, 4  ;;  %v3520_v20 = vld [vmem:[%s3632_s25 + $0x3c] sm:$0xf] }
 0x1a3   : > { %v1216_v63 = vor.u32 %v1215_v31, %v1212_v28  ;;  %v1261_v15 = vshll.u32 %v3517_v29, 16  ;;  %v4080_v40 = vrot.slane %v1219_v23, 5  ;;  %v1239_v59 = vrot.slane %v1237_v26, 5 }
 0x1a4   : > { %v1193_v27 = vrot.slane %v1192_v48, 4  ;;  %v1260_v17 = vrot.slane %v1258_v55, 4  ;;  %v1267_v43 = vshll.u32 %v3716_v51, 16  ;;  %v4083_v21 = vpack.i.b16 %v1094_v42, %v1093_v2  ;;  %v4096_v42 = vld [vmem:[%s3632_s25 + $0x34] sm:$0xf] }
 0x1a5   : > { %1110 = vrot.lane.b32.xlu0 %v1109_v13, %s3568_s26  ;;  %v1217_v30 = vrot.slane %v1216_v63, 4  ;;  %v1263_v56 = vrot.slane %v1261_v15, 5  ;;  %v1282_v13 = vshrl.u32 %v3518_v57, 16  ;;  %v4093_v23 = vrot.slane %v1243_v58, 5  ;;  %v4113_v15 = vld [vmem:[%s3632_s25 + $0x40] sm:$0xf] }
 0x1a6   : > { %1114 = vrot.lane.b32.xlu1 %v1113_v41, %s3569_s27  ;;  %v1240_v41 = vor.u32 %v1239_v59, %v1236_v49  ;;  %v1285_v51 = vshll.u32 %v3518_v57, 16  ;;  %v1291_v2 = vshll.u32 %v4096_v42, 16  ;;  %v1306_v4 = vshrl.u32 %v3520_v20, 16  ;;  %v4117_v59 = vld [vmem:[%s3632_s25 + $0x48] sm:$0xf] }
 0x1a7   : > { %v1264_v48 = vor.u32 %v1263_v56, %v1260_v17  ;;  %v1284_v31 = vrot.slane %v1282_v13, 4  ;;  %v4108_v26 = vsel %vm4089_vm3, %v1217_v30, %v4080_v40  ;;  %v4110_v58 = vrot.slane %v1267_v43, 5 }
 0x1a8   : > { %1118 = vrot.lane.b32.xlu2 %v1117_v6, %s3572_s30  ;;  %v4102_v6 = vsel %vm4089_vm3, %v1193_v27, %v4074_v11  ;;  %v1287_v29 = vrot.slane %v1285_v51, 5  ;;  %v1309_v55 = vshll.u32 %v3520_v20, 16  ;;  %v1241_v63 = vrot.slane %v1240_v41, 4  ;;  %v4128_v20 = vld [vmem:[%s3632_s25 + $0x4c] sm:$0xf] }
 0x1a9   : > { %v1308_v49 = vrot.slane %v1306_v4, 4  ;;  %v1315_v27 = vshll.u32 %v4113_v15, 16  ;;  %v1330_v17 = vshrl.u32 %v4117_v59, 16  ;;  %v4120_v57 = vrot.slane %v1291_v2, 5 }
 0x1aa   : > { %v1288_v56 = vor.u32 %v1287_v29, %v1284_v31  ;;  %v1311_v30 = vrot.slane %v1309_v55, 5  ;;  %v1333_v43 = vshll.u32 %v4117_v59, 16  ;;  %v1265_v13 = vrot.slane %v1264_v48, 4  ;;  %v4134_v55 = vld [vmem:[%s3632_s25 + $0x54] sm:$0xf] }
 0x1ab   : > { %v4125_v41 = vrot.slane %v1315_v27, 5  ;;  %v1332_v51 = vrot.slane %v1330_v17, 4  ;;  %v1339_v4 = vshll.u32 %v4128_v20, 16  ;;  %v1357_v48 = vshll.u32 %v4134_v55, 16  ;;  %v4141_v27 = vld [vmem:[%s3632_s25 + $0x58] sm:$0xf] }
 0x1ac   : > { %v1289_v2 = vrot.slane %v1288_v56, 4  ;;  %v1312_v31 = vor.u32 %v1311_v30, %v1308_v49  ;;  %v1335_v29 = vrot.slane %v1333_v43, 5  ;;  %v1363_v17 = vshll.u32 %v4141_v27, 16  ;;  %v302_v43 = vld [vmem:[%s3632_s25 + $0x8] sm:$0x1] }
 0x1ad   : > { %1122 = vrot.lane.b32.xlu0 %v4063_v5, %s3573_s6  ;;  %v1354_v5 = vshrl.u32 %v4134_v55, 16  ;;  %v4137_v36 = vrot.slane %v1339_v4, 5  ;;  %v1199_v24 = vshrl.u32 %v3526_v60, 16  ;;  %v4158_v4 = vsel %vm4089_vm3, %v1241_v63, %v4093_v23 }
 0x1ae   : > { %1126 = vrot.lane.b32.xlu1 %v4049_v8, %s3570_s28  ;;  %v4152_v8 = vsel %vm4089_vm3, %v1289_v2, %v4120_v57  ;;  %v1313_v49 = vrot.slane %v1312_v31, 4  ;;  %v1336_v56 = vor.u32 %v1335_v29, %v1332_v51  ;;  %v1359_v60 = vrot.slane %v1357_v48, 5  ;;  %v3527_v51 = vld [vmem:[%s3632_s25 + $0x10] sm:$0xf] }
 0x1af   : > { %v1356_v30 = vrot.slane %v1354_v5, 4  ;;  %v1393_v7 = vrot.slane %v4152_v8, 4  ;;  %v1201_v35 = vrot.slane %v1199_v24, 4  ;;  %v4166_v2 = vrot.slane %v1363_v17, 5 }
 0x1b0   : > { %1130 = vrot.lane.b32.xlu2 %v1129_v3, %s3571_s29  ;;  %v4164_v44 = vsel %vm4089_vm3, %v1313_v49, %v4125_v41  ;;  %v1337_v3 = vrot.slane %v1336_v56, 4  ;;  %v1223_v31 = vshrl.u32 %v3527_v51, 16  ;;  %v1205_v48 = vshll.u32 %v302_v43, 16 }
 0x1b1   : > { %v1360_v29 = vor.u32 %v1359_v60, %v1356_v30  ;;  %v1394_v5 = vsel %vm325_vm0, %v1393_v7, %v4102_v6  ;;  %v1421_v63 = vrot.slane %v4164_v44, 4  ;;  %v1202_v17 = vor.u32 %v1201_v35, %v4074_v11 }
 0x1b2   : > { %v4175_v24 = vsel %vm4089_vm3, %v1337_v3, %v4137_v36  ;;  %v1398_v49 = vperm.slane %v1394_v5, %v3652_v10  ;;  %v1225_v56 = vrot.slane %v1223_v31, 4  ;;  %v5749_v30 = vunpack.c.l.b16 %v4045_v61 }
 0x1b3   : > { %5748 = vst [vmem:[#allocation38_spill] sm:$0xff] %v4175_v24  ;;  %v1361_v60 = vrot.slane %v1360_v29, 4  ;;  %v1399_v43 = vrot.slane %v4175_v24, 4  ;;  %v1422_v51 = vsel %vm325_vm0, %v1421_v63, %v4108_v26  ;;  %v5750_v3 = vpack.c.b16 %v4041_v45, %v4041_v45  ;;  %v305_v29 = vld [vmem:[%s3632_s25 + $0x14] sm:$0x1] }
 0x1b4   : > { %v1141_v7 = vpack.c.b16 %v5749_v30, %v5749_v30  ;;  %v5751_v35 = vpack.i.b16 %v4033_v19, %v4057_v0  ;;  %v1148_v61 = vunpack.c.l.b16 %v4083_v21  ;;  %v1407_v31 = vrot.slane %v1398_v49, 4 }
 0x1b5   : > { %1134 = vrot.lane.b32.xlu0 %v4069_v9, %s3574_s7  ;;  %v4198_v9 = vsel %vm4089_vm3, %v1265_v13, %v4110_v58  ;;  %v4204_v5 = vsel %vm4089_vm3, %v1361_v60, %v4166_v2  ;;  %v1400_v45 = vsel %vm325_vm0, %v1399_v43, %v4158_v4  ;;  %v1426_v19 = vperm.slane %v1422_v51, %v3652_v10  ;;  %v4221_v51 = vld [vmem:[%s3632_s25 + $0x28] sm:$0xf] }
 0x1b6   : > { %1138 = vrot.lane.b32.xlu1 %v5750_v3, %s3568_s26  ;;  %v1144_v11 = vunpack.c.l.b16 %v5751_v35  ;;  %5752 = vst [vmem:[#allocation39_spill] sm:$0xff] %v4204_v5  ;;  %v1207_v0 = vrot.slane %v1205_v48, 5  ;;  %v1404_v21 = vperm.slane %v1400_v45, %v3652_v10  ;;  %v1427_v13 = vrot.slane %v4204_v5, 4  ;;  %v4214_v35 = vld [vmem:[%s3632_s25 + $0x1c] sm:$0xf] }
 0x1b7   : > { %v1203_v63 = vrot.slane %v1202_v17, 4  ;;  %v1226_v30 = vor.u32 %v1225_v56, %v4080_v40  ;;  %v1435_v3 = vrot.slane %v1426_v19, 4  ;;  %v1229_v60 = vshll.u32 %v305_v29, 16  ;;  %v4227_v29 = vld [vmem:[%s3632_s25 + $0x20] sm:$0x1] }
 0x1b8   : > { %1142 = vrot.lane.b32.xlu2 %v1141_v7, %s3569_s27  ;;  %v1247_v22 = vshrl.u32 %v4214_v35, 16  ;;  %v1405_v43 = vrot.slane %v1404_v21, 4  ;;  %v1428_v48 = vsel %vm325_vm0, %v1427_v13, %v4198_v9  ;;  %v1408_v7 = vsel %vm325_vm0, %v1404_v21, %v1407_v31 }
 0x1b9   : > { %v1271_v45 = vshrl.u32 %v4221_v51, 16  ;;  %v1145_v17 = vpack.c.b16 %v1144_v11, %v1144_v11  ;;  %v1432_v40 = vperm.slane %v1428_v48, %v3652_v10  ;;  %v1416_v56 = vperm.slane %v1408_v7, %v3666_v18 }
 0x1ba   : > { %v1149_v46 = vpack.c.b16 %v1148_v61, %v1148_v61  ;;  %v1406_v1 = vsel %vm325_vm0, %v1405_v43, %v1398_v49  ;;  %v4232_v13 = vsel %vm4089_vm3, %v1203_v63, %v1207_v0  ;;  %v4234_v31 = vrot.slane %v1226_v30, 4  ;;  %v4244_v49 = vld [vmem:[%s3632_s25 + $0x2c] sm:$0x1] }
 0x1bb   : > { %v4238_v21 = vperm.slane %v1406_v1, %v3666_v18  ;;  %v1433_v11 = vrot.slane %v1432_v40, 4  ;;  %v1436_v48 = vsel %vm325_vm0, %v1432_v40, %v1435_v3  ;;  %v1249_v7 = vrot.slane %v1247_v22, 4 }
 0x1bc   : > { %v1444_v61 = vperm.slane %v1436_v48, %v3666_v18  ;;  %v4246_v43 = vrot.slane %v1229_v60, 5  ;;  %v1253_v0 = vshll.u32 %v4227_v29, 16  ;;  %v1273_v63 = vrot.slane %v1271_v45, 4 }
 0x1bd   : > { %1146 = vrot.lane.b32.xlu0 %v1145_v17, %s3572_s30  ;;  %v1434_v30 = vsel %vm325_vm0, %v1433_v11, %v1426_v19  ;;  %v1417_v1 = vrot.slane %v4238_v21, 4  ;;  %v1419_v17 = vrot.slane %v1416_v56, 4  ;;  %v1295_v53 = vshrl.u32 %v4096_v42, 16 }
 0x1be   : > { %1150 = vrot.lane.b32.xlu1 %v1149_v46, %s3573_s6  ;;  %v4253_v22 = vperm.slane %v1434_v30, %v3666_v18  ;;  %v1508_v46 = vshrl.u32 %v4238_v21, 16  ;;  %v1520_v3 = vshrl.u32 %v1416_v56, 16  ;;  %v1521_v40 = vshrl.u32 %v1444_v61, 16 }
 0x1bf   : > { %v1418_v60 = vsel %vm325_vm0, 0, %v1417_v1  ;;  %v1447_v48 = vrot.slane %v1444_v61, 4  ;;  %v1250_v52 = vor.u32 %v1249_v7, %v4093_v23  ;;  %v1277_v19 = vshll.u32 %v4244_v49, 16 }
 0x1c0   : > { %v1509_v45 = vshrl.u32 %v4253_v22, 16  ;;  %v1445_v11 = vrot.slane %v4253_v22, 4  ;;  %v1519_v42 = vpack.i.b16 %v1444_v61, %v1416_v56  ;;  %v4261_v12 = vrot.slane %v1253_v0, 5 }
 0x1c1   : > { %v1514_v30 = vshrl.u32 %v1418_v60, 16  ;;  %v1420_v14 = vsel %vm325_vm0, 0, %v1419_v17  ;;  %v1274_v54 = vor.u32 %v1273_v63, %v4110_v58  ;;  %v1297_v37 = vrot.slane %v1295_v53, 4 }
 0x1c2   : > { %v1510_v1 = vpack.i.b16 %v1509_v45, %v1508_v46  ;;  %v1446_v23 = vsel %vm325_vm0, 0, %v1445_v11  ;;  %v1522_v7 = vpack.i.b16 %v1521_v40, %v1520_v3  ;;  %v1448_v32 = vsel %vm325_vm0, 0, %v1447_v48  ;;  %v4272_v45 = vld [vmem:[%s3632_s25 + $0x44] sm:$0x1]  ;;  %v4275_v3 = vld [vmem:[%s3632_s25 + $0x50] sm:$0x1] }
 0x1c3   : > { %v1513_v16 = vpack.i.b16 %v1446_v23, %v1418_v60  ;;  %v1515_v33 = vshrl.u32 %v1446_v23, 16  ;;  %v1251_v56 = vrot.slane %v1250_v52, 4  ;;  %v1279_v61 = vrot.slane %v1277_v19, 5  ;;  %5754 = vst [vmem:[#allocation41_spill] sm:$0xff] %v4272_v45 }
 0x1c4   : > { %v1553_v0 = vunpack.c.l.b16 %v1510_v1  ;;  %v1565_v34 = vunpack.c.l.b16 %v1519_v42  ;;  %v1526_v17 = vshrl.u32 %v1420_v14, 16  ;;  %v1298_v58 = vor.u32 %v1297_v37, %v4120_v57  ;;  %v4281_v37 = vld [vmem:[%s3632_s25 + $0x5c] sm:$0x1] }
 0x1c5   : > { %v1557_v53 = vunpack.c.l.b16 %v1513_v16  ;;  %v1516_v63 = vpack.i.b16 %v1515_v33, %v1514_v30  ;;  %v1525_v46 = vpack.i.b16 %v1448_v32, %v1420_v14  ;;  %v1275_v40 = vrot.slane %v1274_v54, 4 }
 0x1c6   : > { %v1554_v60 = vpack.c.b16 %v1553_v0, %v1553_v0  ;;  %v1569_v48 = vunpack.c.l.b16 %v1522_v7  ;;  %v1299_v11 = vrot.slane %v1298_v58, 4  ;;  %v1301_v52 = vshll.u32 %v4268_v25, 16 }
 0x1c7   : > { %v1558_v19 = vpack.c.b16 %v1557_v53, %v1557_v53  ;;  %v1561_v1 = vunpack.c.l.b16 %v1516_v63  ;;  %v1527_v42 = vshrl.u32 %v1448_v32, 16  ;;  %v1319_v23 = vshrl.u32 %v4113_v15, 16 }
 0x1c8   : > { %1555 = vrot.lane.b32.xlu2 %v1554_v60, %s3570_s28  ;;  %v1303_v16 = vrot.slane %v1301_v52, 5  ;;  %v1325_v33 = vshll.u32 %v4272_v45, 16  ;;  %v1343_v14 = vshrl.u32 %v4128_v20, 16  ;;  %v1349_v54 = vshll.u32 %v4275_v3, 16 }
 0x1c9   : > { %1559 = vrot.lane.b32.xlu0 %v1558_v19, %s3571_s29  ;;  %v1562_v57 = vpack.c.b16 %v1561_v1, %v1561_v1  ;;  %v1566_v30 = vpack.c.b16 %v1565_v34, %v1565_v34  ;;  %v1321_v7 = vrot.slane %v1319_v23, 4  ;;  %v1367_v32 = vshrl.u32 %v4141_v27, 16 }
 0x1ca   : > { %v1573_v0 = vunpack.c.l.b16 %v1525_v46  ;;  %v4290_v15 = vsel %vm4089_vm3, %v1299_v11, %v1303_v16  ;;  %v1327_v58 = vrot.slane %v1325_v33, 5  ;;  %v1345_v53 = vrot.slane %v1343_v14, 4 }
 0x1cb   : > { %1563 = vrot.lane.b32.xlu1 %v1562_v57, %s3574_s7  ;;  %v1322_v63 = vor.u32 %v1321_v7, %v4125_v41  ;;  %v1369_v60 = vrot.slane %v1367_v32, 4  ;;  %v1373_v52 = vshll.u32 %v4281_v37, 16  ;;  %v1449_v19 = vrot.slane %v4290_v15, 4 }
 0x1cc   : > { %v1570_v34 = vpack.c.b16 %v1569_v48, %v1569_v48  ;;  %v1528_v1 = vpack.i.b16 %v1527_v42, %v1526_v17  ;;  %v1346_v23 = vor.u32 %v1345_v53, %v4137_v36  ;;  %v1351_v46 = vrot.slane %v1349_v54, 5 }
 0x1cd   : > { %v1323_v47 = vrot.slane %v1322_v63, 4  ;;  %v1370_v11 = vor.u32 %v1369_v60, %v4166_v2  ;;  %v1375_v16 = vrot.slane %v1373_v52, 5  ;;  %v1450_v33 = vsel %vm325_vm0, %v1449_v19, %v4232_v13 }
 0x1ce   : > { %v4304_v41 = vsel %vm4089_vm3, %v4234_v31, %v4246_v43  ;;  %v1347_v14 = vrot.slane %v1346_v23, 4  ;;  %v1574_v57 = vpack.c.b16 %v1573_v0, %v1573_v0  ;;  %v4309_v36 = vsel %vm4089_vm3, %v1251_v56, %v4261_v12 }
 0x1cf   : > { %v4313_v2 = vsel %vm4089_vm3, %v1323_v47, %v1327_v58  ;;  %v1371_v17 = vrot.slane %v1370_v11, 4  ;;  %v1577_v48 = vunpack.c.l.b16 %v1528_v1  ;;  %v1454_v31 = vperm.slane %v1450_v33, %v3652_v10 }
 0x1d0   : > { %1567 = vrot.lane.b32.xlu2 %v1566_v30, %s3568_s26  ;;  %v4318_v42 = vsel %vm4089_vm3, %v1347_v14, %v1351_v46  ;;  %v1477_v43 = vrot.slane %v4313_v2, 4  ;;  %v4325_v12 = vsel %vm4089_vm3, %v1275_v40, %v1279_v61 }
 0x1d1   : > { %5755 = vst [vmem:[#allocation42_spill] sm:$0xff] %v4318_v42  ;;  %1571 = vrot.lane.b32.xlu0 %v1570_v34, %s3569_s27  ;;  %v4329_v47 = vsel %vm4089_vm3, %v1371_v17, %v1375_v16  ;;  %v1455_v56 = vrot.slane %v4318_v42, 4  ;;  %v1463_v7 = vrot.slane %v1454_v31, 4  ;;  %v1578_v40 = vpack.c.b16 %v1577_v48, %v1577_v48 }
 0x1d2   : > { %5756 = vst [vmem:[#allocation43_spill] sm:$0xff] %v4329_v47  ;;  %v1478_v54 = vsel %vm325_vm0, %v1477_v43, %v4304_v41  ;;  %v1483_v30 = vrot.slane %v4329_v47, 4 }
 0x1d3   : > { %1575 = vrot.lane.b32.xlu1 %v1574_v57, %s3572_s30  ;;  %v1456_v32 = vsel %vm325_vm0, %v1455_v56, %v4309_v36  ;;  %v1482_v61 = vperm.slane %v1478_v54, %v3652_v10 }
 0x1d4   : > { %v1460_v28 = vperm.slane %v1456_v32, %v3652_v10  ;;  %v1484_v0 = vsel %vm325_vm0, %v1483_v30, %v4325_v12 }
 0x1d5   : > { %v1488_v58 = vperm.slane %v1484_v0, %v3652_v10  ;;  %v1491_v53 = vrot.slane %v1482_v61, 4 }
 0x1d6   : > { %v1461_v63 = vrot.slane %v1460_v28, 4  ;;  %v1464_v60 = vsel %vm325_vm0, %v1460_v28, %v1463_v7 }
 0x1d7   : > { %v1489_v52 = vrot.slane %v1488_v58, 4  ;;  %v1492_v19 = vsel %vm325_vm0, %v1488_v58, %v1491_v53  ;;  %v1472_v46 = vperm.slane %v1464_v60, %v3666_v18 }
 0x1d8   : > { %1579 = vrot.lane.b32.xlu2 %v1578_v40, %s3573_s6  ;;  %v1462_v34 = vsel %vm325_vm0, %v1461_v63, %v1454_v31  ;;  %v1500_v11 = vperm.slane %v1492_v19, %v3666_v18 }
 0x1d9   : > { %v4348_v1 = vperm.slane %v1462_v34, %v3666_v18  ;;  %v1490_v23 = vsel %vm325_vm0, %v1489_v52, %v1482_v61  ;;  %v1475_v48 = vrot.slane %v1472_v46, 4  ;;  %v1544_v56 = vshrl.u32 %v1472_v46, 16 }
 0x1da   : > { %v4354_v16 = vperm.slane %v1490_v23, %v3666_v18  ;;  %v1503_v31 = vrot.slane %v1500_v11, 4  ;;  %v1545_v54 = vshrl.u32 %v1500_v11, 16  ;;  %v1543_v0 = vpack.i.b16 %v1500_v11, %v1472_v46 }
 0x1db   : > { %v1532_v33 = vshrl.u32 %v4348_v1, 16  ;;  %v1473_v14 = vrot.slane %v4348_v1, 4  ;;  %v1476_v58 = vsel %vm325_vm0, 0, %v1475_v48 }
 0x1dc   : > { %v1533_v57 = vshrl.u32 %v4354_v16, 16  ;;  %v1501_v17 = vrot.slane %v4354_v16, 4  ;;  %v1504_v53 = vsel %vm325_vm0, 0, %v1503_v31  ;;  %v1546_v52 = vpack.i.b16 %v1545_v54, %v1544_v56 }
 0x1dd   : > { %v1474_v43 = vsel %vm325_vm0, 0, %v1473_v14  ;;  %v1549_v14 = vpack.i.b16 %v1504_v53, %v1476_v58 }
 0x1de   : > { %v1534_v30 = vpack.i.b16 %v1533_v57, %v1532_v33  ;;  %v1502_v7 = vsel %vm325_vm0, 0, %v1501_v17  ;;  %v1538_v32 = vshrl.u32 %v1474_v43, 16  ;;  %v1593_v33 = vunpack.c.l.b16 %v1543_v0 }
 0x1df   : > { %v1537_v61 = vpack.i.b16 %v1502_v7, %v1474_v43  ;;  %v1539_v40 = vshrl.u32 %v1502_v7, 16  ;;  %v1550_v57 = vshrl.u32 %v1476_v58, 16  ;;  %v1551_v17 = vshrl.u32 %v1504_v53, 16 }
 0x1e0   : > { %v1581_v28 = vunpack.c.l.b16 %v1534_v30  ;;  %v1597_v46 = vunpack.c.l.b16 %v1546_v52  ;;  %v1601_v11 = vunpack.c.l.b16 %v1549_v14  ;;  %v1594_v48 = vpack.c.b16 %v1593_v33, %v1593_v33 }
 0x1e1   : > { %v1585_v63 = vunpack.c.l.b16 %v1537_v61  ;;  %v1540_v60 = vpack.i.b16 %v1539_v40, %v1538_v32  ;;  %v1552_v31 = vpack.i.b16 %v1551_v17, %v1550_v57  ;;  %v1507_v32 = vpack.i.b16 %v4253_v22, %v4238_v21 }
 0x1e2   : > { %v1582_v19 = vpack.c.b16 %v1581_v28, %v1581_v28  ;;  %v1598_v30 = vpack.c.b16 %v1597_v46, %v1597_v46  ;;  %v1602_v56 = vpack.c.b16 %v1601_v11, %v1601_v11 }
 0x1e3   : > { %v1586_v34 = vpack.c.b16 %v1585_v63, %v1585_v63  ;;  %v1589_v23 = vunpack.c.l.b16 %v1540_v60  ;;  %v1605_v54 = vunpack.c.l.b16 %v1552_v31 }
 0x1e4   : > { %1583 = vrot.lane.b32.xlu0 %v1582_v19, %s3570_s28 }
 0x1e5   : > { %1587 = vrot.lane.b32.xlu1 %v1586_v34, %s3571_s29  ;;  %v1590_v43 = vpack.c.b16 %v1589_v23, %v1589_v23  ;;  %v1606_v7 = vpack.c.b16 %v1605_v54, %v1605_v54 }
 0x1e7   : > { %1591 = vrot.lane.b32.xlu2 %v1590_v43, %s3574_s7 }
 0x1ec   : > { %1595 = vrot.lane.b32.xlu0 %v1594_v48, %s3568_s26 }
 0x1ed   : > { %1599 = vrot.lane.b32.xlu1 %v1598_v30, %s3569_s27 }
 0x1ef   : > { %1603 = vrot.lane.b32.xlu2 %v1602_v56, %s3572_s30 }
 0x1f4   : > { %1607 = vrot.lane.b32.xlu0 %v1606_v7, %s3573_s6 }
 0x1f5   : > { %1639 = vrot.lane.b32.xlu1 %v4102_v6, %s3575_s8 }
 0x1f7   : > { %1641 = vrot.lane.b32.xlu2 %v4232_v13, %s3575_s8 }
 0x1fa   : > { %v4389_v61 = vpop.permute.xlu2 %1106 }
 0x1fc   : > { %1643 = vrot.lane.b32.xlu0 %v4108_v26, %s3575_s8 }
 0x1fd   : > { %1645 = vrot.lane.b32.xlu1 %v4304_v41, %s3575_s8 }
 0x1ff   : > { %1647 = vrot.lane.b32.xlu2 %v4158_v4, %s3575_s8 }
 0x202   : > { %v4407_v28 = vpop.permute.xlu2 %1118 }
 0x204   : > { %1649 = vrot.lane.b32.xlu0 %v4309_v36, %s3575_s8 }
 0x205   : > { %1651 = vrot.lane.b32.xlu1 %v4198_v9, %s3575_s8 }
 0x207   : > { %1653 = vrot.lane.b32.xlu2 %v4325_v12, %s3575_s8 }
 0x20a   : > { %v4421_v63 = vpop.permute.xlu2 %1130 }
 0x20c   : > { %1655 = vrot.lane.b32.xlu0 %v4152_v8, %s3575_s8 }
 0x20d   : > { %1657 = vrot.lane.b32.xlu1 %v4290_v15, %s3575_s8 }
 0x20f   : > { %v4395_v21 = vpop.permute.xlu0 %1098  ;;  %1659 = vrot.lane.b32.xlu2 %v4164_v44, %s3575_s8 }
 0x210   : > { %v4397_v22 = vpop.permute.xlu1 %1102 }
 0x212   : > { %v4427_v19 = vpop.permute.xlu2 %1142 }
 0x214   : > { %1661 = vrot.lane.b32.xlu0 %v4313_v2, %s3575_s8 }
 0x215   : > { %1663 = vrot.lane.b32.xlu1 %v4175_v24, %s3575_s8 }
 0x217   : > { %v4405_v40 = vpop.permute.xlu0 %1110  ;;  %1665 = vrot.lane.b32.xlu2 %v4318_v42, %s3575_s8 }
 0x218   : > { %v4409_v0 = vpop.permute.xlu1 %1114 }
 0x21c   : > { %1667 = vrot.lane.b32.xlu0 %v4204_v5, %s3575_s8 }
 0x21d   : > { %1669 = vrot.lane.b32.xlu1 %v4329_v47, %s3575_s8 }
 0x21f   : > { %v4417_v58 = vpop.permute.xlu0 %1122 }
 0x220   : > { %v4419_v53 = vpop.permute.xlu1 %1126 }
 0x222   : > { %v1556_v23 = vpop.permute.xlu2 %1555 }
 0x223   : > { %v1611_v33 = vsel %vm541_vm4, %v1507_v32, %v1556_v23 }
 0x227   : > { %v4423_v60 = vpop.permute.xlu0 %1134 }
 0x228   : > { %v4425_v52 = vpop.permute.xlu1 %1138 }
 0x22a   : > { %v1568_v17 = vpop.permute.xlu2 %1567 }
 0x22f   : > { %v4429_v34 = vpop.permute.xlu0 %1146 }
 0x230   : > { %v4431_v14 = vpop.permute.xlu1 %1150 }
 0x232   : > { %v1580_v54 = vpop.permute.xlu2 %1579 }
 0x23b   : > { %v1560_v57 = vpop.permute.xlu0 %1559 }
 0x23c   : > { %v1613_v43 = vsel %vm545_vm5, %v1611_v33, %v1560_v57  ;;  %v1531_v33 = vpack.i.b16 %v4354_v16, %v4348_v1 }
 0x23d   : > { %v1564_v46 = vpop.permute.xlu1 %1563 }
 0x23e   : > { %v1615_v11 = vsel %vm548_vm6, %v1613_v43, %v1564_v46 }
 0x23f   : > { %v1617_v48 = vsel %vm551_vm7, %v1615_v11, %v1568_v17 }
 0x241   : > { %v1592_v23 = vpop.permute.xlu2 %1591 }
 0x243   : > { %v1572_v31 = vpop.permute.xlu0 %1571 }
 0x244   : > { %v1619_v30 = vsel %vm554_vm8, %v1617_v48, %v1572_v31 }
 0x245   : > { %v1576_v56 = vpop.permute.xlu1 %1575 }
 0x246   : > { %v1621_v7 = vsel %vm557_vm9, %v1619_v30, %v1576_v56 }
 0x247   : > { %v1623_v32 = vsel %vm560_vm10, %v1621_v7, %v1580_v54 }
 0x249   : > { %v1604_v48 = vpop.permute.xlu2 %1603 }
 0x251   : > { %v1642_v54 = vpop.permute.xlu2 %1641 }
 0x256   : > { %v1584_v57 = vpop.permute.xlu0 %1583 }
 0x257   : > { %v1626_v43 = vsel %vm541_vm4, %v1531_v33, %v1584_v57  ;;  %v1588_v46 = vpop.permute.xlu1 %1587 }
 0x258   : > { %v1628_v17 = vsel %vm545_vm5, %v1626_v43, %v1588_v46 }
 0x259   : > { %v1630_v11 = vsel %vm548_vm6, %v1628_v17, %v1592_v23  ;;  %v1648_v33 = vpop.permute.xlu2 %1647 }
 0x25e   : > { %v1596_v31 = vpop.permute.xlu0 %1595 }
 0x25f   : > { %v1632_v47 = vsel %vm551_vm7, %v1630_v11, %v1596_v31  ;;  %v1600_v5 = vpop.permute.xlu1 %1599  ;;  %v1050_v11 = vpack.i.b16 %v4027_v38, %v3985_v50 }
 0x260   : > { %v1634_v30 = vsel %vm554_vm8, %v1632_v47, %v1600_v5 }
 0x261   : > { %v1636_v56 = vsel %vm557_vm9, %v1634_v30, %v1604_v48  ;;  %v1654_v17 = vpop.permute.xlu2 %1653  ;;  %v1154_v5 = vsel %vm541_vm4, %v1050_v11, %v4395_v21  ;;  %v3152_v21 = vrot.slane %v1623_v32, 4 }
 0x262   : > { %v1156_v48 = vsel %vm545_vm5, %v1154_v5, %v4397_v22 }
 0x266   : > { %v1608_v7 = vpop.permute.xlu0 %1607 }
 0x267   : > { %v4449_v1 = vsel %vm560_vm10, %v1636_v56, %v1608_v7  ;;  %v1640_v16 = vpop.permute.xlu1 %1639  ;;  %v1158_v56 = vsel %vm548_vm6, %v1156_v48, %v4389_v61 }
 0x268   : > { %v1160_v7 = vsel %vm551_vm7, %v1158_v56, %v4405_v40 }
 0x269   : > { %v1660_v30 = vpop.permute.xlu2 %1659  ;;  %v1162_v38 = vsel %vm554_vm8, %v1160_v7, %v4409_v0  ;;  %v1074_v7 = vpack.i.b16 %v3995_v62, %v4018_v39 }
 0x26a   : > { %v1715_v45 = vrot.slane %v1660_v30, 4  ;;  %v1164_v40 = vsel %vm557_vm9, %v1162_v38, %v4407_v28 }
 0x26b   : > { %v1166_v48 = vsel %vm560_vm10, %v1164_v40, %v4417_v58  ;;  %v1169_v62 = vsel %vm541_vm4, %v1074_v7, %v4419_v53 }
 0x26c   : > { %v4474_v32 = vsel %vm3162_vm11, %v1166_v48, %v3152_v21 }
 0x26d   : > { %5757 = vst [vmem:[#allocation44_spill] sm:$0xff] %v4474_v32 }
 0x26e   : > { %v1644_v57 = vpop.permute.xlu0 %1643 }
 0x26f   : > { %v1646_v43 = vpop.permute.xlu1 %1645  ;;  %v1716_v5 = vsel %vm325_vm0, %v1715_v45, %v1644_v57 }
 0x270   : > { %v1720_v0 = vperm.slane %v1716_v5, %v3652_v10 }
 0x276   : > { %v1650_v46 = vpop.permute.xlu0 %1649 }
 0x277   : > { %v1652_v23 = vpop.permute.xlu1 %1651 }
 0x27e   : > { %v1656_v31 = vpop.permute.xlu0 %1655 }
 0x27f   : > { %v1658_v47 = vpop.permute.xlu1 %1657  ;;  %v1687_v42 = vrot.slane %v1656_v31, 4  ;;  %v1666_v31 = vpop.permute.xlu2 %1665 }
 0x280   : > { %v1749_v45 = vrot.slane %v1666_v31, 4  ;;  %v1743_v5 = vrot.slane %v1658_v47, 4 }
 0x281   : > { %v1688_v11 = vsel %vm325_vm0, %v1687_v42, %v1640_v16 }
 0x286   : > { %v1662_v24 = vpop.permute.xlu0 %1661 }
 0x287   : > { %v1664_v25 = vpop.permute.xlu1 %1663  ;;  %v1771_v40 = vrot.slane %v1662_v24, 4  ;;  %v1744_v24 = vsel %vm325_vm0, %v1743_v5, %v1642_v54 }
 0x288   : > { %v1693_v50 = vrot.slane %v1664_v25, 4  ;;  %v1692_v25 = vperm.slane %v1688_v11, %v3652_v10  ;;  %v1750_v11 = vsel %vm325_vm0, %v1749_v45, %v1650_v46  ;;  %v1171_v45 = vsel %vm545_vm5, %v1169_v62, %v4421_v63 }
 0x289   : > { %v4494_v39 = vperm.slane %v1750_v11, %v3652_v10  ;;  %v1772_v47 = vsel %vm325_vm0, %v1771_v40, %v1646_v43 }
 0x28a   : > { %v1694_v22 = vsel %vm325_vm0, %v1693_v50, %v1648_v33  ;;  %v1729_v50 = vrot.slane %v1720_v0, 4  ;;  %v1776_v63 = vperm.slane %v1772_v47, %v3652_v10 }
 0x28b   : > { %v1698_v61 = vperm.slane %v1694_v22, %v3652_v10  ;;  %v1701_v22 = vrot.slane %v1692_v25, 4 }
 0x28d   : > { %v1699_v30 = vrot.slane %v1698_v61, 4  ;;  %v1702_v46 = vsel %vm325_vm0, %v1698_v61, %v1701_v22 }
 0x28e   : > { %v1668_v42 = vpop.permute.xlu0 %1667  ;;  %v1710_v43 = vperm.slane %v1702_v46, %v3666_v18 }
 0x28f   : > { %v1721_v16 = vrot.slane %v1668_v42, 4  ;;  %v1670_v33 = vpop.permute.xlu1 %1669  ;;  %v1700_v57 = vsel %vm325_vm0, %v1699_v30, %v1692_v25 }
 0x290   : > { %v1777_v28 = vrot.slane %v1670_v33, 4  ;;  %v4478_v56 = vperm.slane %v1700_v57, %v3666_v18  ;;  %v1173_v33 = vsel %vm548_vm6, %v1171_v45, %v4423_v60  ;;  %v1755_v57 = vrot.slane %v4494_v39, 4 }
 0x291   : > { %v1722_v58 = vsel %vm325_vm0, %v1721_v16, %v1652_v23  ;;  %v1175_v40 = vsel %vm551_vm7, %v1173_v33, %v4425_v52 }
 0x292   : > { %v1726_v38 = vperm.slane %v1722_v58, %v3652_v10  ;;  %v1778_v21 = vsel %vm325_vm0, %v1777_v28, %v1654_v17  ;;  %v1711_v30 = vrot.slane %v4478_v56, 4  ;;  %v1748_v28 = vperm.slane %v1744_v24, %v3652_v10 }
 0x293   : > { %v4487_v48 = vperm.slane %v1778_v21, %v3652_v10  ;;  %v1177_v52 = vsel %vm554_vm8, %v1175_v40, %v4427_v19 }
 0x294   : > { %v1727_v31 = vrot.slane %v1726_v38, 4  ;;  %v1730_v23 = vsel %vm325_vm0, %v1726_v38, %v1729_v50  ;;  %v1712_v16 = vsel %vm325_vm0, 0, %v1711_v30  ;;  %v1756_v30 = vsel %vm325_vm0, %v1755_v57, %v1748_v28 }
 0x295   : > { %v1738_v42 = vperm.slane %v1730_v23, %v3666_v18  ;;  %v1783_v53 = vrot.slane %v4487_v48, 4  ;;  %v1808_v50 = vshrl.u32 %v1712_v16, 16 }
 0x296   : > { %v1728_v17 = vsel %vm325_vm0, %v1727_v31, %v1720_v0  ;;  %v1802_v0 = vshrl.u32 %v4478_v56, 16  ;;  %v1713_v31 = vrot.slane %v1710_v43, 4 }
 0x297   : > { %v4501_v25 = vperm.slane %v1728_v17, %v3666_v18  ;;  %v1741_v38 = vrot.slane %v1738_v42, 4  ;;  %v1815_v22 = vshrl.u32 %v1738_v42, 16  ;;  %v1784_v5 = vsel %vm325_vm0, %v1783_v53, %v1776_v63 }
 0x298   : > { %v1814_v17 = vshrl.u32 %v1710_v43, 16  ;;  %v1813_v24 = vpack.i.b16 %v1738_v42, %v1710_v43  ;;  %v4524_v45 = vperm.slane %v1784_v5, %v3666_v18  ;;  %v1179_v42 = vsel %vm557_vm9, %v1177_v52, %v4429_v34 }
 0x299   : > { %v1803_v61 = vshrl.u32 %v4501_v25, 16  ;;  %v1739_v54 = vrot.slane %v4501_v25, 4  ;;  %v1742_v47 = vsel %vm325_vm0, 0, %v1741_v38  ;;  %v3153_v43 = vrot.slane %v4449_v1, 4 }
 0x29a   : > { %v1816_v53 = vpack.i.b16 %v1815_v22, %v1814_v17  ;;  %v1795_v19 = vrot.slane %v4524_v45, 4  ;;  %v1785_v38 = vrot.slane %v1776_v63, 4  ;;  %v1801_v34 = vpack.i.b16 %v4501_v25, %v4478_v56  ;;  %v5761_v25 = vld [vmem:[#allocation40_spill] sm:$0xff] }
 0x29b   : > { %v1804_v58 = vpack.i.b16 %v1803_v61, %v1802_v0  ;;  %v1740_v7 = vsel %vm325_vm0, 0, %v1739_v54  ;;  %v1714_v61 = vsel %vm325_vm0, 0, %v1713_v31  ;;  %v4531_v54 = vperm.slane %v1756_v30, %v3666_v18 }
 0x29c   : > { %v1807_v21 = vpack.i.b16 %v1740_v7, %v1712_v16  ;;  %v1809_v11 = vshrl.u32 %v1740_v7, 16  ;;  %v1819_v57 = vpack.i.b16 %v1742_v47, %v1714_v61  ;;  %v1859_v7 = vunpack.c.l.b16 %v1813_v24 }
 0x29d   : > { %v1847_v60 = vunpack.c.l.b16 %v1804_v58  ;;  %v1757_v58 = vrot.slane %v1748_v28, 4  ;;  %v1181_v1 = vsel %vm560_vm10, %v1179_v42, %v4431_v14  ;;  %v1820_v22 = vshrl.u32 %v1714_v61, 16 }
 0x29e   : > { %v1851_v23 = vunpack.c.l.b16 %v1807_v21  ;;  %v1810_v62 = vpack.i.b16 %v1809_v11, %v1808_v50  ;;  %v1821_v50 = vshrl.u32 %v1742_v47, 16  ;;  %v1863_v21 = vunpack.c.l.b16 %v1816_v53 }
 0x29f   : > { %v1848_v46 = vpack.c.b16 %v1847_v60, %v1847_v60  ;;  %v1827_v11 = vshrl.u32 %v4524_v45, 16  ;;  %v1826_v5 = vshrl.u32 %v4531_v54, 16  ;;  %v1767_v28 = vrot.slane %v4531_v54, 4 }
 0x2a0   : > { %v1852_v16 = vpack.c.b16 %v1851_v23, %v1851_v23  ;;  %v1855_v0 = vunpack.c.l.b16 %v1810_v62  ;;  %v1867_v40 = vunpack.c.l.b16 %v1819_v57  ;;  %v1786_v63 = vsel %vm325_vm0, %v4487_v48, %v1785_v38 }
 0x2a1   : > { %1849 = vrot.lane.b32.xlu2 %v1848_v46, %s3570_s28  ;;  %v1825_v60 = vpack.i.b16 %v4524_v45, %v4531_v54  ;;  %v4551_v31 = vsel %vm3162_vm11, %v1181_v1, %v3153_v43  ;;  %v1860_v30 = vpack.c.b16 %v1859_v7, %v1859_v7  ;;  %v1822_v23 = vpack.i.b16 %v1821_v50, %v1820_v22 }
 0x2a2   : > { %1853 = vrot.lane.b32.xlu0 %v1852_v16, %s3571_s29  ;;  %v1856_v33 = vpack.c.b16 %v1855_v0, %v1855_v0  ;;  %5758 = vst [vmem:[#allocation45_spill] sm:$0xff] %v4551_v31  ;;  %v1796_v62 = vsel %vm325_vm0, 0, %v1795_v19  ;;  %v1864_v14 = vpack.c.b16 %v1863_v21, %v1863_v21  ;;  %v1828_v17 = vpack.i.b16 %v1827_v11, %v1826_v5 }
 0x2a3   : > { %v1758_v46 = vsel %vm325_vm0, %v4494_v39, %v1757_v58  ;;  %v1768_v24 = vsel %vm325_vm0, 0, %v1767_v28  ;;  %v1794_v48 = vperm.slane %v1786_v63, %v3666_v18  ;;  %v1868_v47 = vpack.c.b16 %v1867_v40, %v1867_v40 }
 0x2a4   : > { %1857 = vrot.lane.b32.xlu1 %v1856_v33, %s3574_s7  ;;  %v1831_v16 = vpack.i.b16 %v1796_v62, %v1768_v24  ;;  %v1871_v0 = vunpack.c.l.b16 %v1822_v23  ;;  %v1833_v53 = vshrl.u32 %v1796_v62, 16  ;;  %v1766_v52 = vperm.slane %v1758_v46, %v3666_v18 }
 0x2a5   : > { %v1875_v61 = vunpack.c.l.b16 %v1828_v17  ;;  %v1832_v42 = vshrl.u32 %v1768_v24, 16  ;;  %v1797_v43 = vrot.slane %v1794_v48, 4  ;;  %v1839_v33 = vshrl.u32 %v1794_v48, 16 }
 0x2a6   : > { %v1879_v39 = vunpack.c.l.b16 %v1831_v16  ;;  %v1872_v57 = vpack.c.b16 %v1871_v0, %v1871_v0  ;;  %v1769_v7 = vrot.slane %v1766_v52, 4  ;;  %v1837_v19 = vpack.i.b16 %v1794_v48, %v1766_v52 }
 0x2a7   : > { %v1834_v58 = vpack.i.b16 %v1833_v53, %v1832_v42  ;;  %v1876_v50 = vpack.c.b16 %v1875_v61, %v1875_v61  ;;  %v1838_v38 = vshrl.u32 %v1766_v52, 16  ;;  %v1798_v21 = vsel %vm325_vm0, 0, %v1797_v43 }
 0x2a8   : > { %v1880_v11 = vpack.c.b16 %v1879_v39, %v1879_v39  ;;  %v1770_v5 = vsel %vm325_vm0, 0, %v1769_v7  ;;  %v1887_v28 = vunpack.c.l.b16 %v1837_v19  ;;  %v1845_v40 = vshrl.u32 %v1798_v21, 16 }
 0x2a9   : > { %1861 = vrot.lane.b32.xlu2 %v1860_v30, %s3568_s26  ;;  %v1840_v1 = vpack.i.b16 %v1839_v33, %v1838_v38  ;;  %v1883_v22 = vunpack.c.l.b16 %v1834_v58  ;;  %v1844_v30 = vshrl.u32 %v1770_v5, 16  ;;  %v1843_v62 = vpack.i.b16 %v1798_v21, %v1770_v5  ;;  %v3531_v33 = vld [vmem:[%s3632_s25 + $0x24] sm:$0xf] }
 0x2aa   : > { %1865 = vrot.lane.b32.xlu0 %v1864_v14, %s3569_s27  ;;  %v1888_v14 = vpack.c.b16 %v1887_v28, %v1887_v28  ;;  %v2282_v0 = vrot.slane %v4128_v20, 5  ;;  %v2289_v53 = vrot.slane %v4141_v27, 5  ;;  %v2254_v61 = vrot.slane %v4214_v35, 5 }
 0x2ab   : > { %v1891_v63 = vunpack.c.l.b16 %v1840_v1  ;;  %v1884_v23 = vpack.c.b16 %v1883_v22, %v1883_v22  ;;  %v1846_v17 = vpack.i.b16 %v1845_v40, %v1844_v30  ;;  %v1895_v24 = vunpack.c.l.b16 %v1843_v62  ;;  %v3533_v22 = vld [vmem:[%s3632_s25 + $0x34] sm:$0xf]  ;;  %v3534_v40 = vld [vmem:[%s3632_s25 + $0x40] sm:$0xf] }
 0x2ac   : > { %1869 = vrot.lane.b32.xlu1 %v1868_v47, %s3572_s30  ;;  %v2291_v42 = vrot.slane %v2289_v53, 4  ;;  %v2292_v43 = vrot.slane %v4281_v37, 5  ;;  %v2256_v39 = vrot.slane %v2254_v61, 4  ;;  %v2261_v58 = vrot.slane %v4221_v51, 5 }
 0x2ad   : > { %v1892_v46 = vpack.c.b16 %v1891_v63, %v1891_v63  ;;  %v1899_v48 = vunpack.c.l.b16 %v1846_v17  ;;  %v1896_v47 = vpack.c.b16 %v1895_v24, %v1895_v24  ;;  %v2264_v38 = vrot.slane %v4244_v49, 5  ;;  %v5762_v17 = vld [vmem:[#allocation41_spill] sm:$0xff] }
 0x2ae   : > { %v2293_v7 = vsel %vm4588_vm14, %v2291_v42, %v2292_v43  ;;  %v2263_v51 = vrot.slane %v2261_v58, 4  ;;  %v2268_v5 = vrot.slane %v3533_v22, 5  ;;  %v2275_v63 = vrot.slane %v3534_v40, 5 }
 0x2af   : > { %v1900_v16 = vpack.c.b16 %v1899_v48, %v1899_v48  ;;  %v2400_v19 = vrot.slane %v2293_v7, 4 }
 0x2b0   : > { %v4640_v21 = vsel %vm4588_vm14, %v2263_v51, %v2264_v38  ;;  %v2270_v56 = vrot.slane %v2268_v5, 4 }
 0x2b1   : > { %1873 = vrot.lane.b32.xlu2 %v1872_v57, %s3573_s6  ;;  %v3467_v57 = vrot.slane %v3531_v33, 9  ;;  %v3540_v33 = vld [vmem:[%s3632_s25 + $0x10] sm:$0xf] }
 0x2b2   : > { %1877 = vrot.lane.b32.xlu0 %v1876_v50, %s3570_s28 }
 0x2b3   : > { %v4629_v50 = vsel %vm4588_vm14, %v3467_v57, %v2261_v58  ;;  %v2247_v57 = vrot.slane %v3540_v33, 5 }
 0x2b4   : > { %1881 = vrot.lane.b32.xlu1 %v1880_v11, %s3571_s29  ;;  %v2401_v11 = vsel %vm325_vm0, %v2400_v19, %v4640_v21 }
 0x2b5   : > { %v2405_v58 = vperm.slane %v2401_v11, %v3652_v10  ;;  %v2249_v22 = vrot.slane %v2247_v57, 4 }
 0x2b9   : > { %1885 = vrot.lane.b32.xlu2 %v1884_v23, %s3574_s7  ;;  %v3535_v23 = vld [vmem:[%s3632_s25 + $0x3c] sm:$0xf] }
 0x2ba   : > { %1889 = vrot.lane.b32.xlu0 %v1888_v14, %s3568_s26  ;;  %v3469_v62 = vrot.slane %v3535_v23, 9  ;;  %v2277_v14 = vrot.slane %v2275_v63, 4 }
 0x2bc   : > { %1893 = vrot.lane.b32.xlu1 %v1892_v46, %s3569_s27  ;;  %v2278_v46 = vrot.slane %v5762_v17, 5  ;;  %v4682_v48 = vsel %vm4588_vm14, %v3469_v62, %v2275_v63 }
 0x2c1   : > { %1897 = vrot.lane.b32.xlu2 %v1896_v47, %s3572_s30  ;;  %v4688_v47 = vsel %vm4588_vm14, %v2277_v14, %v2278_v46 }
 0x2c2   : > { %1901 = vrot.lane.b32.xlu0 %v1900_v16, %s3573_s6 }
 0x2c4   : > { %1933 = vrot.lane.b32.xlu1 %v4102_v6, %s3576_s9  ;;  %v3470_v6 = vrot.slane %v4117_v59, 9 }
 0x2c9   : > { %1935 = vrot.lane.b32.xlu2 %v4232_v13, %s3576_s9  ;;  %v2284_v13 = vrot.slane %v2282_v0, 4 }
 0x2ca   : > { %1937 = vrot.lane.b32.xlu0 %v4108_v26, %s3576_s9 }
 0x2cc   : > { %1939 = vrot.lane.b32.xlu1 %v4304_v41, %s3576_s9  ;;  %v3471_v41 = vrot.slane %v4134_v55, 9 }
 0x2ce   : > { %v2290_v27 = vsel %vm4588_vm14, %v3471_v41, %v2289_v53  ;;  %v3537_v53 = vld [vmem:[%s3632_s25 + $0x4] sm:$0xf] }
 0x2d1   : > { %1941 = vrot.lane.b32.xlu2 %v4158_v4, %s3576_s9  ;;  %v2285_v4 = vrot.slane %v4275_v3, 5  ;;  %v2344_v3 = vrot.slane %v2290_v27, 4 }
 0x2d2   : > { %1943 = vrot.lane.b32.xlu0 %v4309_v36, %s3576_s9  ;;  %v2283_v36 = vsel %vm4588_vm14, %v3470_v6, %v2282_v0 }
 0x2d3   : > { %v2316_v59 = vrot.slane %v2283_v36, 4  ;;  %v2286_v20 = vsel %vm4588_vm14, %v2284_v13, %v2285_v4  ;;  %v3536_v4 = vld [vmem:[%s3632_s25] sm:$0xf] }
 0x2d4   : > { %1945 = vrot.lane.b32.xlu1 %v4198_v9, %s3576_s9  ;;  %v3530_v9 = vld [vmem:[%s3632_s25 + $0x18] sm:$0xf]  ;;  %v2372_v55 = vrot.slane %v2286_v20, 4  ;;  %v3464_v41 = vrot.slane %v3536_v4, 9 }
 0x2d5   : > { %v3466_v52 = vrot.slane %v3530_v9, 9 }
 0x2d9   : > { %1947 = vrot.lane.b32.xlu2 %v4325_v12, %s3576_s9  ;;  %v4610_v12 = vsel %vm4588_vm14, %v3466_v52, %v2254_v61  ;;  %v3538_v61 = vld [vmem:[%s3632_s25 + $0x8] sm:$0x1] }
 0x2da   : > { %1949 = vrot.lane.b32.xlu0 %v4152_v8, %s3576_s9  ;;  %v2317_v35 = vsel %vm325_vm0, %v2316_v59, %v4610_v12  ;;  %v2257_v8 = vrot.slane %v4227_v29, 5  ;;  %v2345_v29 = vsel %vm325_vm0, %v2344_v3, %v4629_v50 }
 0x2db   : > { %v2321_v6 = vperm.slane %v2317_v35, %v3652_v10  ;;  %v2349_v3 = vperm.slane %v2345_v29, %v3652_v10 }
 0x2dc   : > { %1951 = vrot.lane.b32.xlu1 %v4290_v15, %s3576_s9  ;;  %v4621_v37 = vsel %vm4588_vm14, %v2256_v39, %v2257_v8  ;;  %v3539_v39 = vld [vmem:[%s3632_s25 + $0xc] sm:$0xf] }
 0x2dd   : > { %v2373_v15 = vsel %vm325_vm0, %v2372_v55, %v4621_v37  ;;  %v2243_v55 = vrot.slane %v3538_v61, 5  ;;  %v3465_v8 = vrot.slane %v3539_v39, 9  ;;  %v2350_v11 = vrot.slane %v2349_v3, 4 }
 0x2de   : > { %v2377_v0 = vperm.slane %v2373_v15, %v3652_v10 }
 0x2e1   : > { %1953 = vrot.lane.b32.xlu2 %v4164_v44, %s3576_s9 }
 0x2e2   : > { %1955 = vrot.lane.b32.xlu0 %v4313_v2, %s3576_s9  ;;  %v3532_v2 = vld [vmem:[%s3632_s25 + $0x30] sm:$0xf] }
 0x2e3   : > { %v3468_v1 = vrot.slane %v3532_v2, 9 }
 0x2e4   : > { %2580 = vrot.lane.b32.xlu1 %v2283_v36, %s3575_s8 }
 0x2e5   : > { %v4666_v28 = vsel %vm4588_vm14, %v3468_v1, %v2268_v5  ;;  %v4735_v1 = vsel %vm4588_vm14, %v3465_v8, %v2247_v57 }
 0x2e6   : > { %v2310_v13 = vrot.slane %v4666_v28, 4 }
 0x2e9   : > { %2582 = vrot.lane.b32.xlu2 %v2286_v20, %s3575_s8 }
 0x2ea   : > { %2584 = vrot.lane.b32.xlu0 %v2290_v27, %s3575_s8 }
 0x2ec   : > { %2586 = vrot.lane.b32.xlu1 %v2293_v7, %s3575_s8 }
 0x2f1   : > { %2874 = vrot.lane.b32.xlu2 %v2283_v36, %s3576_s9  ;;  %v2240_v36 = vrot.slane %v3537_v53, 5 }
 0x2f2   : > { %2876 = vrot.lane.b32.xlu0 %v2286_v20, %s3576_s9  ;;  %v2322_v20 = vrot.slane %v2321_v6, 4 }
 0x2f3   : > { %v4706_v9 = vsel %vm4588_vm14, %v3464_v41, %v2240_v36  ;;  %v2242_v52 = vrot.slane %v2240_v36, 4 }
 0x2f4   : > { %2878 = vrot.lane.b32.xlu1 %v2290_v27, %s3576_s9  ;;  %v2378_v27 = vrot.slane %v2377_v0, 4  ;;  %v2311_v42 = vsel %vm325_vm0, %v2310_v13, %v4706_v9 }
 0x2f5   : > { %v2315_v35 = vperm.slane %v2311_v42, %v3652_v10 }
 0x2f7   : > { %v4730_v51 = vsel %vm325_vm0, %v2322_v20, %v2315_v35  ;;  %v2324_v38 = vrot.slane %v2315_v35, 4  ;;  %v5767_v35 = vld [vmem:[#allocation43_spill] sm:$0xff] }
 0x2f9   : > { %2880 = vrot.lane.b32.xlu2 %v2293_v7, %s3576_s9  ;;  %v2338_v7 = vrot.slane %v4682_v48, 4  ;;  %v4740_v63 = vsel %vm325_vm0, %v2321_v6, %v2324_v38 }
 0x2fa   : > { %2564 = vrot.lane.b32.xlu0 %v4610_v12, %s3575_s8 }
 0x2fb   : > { %v1850_v44 = vpop.permute.xlu2 %1849  ;;  %v2339_v23 = vsel %vm325_vm0, %v2338_v7, %v4735_v1 }
 0x2fc   : > { %v1905_v49 = vsel %vm541_vm4, %v1801_v34, %v1850_v44  ;;  %2566 = vrot.lane.b32.xlu1 %v4621_v37, %s3575_s8  ;;  %v2271_v34 = vrot.slane %v5761_v25, 5  ;;  %v2406_v25 = vrot.slane %v2405_v58, 4  ;;  %v2343_v17 = vperm.slane %v2339_v23, %v3652_v10 }
 0x2fe   : > { %v4678_v24 = vsel %vm4588_vm14, %v2270_v56, %v2271_v34  ;;  %v4761_v13 = vsel %vm325_vm0, %v2350_v11, %v2343_v17  ;;  %v2352_v26 = vrot.slane %v2343_v17, 4 }
 0x2ff   : > { %v2366_v59 = vrot.slane %v4678_v24, 4 }
 0x300   : > { %v4770_v53 = vsel %vm325_vm0, %v2349_v3, %v2352_v26 }
 0x301   : > { %2568 = vrot.lane.b32.xlu2 %v4629_v50, %s3575_s8 }
 0x302   : > { %2570 = vrot.lane.b32.xlu0 %v4640_v21, %s3575_s8 }
 0x303   : > { %v1862_v30 = vpop.permute.xlu2 %1861 }
 0x304   : > { %2572 = vrot.lane.b32.xlu1 %v4666_v28, %s3575_s8 }
 0x309   : > { %2574 = vrot.lane.b32.xlu2 %v4678_v24, %s3575_s8 }
 0x30a   : > { %2576 = vrot.lane.b32.xlu0 %v4682_v48, %s3575_s8 }
 0x30b   : > { %v4692_v16 = vpop.permute.xlu2 %1873 }
 0x30c   : > { %2578 = vrot.lane.b32.xlu1 %v4688_v47, %s3575_s8 }
 0x311   : > { %2858 = vrot.lane.b32.xlu2 %v4610_v12, %s3576_s9  ;;  %v4717_v12 = vsel %vm4588_vm14, %v2242_v52, %v2243_v55  ;;  %v5764_v52 = vld [vmem:[#allocation38_spill] sm:$0xff] }
 0x312   : > { %2860 = vrot.lane.b32.xlu0 %v4621_v37, %s3576_s9  ;;  %v2394_v37 = vrot.slane %v4688_v47, 4  ;;  %v2367_v19 = vsel %vm325_vm0, %v2366_v59, %v4717_v12 }
 0x313   : > { %v1886_v43 = vpop.permute.xlu2 %1885  ;;  %v2371_v44 = vperm.slane %v2367_v19, %v3652_v10 }
 0x314   : > { %2862 = vrot.lane.b32.xlu1 %v4629_v50, %s3576_s9  ;;  %v1854_v15 = vpop.permute.xlu0 %1853  ;;  %v3541_v50 = vld [vmem:[%s3632_s25 + $0x14] sm:$0x1] }
 0x315   : > { %v1907_v29 = vsel %vm545_vm5, %v1905_v49, %v1854_v15  ;;  %v2250_v5 = vrot.slane %v3541_v50, 5  ;;  %v4743_v49 = vsel %vm325_vm0, %v2378_v27, %v2371_v44  ;;  %v2380_v56 = vrot.slane %v2371_v44, 4 }
 0x316   : > { %v1858_v2 = vpop.permute.xlu1 %1857 }
 0x317   : > { %v1909_v40 = vsel %vm548_vm6, %v1907_v29, %v1858_v2  ;;  %v2251_v62 = vsel %vm4588_vm14, %v2249_v22, %v2250_v5  ;;  %v4753_v14 = vsel %vm325_vm0, %v2377_v0, %v2380_v56 }
 0x318   : > { %v1911_v34 = vsel %vm551_vm7, %v1909_v40, %v1862_v30  ;;  %v2395_v46 = vsel %vm325_vm0, %v2394_v37, %v2251_v62 }
 0x319   : > { %2864 = vrot.lane.b32.xlu2 %v4640_v21, %s3576_s9  ;;  %v2399_v30 = vperm.slane %v2395_v46, %v3652_v10 }
 0x31a   : > { %2866 = vrot.lane.b32.xlu0 %v4666_v28, %s3576_s9 }
 0x31b   : > { %v1898_v6 = vpop.permute.xlu2 %1897  ;;  %v4766_v0 = vsel %vm325_vm0, %v2406_v25, %v2399_v30  ;;  %v2408_v4 = vrot.slane %v2399_v30, 4 }
 0x31c   : > { %2868 = vrot.lane.b32.xlu1 %v4678_v24, %s3576_s9  ;;  %v1866_v21 = vpop.permute.xlu0 %1865 }
 0x31d   : > { %v1913_v41 = vsel %vm554_vm8, %v1911_v34, %v1866_v21  ;;  %v4773_v36 = vsel %vm325_vm0, %v2405_v58, %v2408_v4 }
 0x31e   : > { %v1870_v28 = vpop.permute.xlu1 %1869 }
 0x31f   : > { %v1915_v59 = vsel %vm557_vm9, %v1913_v41, %v1870_v28 }
 0x320   : > { %v4778_v20 = vsel %vm560_vm10, %v1915_v59, %v4692_v16 }
 0x321   : > { %5763 = vst [vmem:[#allocation40_spill] sm:$0xff] %v4778_v20  ;;  %2870 = vrot.lane.b32.xlu2 %v4682_v48, %s3576_s9  ;;  %v5765_v48 = vld [vmem:[#allocation42_spill] sm:$0xff] }
 0x322   : > { %2872 = vrot.lane.b32.xlu0 %v4688_v47, %s3576_s9  ;;  %v5766_v47 = vld [vmem:[#allocation39_spill] sm:$0xff] }
 0x323   : > { %v1936_v24 = vpop.permute.xlu2 %1935 }
 0x324   : > { %1957 = vrot.lane.b32.xlu1 %v5764_v52, %s3576_s9  ;;  %v1878_v61 = vpop.permute.xlu0 %1877 }
 0x325   : > { %v1920_v55 = vsel %vm541_vm4, %v1825_v60, %v1878_v61 }
 0x326   : > { %v1882_v27 = vpop.permute.xlu1 %1881 }
 0x327   : > { %v1922_v16 = vsel %vm545_vm5, %v1920_v55, %v1882_v27 }
 0x328   : > { %v1924_v3 = vsel %vm548_vm6, %v1922_v16, %v1886_v43 }
 0x329   : > { %1959 = vrot.lane.b32.xlu2 %v5765_v48, %s3576_s9 }
 0x32a   : > { %1961 = vrot.lane.b32.xlu0 %v5766_v47, %s3576_s9 }
 0x32b   : > { %v4796_v42 = vpop.permute.xlu2 %1941 }
 0x32c   : > { %1963 = vrot.lane.b32.xlu1 %v5767_v35, %s3576_s9  ;;  %v1890_v39 = vpop.permute.xlu0 %1889 }
 0x32d   : > { %v1926_v45 = vsel %vm551_vm7, %v1924_v3, %v1890_v39 }
 0x32e   : > { %v1894_v54 = vpop.permute.xlu1 %1893 }
 0x32f   : > { %v1928_v60 = vsel %vm554_vm8, %v1926_v45, %v1894_v54 }
 0x330   : > { %v1930_v8 = vsel %vm557_vm9, %v1928_v60, %v1898_v6 }
 0x331   : > { %2556 = vrot.lane.b32.xlu2 %v4706_v9, %s3575_s8 }
 0x332   : > { %2558 = vrot.lane.b32.xlu0 %v4717_v12, %s3575_s8 }
 0x333   : > { %v4807_v43 = vpop.permute.xlu2 %1947 }
 0x334   : > { %2560 = vrot.lane.b32.xlu1 %v4735_v1, %s3575_s8  ;;  %v1902_v33 = vpop.permute.xlu0 %1901 }
 0x335   : > { %v4812_v57 = vsel %vm560_vm10, %v1930_v8, %v1902_v33 }
 0x336   : > { %5768 = vst [vmem:[#allocation41_spill] sm:$0xff] %v4812_v57  ;;  %v1934_v58 = vpop.permute.xlu1 %1933 }
 0x339   : > { %2562 = vrot.lane.b32.xlu2 %v2251_v62, %s3575_s8 }
 0x33a   : > { %2850 = vrot.lane.b32.xlu0 %v4706_v9, %s3576_s9 }
 0x33b   : > { %v1954_v7 = vpop.permute.xlu2 %1953 }
 0x33c   : > { %v2009_v37 = vrot.slane %v1954_v7, 4  ;;  %2852 = vrot.lane.b32.xlu1 %v4717_v12, %s3576_s9  ;;  %v1938_v15 = vpop.permute.xlu0 %1937 }
 0x33e   : > { %v2010_v19 = vsel %vm325_vm0, %v2009_v37, %v1938_v15  ;;  %v1940_v29 = vpop.permute.xlu1 %1939 }
 0x33f   : > { %v4858_v15 = vperm.slane %v2010_v19, %v3652_v10 }
 0x341   : > { %2854 = vrot.lane.b32.xlu2 %v4735_v1, %s3576_s9 }
 0x342   : > { %2856 = vrot.lane.b32.xlu0 %v2251_v62, %s3576_s9 }
 0x343   : > { %v4823_v38 = vpop.permute.xlu2 %2582 }
 0x344   : > { %v1944_v44 = vpop.permute.xlu0 %1943 }
 0x346   : > { %v4825_v11 = vpop.permute.xlu1 %1945 }
 0x34b   : > { %v4827_v9 = vpop.permute.xlu2 %2874 }
 0x34c   : > { %v1950_v2 = vpop.permute.xlu0 %1949 }
 0x34d   : > { %v1981_v22 = vrot.slane %v1950_v2, 4  ;;  %v4870_v2 = vperm.slane %v4761_v13, %v3666_v18  ;;  %v2666_v13 = vrot.slane %v4823_v38, 4 }
 0x34e   : > { %v1952_v50 = vpop.permute.xlu1 %1951 }
 0x34f   : > { %v1982_v12 = vsel %vm325_vm0, %v1981_v22, %v1934_v58  ;;  %v2037_v5 = vrot.slane %v1952_v50, 4  ;;  %5770 = vst [vmem:[#allocation42_spill] sm:$0xff] %v4870_v2  ;;  %v4874_v22 = vperm.slane %v4766_v0, %v3666_v18 }
 0x350   : > { %v4877_v19 = vperm.slane %v1982_v12, %v3652_v10 }
 0x351   : > { %v2038_v40 = vsel %vm325_vm0, %v2037_v5, %v1936_v24 }
 0x352   : > { %v2042_v27 = vperm.slane %v2038_v40, %v3652_v10 }
 0x353   : > { %v4831_v56 = vpop.permute.xlu2 %2880 }
 0x354   : > { %v1956_v1 = vpop.permute.xlu0 %1955  ;;  %v2051_v39 = vrot.slane %v2042_v27, 4 }
 0x355   : > { %v2065_v25 = vrot.slane %v1956_v1, 4 }
 0x356   : > { %v2581_v34 = vpop.permute.xlu1 %2580 }
 0x357   : > { %v2066_v23 = vsel %vm325_vm0, %v2065_v25, %v1940_v29  ;;  %v4862_v29 = vperm.slane %v4730_v51, %v3666_v18  ;;  %v2610_v50 = vrot.slane %v2581_v34, 4 }
 0x358   : > { %v4887_v34 = vperm.slane %v2066_v23, %v3652_v10 }
 0x359   : > { %5769 = vst [vmem:[#allocation38_spill] sm:$0xff] %v4862_v29 }
 0x35b   : > { %v2569_v62 = vpop.permute.xlu2 %2568 }
 0x35c   : > { %v2585_v17 = vpop.permute.xlu0 %2584 }
 0x35d   : > { %v2638_v37 = vrot.slane %v2585_v17, 4  ;;  %v2904_v17 = vrot.slane %v4827_v9, 4  ;;  %v1995_v9 = vrot.slane %v4877_v19, 4 }
 0x35e   : > { %v2587_v46 = vpop.permute.xlu1 %2586 }
 0x35f   : > { %v2639_v51 = vsel %vm325_vm0, %v2638_v37, %v2569_v62  ;;  %v2694_v40 = vrot.slane %v2587_v46, 4 }
 0x363   : > { %v4834_v30 = vpop.permute.xlu2 %2574 }
 0x364   : > { %v4836_v6 = vpop.permute.xlu0 %2876 }
 0x366   : > { %v4838_v26 = vpop.permute.xlu1 %2878 }
 0x36b   : > { %v2859_v21 = vpop.permute.xlu2 %2858 }
 0x36c   : > { %v2565_v4 = vpop.permute.xlu0 %2564  ;;  %v2905_v38 = vsel %vm325_vm0, %v2904_v17, %v2859_v21  ;;  %v2079_v21 = vrot.slane %v4887_v34, 4 }
 0x36d   : > { %v2611_v0 = vsel %vm325_vm0, %v2610_v50, %v2565_v4 }
 0x36e   : > { %v2567_v41 = vpop.permute.xlu1 %2566  ;;  %v2615_v4 = vperm.slane %v2611_v0, %v3652_v10 }
 0x36f   : > { %v2667_v23 = vsel %vm325_vm0, %v2666_v13, %v2567_v41 }
 0x370   : > { %v4914_v37 = vperm.slane %v2667_v23, %v3652_v10 }
 0x373   : > { %v2865_v28 = vpop.permute.xlu2 %2864 }
 0x374   : > { %v2571_v59 = vpop.permute.xlu0 %2570 }
 0x375   : > { %v2695_v12 = vsel %vm325_vm0, %v2694_v40, %v2571_v59 }
 0x376   : > { %v2573_v24 = vpop.permute.xlu1 %2572 }
 0x377   : > { %v2604_v1 = vrot.slane %v2573_v24, 4  ;;  %v2988_v24 = vrot.slane %v4831_v56, 4 }
 0x37b   : > { %v4840_v52 = vpop.permute.xlu2 %2870 }
 0x37c   : > { %v4842_v61 = vpop.permute.xlu0 %2576 }
 0x37e   : > { %v2579_v55 = vpop.permute.xlu1 %2578 }
 0x383   : > { %v1960_v16 = vpop.permute.xlu2 %1959 }
 0x384   : > { %v2043_v3 = vrot.slane %v1960_v16, 4  ;;  %v2861_v48 = vpop.permute.xlu0 %2860  ;;  %v4893_v16 = vperm.slane %v2639_v51, %v3652_v10 }
 0x386   : > { %v2044_v47 = vsel %vm325_vm0, %v2043_v3, %v1944_v44  ;;  %v2863_v35 = vpop.permute.xlu1 %2862  ;;  %v4866_v44 = vperm.slane %v4743_v49, %v3666_v18  ;;  %v2023_v49 = vrot.slane %v4858_v15, 4 }
 0x387   : > { %v2048_v45 = vperm.slane %v2044_v47, %v3652_v10  ;;  %v2699_v47 = vperm.slane %v2695_v12, %v3652_v10  ;;  %v2660_v12 = vrot.slane %v4834_v30, 4 }
 0x389   : > { %v2049_v54 = vrot.slane %v2048_v45, 4  ;;  %v4848_v60 = vsel %vm325_vm0, %v2048_v45, %v2051_v39  ;;  %v2960_v45 = vrot.slane %v4836_v6, 4 }
 0x38b   : > { %v4851_v8 = vsel %vm325_vm0, %v2049_v54, %v2042_v27  ;;  %v2557_v33 = vpop.permute.xlu2 %2556  ;;  %v2688_v27 = vrot.slane %v2579_v55, 4  ;;  %v2989_v55 = vsel %vm325_vm0, %v2988_v24, %v2865_v28  ;;  %v4908_v54 = vperm.slane %v2905_v38, %v3652_v10 }
 0x38c   : > { %v4853_v58 = vpop.permute.xlu0 %2866  ;;  %v2605_v62 = vsel %vm325_vm0, %v2604_v1, %v2557_v33  ;;  %v2644_v33 = vrot.slane %v4893_v16, 4  ;;  %v2932_v28 = vrot.slane %v4838_v26, 4  ;;  %v2961_v6 = vsel %vm325_vm0, %v2960_v45, %v2861_v48 }
 0x38d   : > { %v2609_v56 = vperm.slane %v2605_v62, %v3652_v10  ;;  %v2700_v1 = vrot.slane %v2699_v47, 4  ;;  %v2926_v62 = vrot.slane %v4840_v52, 4  ;;  %v2672_v48 = vrot.slane %v4914_v37, 4 }
 0x38e   : > { %v4855_v7 = vpop.permute.xlu1 %2868  ;;  %v2933_v13 = vsel %vm325_vm0, %v2932_v28, %v2863_v35  ;;  %v4931_v38 = vperm.slane %v2961_v6, %v3652_v10  ;;  %v2632_v6 = vrot.slane %v4842_v61, 4 }
 0x38f   : > { %v2618_v17 = vrot.slane %v2609_v56, 4 }
 0x393   : > { %v2563_v5 = vpop.permute.xlu2 %2562 }
 0x394   : > { %v4880_v25 = vpop.permute.xlu0 %2872  ;;  %v2689_v59 = vsel %vm325_vm0, %v2688_v27, %v2563_v5  ;;  %v2616_v5 = vrot.slane %v2615_v4, 4  ;;  %v2910_v27 = vrot.slane %v4908_v54, 4 }
 0x395   : > { %v2693_v50 = vperm.slane %v2689_v59, %v3652_v10  ;;  %v2425_v59 = vshrl.u32 %v4862_v29, 16 }
 0x396   : > { %v1958_v46 = vpop.permute.xlu1 %1957 }
 0x397   : > { %v1987_v3 = vrot.slane %v1958_v46, 4  ;;  %v2617_v46 = vsel %vm325_vm0, %v2616_v5, %v2609_v56 }
 0x398   : > { %v4944_v56 = vperm.slane %v2617_v46, %v3666_v18 }
 0x399   : > { %v1988_v39 = vsel %vm325_vm0, %v1987_v3, %v4796_v42  ;;  %v4918_v42 = vperm.slane %v2989_v55, %v3652_v10  ;;  %v2701_v3 = vsel %vm325_vm0, %v2700_v1, %v2693_v50  ;;  %v2619_v55 = vsel %vm325_vm0, %v2615_v4, %v2618_v17 }
 0x39a   : > { %v1992_v41 = vperm.slane %v1988_v39, %v3652_v10  ;;  %v2702_v39 = vrot.slane %v2693_v50, 4  ;;  %v4947_v45 = vperm.slane %v2701_v3, %v3666_v18  ;;  %v2449_v3 = vshrl.u32 %v4866_v44, 16 }
 0x39b   : > { %v2855_v26 = vpop.permute.xlu2 %2854 }
 0x39c   : > { %v4922_v51 = vsel %vm325_vm0, %v1992_v41, %v1995_v9  ;;  %v1962_v40 = vpop.permute.xlu0 %1961  ;;  %v2937_v9 = vperm.slane %v2933_v13, %v3652_v10  ;;  %v2927_v30 = vsel %vm325_vm0, %v2926_v62, %v2855_v26  ;;  %v4962_v13 = vperm.slane %v2619_v55, %v3666_v18 }
 0x39d   : > { %v2015_v0 = vrot.slane %v1962_v40, 4  ;;  %v2966_v40 = vrot.slane %v4931_v38, 4  ;;  %v2931_v4 = vperm.slane %v2927_v30, %v3652_v10 }
 0x39e   : > { %v1964_v24 = vpop.permute.xlu1 %1963  ;;  %v2938_v50 = vrot.slane %v2937_v9, 4 }
 0x39f   : > { %v2016_v35 = vsel %vm325_vm0, %v2015_v0, %v4825_v11  ;;  %v2071_v52 = vrot.slane %v1964_v24, 4  ;;  %v1993_v11 = vrot.slane %v1992_v41, 4  ;;  %v2898_v41 = vrot.slane %v4853_v58, 4 }
 0x3a0   : > { %v4939_v23 = vperm.slane %v2016_v35, %v3652_v10  ;;  %v2628_v0 = vrot.slane %v4944_v56, 4  ;;  %v2712_v24 = vrot.slane %v4947_v45, 4  ;;  %v2940_v30 = vrot.slane %v2931_v4, 4 }
 0x3a1   : > { %v2072_v5 = vsel %vm325_vm0, %v2071_v52, %v4807_v43  ;;  %v2703_v43 = vsel %vm325_vm0, %v2699_v47, %v2702_v39  ;;  %v1994_v46 = vsel %vm325_vm0, %v1993_v11, %v4877_v19  ;;  %v2939_v47 = vsel %vm325_vm0, %v2938_v50, %v2931_v4 }
 0x3a2   : > { %v4951_v28 = vsel %vm325_vm0, %v4939_v23, %v2023_v49  ;;  %v4959_v1 = vperm.slane %v2072_v5, %v3652_v10  ;;  %v2954_v49 = vrot.slane %v4855_v7, 4  ;;  %v4985_v35 = vperm.slane %v2703_v43, %v3666_v18 }
 0x3a3   : > { %v2744_v39 = vshrl.u32 %v4947_v45, 16  ;;  %v2719_v11 = vshrl.u32 %v4944_v56, 16  ;;  %v4998_v5 = vsel %vm325_vm0, 0, %v2628_v0  ;;  %v5004_v4 = vperm.slane %v2939_v47, %v3666_v18 }
 0x3a4   : > { %v2559_v17 = vpop.permute.xlu0 %2558  ;;  %v4969_v61 = vsel %vm325_vm0, %v4959_v1, %v2079_v21  ;;  %v5011_v50 = vsel %vm325_vm0, 0, %v2712_v24 }
 0x3a5   : > { %v2661_v26 = vsel %vm325_vm0, %v2660_v12, %v2559_v17  ;;  %v2450_v12 = vshrl.u32 %v4874_v22, 16 }
 0x3a6   : > { %v4977_v58 = vperm.slane %v2661_v26, %v3652_v10  ;;  %v2561_v7 = vpop.permute.xlu1 %2560 }
 0x3a7   : > { %v2633_v21 = vsel %vm325_vm0, %v2632_v6, %v2561_v7  ;;  %v5001_v6 = vperm.slane %v1994_v46, %v3666_v18  ;;  %v5018_v0 = vpack.i.b16 %v2450_v12, %v2449_v3  ;;  %v2941_v46 = vsel %vm325_vm0, %v2937_v9, %v2940_v30 }
 0x3a8   : > { %v2673_v19 = vsel %vm325_vm0, %v2672_v48, %v4977_v58  ;;  %v4990_v52 = vperm.slane %v2633_v21, %v3652_v10  ;;  %v2021_v7 = vrot.slane %v4939_v23, 4  ;;  %v2426_v12 = vshrl.u32 %v4870_v2, 16 }
 0x3a9   : > { %v4993_v55 = vperm.slane %v2673_v19, %v3666_v18  ;;  %5771 = vst [vmem:[#allocation39_spill] sm:$0xff] %v5001_v6 }
 0x3aa   : > { %v2645_v48 = vsel %vm325_vm0, %v2644_v33, %v4990_v52  ;;  %v2646_v20 = vrot.slane %v4990_v52, 4 }
 0x3ab   : > { %v5014_v17 = vperm.slane %v2645_v48, %v3666_v18  ;;  %v2743_v43 = vshrl.u32 %v4993_v55, 16  ;;  %v2684_v26 = vrot.slane %v4993_v55, 4 }
 0x3ac   : > { %v2851_v47 = vpop.permute.xlu0 %2850 }
 0x3ad   : > { %v2899_v24 = vsel %vm325_vm0, %v2898_v41, %v2851_v47  ;;  %v2745_v19 = vpack.i.b16 %v2744_v39, %v2743_v43  ;;  %v2720_v48 = vshrl.u32 %v5014_v17, 16  ;;  %v2656_v9 = vrot.slane %v5014_v17, 4 }
 0x3ae   : > { %v5028_v62 = vperm.slane %v2899_v24, %v3652_v10  ;;  %v2853_v3 = vpop.permute.xlu1 %2852  ;;  %v2685_v23 = vsel %vm325_vm0, 0, %v2684_v26  ;;  %v2950_v26 = vrot.slane %v5004_v4, 4 }
 0x3af   : > { %v2955_v30 = vsel %vm325_vm0, %v2954_v49, %v2853_v3  ;;  %v2792_v33 = vunpack.c.l.b16 %v2745_v19  ;;  %v2721_v21 = vpack.i.b16 %v2720_v48, %v2719_v11  ;;  %v2748_v41 = vpack.i.b16 %v5011_v50, %v2685_v23 }
 0x3b0   : > { %v2911_v39 = vsel %vm325_vm0, %v2910_v27, %v5028_v62  ;;  %v5040_v43 = vperm.slane %v2955_v30, %v3652_v10  ;;  %v5043_v47 = vsel %vm325_vm0, 0, %v2656_v9  ;;  %v5052_v48 = vperm.slane %v2941_v46, %v3666_v18 }
 0x3b1   : > { %v5047_v24 = vperm.slane %v2911_v39, %v3666_v18  ;;  %v2793_v49 = vpack.c.b16 %v2792_v33, %v2792_v33  ;;  %v2764_v11 = vunpack.c.l.b16 %v2721_v21  ;;  %v2724_v19 = vpack.i.b16 %v5043_v47, %v4998_v5 }
 0x3b2   : > { %v2674_v27 = vrot.slane %v4977_v58, 4  ;;  %v3014_v3 = vshrl.u32 %v5004_v4, 16  ;;  %v2498_v9 = vunpack.c.l.b16 %v5018_v0  ;;  %v2022_v30 = vsel %vm325_vm0, %v2021_v7, %v4858_v15 }
 0x3b3   : > { %2794 = vrot.lane.b32.xlu2 %v2793_v49, %s3570_s28  ;;  %v2765_v39 = vpack.c.b16 %v2764_v11, %v2764_v11  ;;  %v2768_v33 = vunpack.c.l.b16 %v2724_v19  ;;  %v2427_v21 = vpack.i.b16 %v2426_v12, %v2425_v59  ;;  %v2967_v46 = vsel %vm325_vm0, %v2966_v40, %v5040_v43 }
 0x3b4   : > { %v2857_v32 = vpop.permute.xlu0 %2856  ;;  %v3013_v58 = vshrl.u32 %v5047_v24, 16  ;;  %v2922_v31 = vrot.slane %v5047_v24, 4  ;;  %v2750_v0 = vshrl.u32 %v5011_v50, 16  ;;  %v5772_v15 = vrot.slane %v4880_v25, 4 }
 0x3b5   : > { %2766 = vrot.lane.b32.xlu1 %v2765_v39, %s3570_s28  ;;  %v2769_v59 = vpack.c.b16 %v2768_v33, %v2768_v33  ;;  %v5073_v12 = vsel %vm325_vm0, 0, %v2950_v26  ;;  %v2675_v40 = vsel %vm325_vm0, %v4914_v37, %v2674_v27  ;;  %v5080_v52 = vperm.slane %v2967_v46, %v3666_v18 }
 0x3b6   : > { %v2983_v7 = vsel %vm325_vm0, %v5772_v15, %v2857_v32  ;;  %v3015_v11 = vpack.i.b16 %v3014_v3, %v3013_v58  ;;  %v2923_v50 = vsel %vm325_vm0, 0, %v2922_v31  ;;  %v2796_v32 = vunpack.c.l.b16 %v2748_v41 }
 0x3b7   : > { %v2987_v49 = vperm.slane %v2983_v7, %v3652_v10  ;;  %2770 = vrot.lane.b32.xlu0 %v2769_v59, %s3571_s29  ;;  %v3018_v25 = vpack.i.b16 %v5073_v12, %v2923_v50  ;;  %v2749_v19 = vshrl.u32 %v2685_v23, 16  ;;  %v5085_v26 = vperm.slane %v2022_v30, %v3666_v18 }
 0x3b8   : > { %v5774_v39 = vrot.slane %v4918_v42, 4  ;;  %v3058_v10 = vunpack.c.l.b16 %v3015_v11  ;;  %v2470_v27 = vunpack.c.l.b16 %v2427_v21  ;;  %v2077_v31 = vrot.slane %v4959_v1, 4 }
 0x3b9   : > { %5773 = vst [vmem:[#allocation43_spill] sm:$0xff] %v5085_v26  ;;  %v2647_v3 = vsel %vm325_vm0, %v4893_v16, %v2646_v20  ;;  %v5096_v41 = vpack.i.b16 %v2750_v0, %v2749_v19  ;;  %v5099_v23 = vperm.slane %v2675_v40, %v3666_v18  ;;  %v2912_v30 = vrot.slane %v5028_v62, 4 }
 0x3ba   : > { %v2995_v37 = vsel %vm325_vm0, %v5774_v39, %v2987_v49  ;;  %v3059_v46 = vpack.c.b16 %v3058_v10, %v3058_v10  ;;  %v2499_v58 = vpack.c.b16 %v2498_v9, %v2498_v9  ;;  %v2968_v15 = vrot.slane %v5040_v43, 4 }
 0x3bb   : > { %v5094_v33 = vperm.slane %v2995_v37, %v3666_v18  ;;  %v2797_v21 = vpack.c.b16 %v2796_v32, %v2796_v32  ;;  %v3037_v7 = vshrl.u32 %v5080_v52, 16  ;;  %v5106_v20 = vperm.slane %v2647_v3, %v3666_v18 }
 0x3bc   : > { %3060 = vrot.lane.b32.xlu2 %v3059_v46, %s3570_s28  ;;  %v2471_v16 = vpack.c.b16 %v2470_v27, %v2470_v27  ;;  %v2978_v0 = vrot.slane %v5080_v52, 4  ;;  %v2996_v62 = vrot.slane %v2987_v49, 4  ;;  %v2726_v43 = vshrl.u32 %v5043_v47, 16 }
 0x3bd   : > { %v3038_v59 = vshrl.u32 %v5094_v33, 16  ;;  %v3006_v40 = vrot.slane %v5094_v33, 4  ;;  %2798 = vrot.lane.b32.xlu1 %v2797_v21, %s3571_s29  ;;  %v2096_v11 = vshrl.u32 %v5001_v6, 16  ;;  %v2390_v32 = vrot.slane %v4866_v44, 4 }
 0x3be   : > { %v2979_v19 = vsel %vm325_vm0, 0, %v2978_v0  ;;  %v3019_v37 = vshrl.u32 %v2923_v50, 16  ;;  %v2913_v10 = vsel %vm325_vm0, %v4908_v54, %v2912_v30  ;;  %v2969_v49 = vsel %vm325_vm0, %v4931_v38, %v2968_v15 }
 0x3bf   : > { %v3039_v9 = vpack.i.b16 %v3038_v59, %v3037_v7  ;;  %v3007_v39 = vsel %vm325_vm0, 0, %v3006_v40  ;;  %v2418_v46 = vrot.slane %v4874_v22, 4  ;;  %v3020_v47 = vshrl.u32 %v5073_v12, 16 }
 0x3c0   : > { %v3042_v3 = vpack.i.b16 %v3007_v39, %v2979_v19  ;;  %v2730_v21 = vpack.i.b16 %v5106_v20, %v4962_v13  ;;  %v2997_v50 = vsel %vm325_vm0, %v4918_v42, %v2996_v62  ;;  %v5775_v54 = vshrl.u32 %v4998_v5, 16 }
 0x3c1   : > { %v3086_v27 = vunpack.c.l.b16 %v3039_v9  ;;  %v2097_v38 = vshrl.u32 %v5085_v26, 16  ;;  %v5133_v15 = vperm.slane %v2913_v10, %v3666_v18  ;;  %v2334_v12 = vrot.slane %v4862_v29, 4 }
 0x3c2   : > { %v2727_v30 = vpack.i.b16 %v2726_v43, %v5775_v54  ;;  %v2362_v0 = vrot.slane %v4870_v2, 4  ;;  %v5137_v40 = vpack.i.b16 %v3020_v47, %v3019_v37  ;;  %v5140_v9 = vperm.slane %v2969_v49, %v3666_v18 }
 0x3c3   : > { %v3087_v59 = vpack.c.b16 %v3086_v27, %v3086_v27  ;;  %v5143_v42 = vpack.i.b16 %v2097_v38, %v2096_v11  ;;  %v2756_v5 = vshrl.u32 %v4985_v35, 16  ;;  %v2005_v62 = vrot.slane %v5001_v6, 4 }
 0x3c4   : > { %v5148_v43 = vperm.slane %v2997_v50, %v3666_v18  ;;  %2500 = vrot.lane.b32.xlu2 %v2499_v58, %s3570_s28  ;;  %v3062_v10 = vunpack.c.l.b16 %v3018_v25  ;;  %v5152_v37 = vsel %vm325_vm0, 0, %v2390_v32  ;;  %v5155_v49 = vsel %vm325_vm0, 0, %v2418_v46 }
 0x3c5   : > { %3088 = vrot.lane.b32.xlu0 %v3087_v59, %s3570_s28  ;;  %2472 = vrot.lane.b32.xlu1 %v2471_v16, %s3570_s28  ;;  %v2772_v11 = vunpack.c.l.b16 %v2727_v30  ;;  %v3043_v27 = vshrl.u32 %v2979_v19, 16  ;;  %v3044_v47 = vshrl.u32 %v3007_v39, 16  ;;  %v2732_v59 = vshrl.u32 %v5106_v20, 16 }
 0x3c6   : > { %v5160_v54 = vsel %vm325_vm0, 0, %v2334_v12  ;;  %v5163_v50 = vsel %vm325_vm0, 0, %v2362_v0  ;;  %v2755_v25 = vshrl.u32 %v5099_v23, 16  ;;  %v2800_v32 = vunpack.c.l.b16 %v5096_v41 }
 0x3c7   : > { %v5169_v46 = vpack.i.b16 %v3044_v47, %v3043_v27  ;;  %v5776_v16 = vshrl.u32 %v4962_v13, 16  ;;  %v2454_v39 = vpack.i.b16 %v5155_v49, %v5152_v37  ;;  %v2033_v12 = vrot.slane %v5085_v26, 4 }
 0x3c8   : > { %v5179_v38 = vpack.i.b16 %v2756_v5, %v2755_v25  ;;  %v2078_v41 = vsel %vm325_vm0, %v2077_v31, %v4887_v34  ;;  %v2773_v0 = vpack.c.b16 %v2772_v11, %v2772_v11  ;;  %v2430_v27 = vpack.i.b16 %v5163_v50, %v5160_v54 }
 0x3c9   : > { %v5173_v19 = vpack.i.b16 %v2732_v59, %v5776_v16  ;;  %v2714_v47 = vrot.slane %v4985_v35, 4  ;;  %v3063_v59 = vpack.c.b16 %v3062_v10, %v3062_v10  ;;  %v5190_v16 = vsel %vm325_vm0, 0, %v2005_v62 }
 0x3ca   : > { %v5193_v5 = vsel %vm325_vm0, 0, %v2033_v12  ;;  %v2686_v25 = vrot.slane %v5099_v23, 4  ;;  %v5198_v1 = vperm.slane %v4851_v8, %v3666_v18  ;;  %v2801_v34 = vpack.c.b16 %v2800_v32, %v2800_v32 }
 0x3cb   : > { %v5204_v10 = vperm.slane %v2078_v41, %v3666_v18  ;;  %v2502_v62 = vunpack.c.l.b16 %v2454_v39  ;;  %v3090_v11 = vunpack.c.l.b16 %v3042_v3  ;;  %v2474_v12 = vunpack.c.l.b16 %v2430_v27 }
 0x3cc   : > { %3064 = vrot.lane.b32.xlu2 %v3063_v59, %s3571_s29  ;;  %v5209_v58 = vsel %vm325_vm0, 0, %v2686_v25  ;;  %v5212_v8 = vsel %vm325_vm0, 0, %v2714_v47  ;;  %v2630_v32 = vrot.slane %v4962_v13, 4  ;;  %v2658_v39 = vrot.slane %v5106_v20, 4 }
 0x3cd   : > { %2774 = vrot.lane.b32.xlu0 %v2773_v0, %s3574_s7  ;;  %2802 = vrot.lane.b32.xlu1 %v2801_v34, %s3574_s7  ;;  %v2120_v0 = vshrl.u32 %v5198_v1, 16  ;;  %v2503_v31 = vpack.c.b16 %v2502_v62, %v2502_v62  ;;  %v3091_v59 = vpack.c.b16 %v3090_v11, %v3090_v11  ;;  %v2121_v3 = vshrl.u32 %v5204_v10, 16 }
 0x3ce   : > { %v2475_v27 = vpack.c.b16 %v2474_v12, %v2474_v12  ;;  %v2102_v25 = vshrl.u32 %v5190_v16, 16  ;;  %v2103_v34 = vshrl.u32 %v5193_v5, 16  ;;  %v3025_v47 = vshrl.u32 %v5133_v15, 16 }
 0x3cf   : > { %v2776_v30 = vunpack.c.l.b16 %v2730_v21  ;;  %v5227_v7 = vsel %vm325_vm0, 0, %v2630_v32  ;;  %v5230_v62 = vsel %vm325_vm0, 0, %v2658_v39  ;;  %v3026_v11 = vshrl.u32 %v5052_v48, 16 }
 0x3d0   : > { %v5777_v12 = vpack.i.b16 %v4985_v35, %v5099_v23  ;;  %v5239_v2 = vpack.i.b16 %v2103_v34, %v2102_v25  ;;  %v5245_v20 = vperm.slane %v4848_v60, %v3666_v18  ;;  %v3066_v21 = vunpack.c.l.b16 %v5137_v40 }
 0x3d1   : > { %v2122_v32 = vpack.i.b16 %v2121_v3, %v2120_v0  ;;  %v5253_v35 = vperm.slane %v4922_v51, %v3666_v18  ;;  %v5257_v23 = vperm.slane %v4951_v28, %v3666_v18  ;;  %v5262_v60 = vperm.slane %v4740_v63, %v3666_v18 }
 0x3d2   : > { %v2804_v41 = vunpack.c.l.b16 %v5777_v12  ;;  %v5266_v40 = vperm.slane %v4770_v53, %v3666_v18  ;;  %v3049_v51 = vshrl.u32 %v5140_v9, 16  ;;  %v3050_v0 = vshrl.u32 %v5148_v43, 16 }
 0x3d3   : > { %v2777_v3 = vpack.c.b16 %v2776_v30, %v2776_v30  ;;  %v3067_v53 = vpack.c.b16 %v3066_v21, %v3066_v21  ;;  %v2169_v25 = vunpack.c.l.b16 %v2122_v32  ;;  %v2737_v12 = vshrl.u32 %v5227_v7, 16 }
 0x3d4   : > { %2504 = vrot.lane.b32.xlu2 %v2503_v31, %s3571_s29  ;;  %v5270_v31 = vperm.slane %v4969_v61, %v3666_v18  ;;  %v2805_v39 = vpack.c.b16 %v2804_v41, %v2804_v41  ;;  %v5279_v34 = vpack.i.b16 %v3050_v0, %v3049_v51  ;;  %v2924_v61 = vrot.slane %v5133_v15, 4 }
 0x3d5   : > { %3092 = vrot.lane.b32.xlu0 %v3091_v59, %s3571_s29  ;;  %v5249_v59 = vpack.i.b16 %v3026_v11, %v3025_v47  ;;  %2476 = vrot.lane.b32.xlu1 %v2475_v27, %s3571_s29  ;;  %v2952_v27 = vrot.slane %v5052_v48, 4  ;;  %v3094_v47 = vunpack.c.l.b16 %v5169_v46  ;;  %v2431_v11 = vshrl.u32 %v5160_v54, 16 }
 0x3d6   : > { %v2738_v30 = vshrl.u32 %v5230_v62, 16  ;;  %v2432_v41 = vshrl.u32 %v5163_v50, 16  ;;  %v5288_v28 = vsel %vm325_vm0, 0, %v2924_v61  ;;  %v2761_v32 = vshrl.u32 %v5209_v58, 16 }
 0x3d7   : > { %v5291_v21 = vsel %vm325_vm0, 0, %v2952_v27  ;;  %v2455_v46 = vshrl.u32 %v5152_v37, 16  ;;  %v2762_v0 = vshrl.u32 %v5212_v8, 16  ;;  %v2456_v50 = vshrl.u32 %v5155_v49, 16 }
 0x3d8   : > { %v5298_v51 = vpack.i.b16 %v2738_v30, %v2737_v12  ;;  %v2980_v61 = vrot.slane %v5140_v9, 4  ;;  %v3031_v12 = vshrl.u32 %v5288_v28, 16  ;;  %v2170_v30 = vpack.c.b16 %v2169_v25, %v2169_v25 }
 0x3d9   : > { %v5309_v37 = vpack.i.b16 %v2762_v0, %v2761_v32  ;;  %v2141_v54 = vunpack.c.l.b16 %v5143_v42  ;;  %v3032_v49 = vshrl.u32 %v5291_v21, 16  ;;  %v3095_v13 = vpack.c.b16 %v3094_v47, %v3094_v47 }
 0x3da   : > { %v2457_v57 = vpack.i.b16 %v2456_v50, %v2455_v46  ;;  %v5315_v27 = vsel %vm325_vm0, 0, %v2980_v61  ;;  %v3008_v63 = vrot.slane %v5148_v43, 4  ;;  %v2133_v32 = vshrl.u32 %v5270_v31, 16 }
 0x3db   : > { %v2108_v25 = vshrl.u32 %v5253_v35, 16  ;;  %v2007_v47 = vrot.slane %v5253_v35, 4  ;;  %v2142_v46 = vpack.c.b16 %v2141_v54, %v2141_v54 }
 0x3dc   : > { %3068 = vrot.lane.b32.xlu2 %v3067_v53, %s3574_s7  ;;  %v2433_v53 = vpack.i.b16 %v2432_v41, %v2431_v11  ;;  %v5324_v42 = vsel %vm325_vm0, 0, %v3008_v63  ;;  %v2109_v11 = vshrl.u32 %v5257_v23, 16  ;;  %v2035_v41 = vrot.slane %v5257_v23, 4 }
 0x3dd   : > { %2778 = vrot.lane.b32.xlu0 %v2777_v3, %s3568_s26  ;;  %2806 = vrot.lane.b32.xlu1 %v2805_v39, %s3568_s26  ;;  %v5318_v3 = vpack.i.b16 %v3032_v49, %v3031_v12  ;;  %v2132_v39 = vshrl.u32 %v5245_v20, 16  ;;  %v2506_v12 = vunpack.c.l.b16 %v2457_v57  ;;  %v5337_v63 = vperm.slane %v4753_v14, %v3666_v18 }
 0x3de   : > { %v2478_v0 = vunpack.c.l.b16 %v2433_v53  ;;  %v5341_v49 = vperm.slane %v4773_v36, %v3666_v18  ;;  %v5343_v29 = vpack.i.b16 %v2109_v11, %v2108_v25  ;;  %v5350_v54 = vsel %vm325_vm0, 0, %v2035_v41 }
 0x3df   : > { %v5332_v61 = vpack.i.b16 %v2133_v32, %v2132_v39  ;;  %v2780_v57 = vunpack.c.l.b16 %v5173_v19  ;;  %v2063_v18 = vrot.slane %v5245_v20, 4  ;;  %v2091_v53 = vrot.slane %v5270_v31, 4 }
 0x3e0   : > { %v2460_v14 = vpack.i.b16 %v5341_v49, %v5337_v63  ;;  %v2479_v36 = vpack.c.b16 %v2478_v0, %v2478_v0  ;;  %v2507_v39 = vpack.c.b16 %v2506_v12, %v2506_v12  ;;  %v2115_v11 = vshrl.u32 %v5350_v54, 16 }
 0x3e1   : > { %v5360_v32 = vsel %vm325_vm0, 0, %v2063_v18  ;;  %v5363_v25 = vsel %vm325_vm0, 0, %v2091_v53  ;;  %v2781_v41 = vpack.c.b16 %v2780_v57, %v2780_v57  ;;  %v2089_v53 = vrot.slane %v5204_v10, 4 }
 0x3e2   : > { %v2139_v0 = vshrl.u32 %v5363_v25, 16  ;;  %v2808_v57 = vunpack.c.l.b16 %v5179_v38  ;;  %v2061_v12 = vrot.slane %v5198_v1, 4  ;;  %v2510_v26 = vunpack.c.l.b16 %v2460_v14 }
 0x3e3   : > { %v3074_v14 = vunpack.c.l.b16 %v5249_v59 }
 0x3e4   : > { %2171 = vrot.lane.b32.xlu2 %v2170_v30, %s3570_s28 }
 0x3e5   : > { %3096 = vrot.lane.b32.xlu0 %v3095_v13, %s3574_s7  ;;  %2143 = vrot.lane.b32.xlu1 %v2142_v46, %s3570_s28  ;;  %v5347_v13 = vsel %vm325_vm0, 0, %v2007_v47  ;;  %v2138_v46 = vshrl.u32 %v5360_v32, 16  ;;  %v5778_v47 = vpack.i.b16 %v5148_v43, %v5140_v9  ;;  %v2062_v9 = vsel %vm325_vm0, 0, %v2061_v12 }
 0x3e6   : > { %v2114_v19 = vshrl.u32 %v5347_v13, 16 }
 0x3e7   : > { %v5378_v30 = vpack.i.b16 %v2139_v0, %v2138_v46  ;;  %v3098_v50 = vunpack.c.l.b16 %v5778_v47  ;;  %v2809_v0 = vpack.c.b16 %v2808_v57, %v2808_v57  ;;  %v3056_v46 = vshrl.u32 %v5324_v42, 16 }
 0x3e8   : > { %v5374_v18 = vpack.i.b16 %v2115_v11, %v2114_v19  ;;  %v2462_v19 = vshrl.u32 %v5341_v49, 16  ;;  %v5779_v11 = vpack.i.b16 %v5052_v48, %v5133_v15  ;;  %v5780_v48 = vpack.i.b16 %v5266_v40, %v5262_v60 }
 0x3e9   : > { %v3099_v6 = vpack.c.b16 %v3098_v50, %v3098_v50  ;;  %v5781_v50 = vpack.i.b16 %v5193_v5, %v5190_v16  ;;  %v5782_v16 = vpack.i.b16 %v5212_v8, %v5209_v58  ;;  %v3102_v58 = vunpack.c.l.b16 %v5279_v34 }
 0x3ea   : > { %v2482_v15 = vunpack.c.l.b16 %v5780_v48  ;;  %v3075_v8 = vpack.c.b16 %v3074_v14, %v3074_v14  ;;  %v5784_v34 = vpack.i.b16 %v4947_v45, %v4993_v55  ;;  %v2788_v55 = vunpack.c.l.b16 %v5298_v51 }
 0x3eb   : > { %v2145_v12 = vunpack.c.l.b16 %v5781_v50  ;;  %v2812_v5 = vunpack.c.l.b16 %v5782_v16  ;;  %v2816_v14 = vunpack.c.l.b16 %v5309_v37 }
 0x3ec   : > { %2782 = vrot.lane.b32.xlu2 %v2781_v41, %s3569_s27  ;;  %v3070_v41 = vunpack.c.l.b16 %v5779_v11  ;;  %v3055_v11 = vshrl.u32 %v5315_v27, 16 }
 0x3ed   : > { %2480 = vrot.lane.b32.xlu0 %v2479_v36, %s3574_s7  ;;  %2508 = vrot.lane.b32.xlu1 %v2507_v39, %s3574_s7  ;;  %v2461_v36 = vshrl.u32 %v5337_v63, 16  ;;  %v2090_v39 = vsel %vm325_vm0, 0, %v2089_v53 }
 0x3ee   : > { %v3071_v43 = vpack.c.b16 %v3070_v41, %v3070_v41  ;;  %v2125_v47 = vpack.i.b16 %v2090_v39, %v2062_v9  ;;  %v5406_v53 = vpack.i.b16 %v3056_v46, %v3055_v11  ;;  %v2146_v41 = vpack.c.b16 %v2145_v12, %v2145_v12 }
 0x3ef   : > { %v2463_v38 = vpack.i.b16 %v2462_v19, %v2461_v36  ;;  %v2437_v36 = vshrl.u32 %v5262_v60, 16  ;;  %v2483_v19 = vpack.c.b16 %v2482_v15, %v2482_v15  ;;  %v2511_v46 = vpack.c.b16 %v2510_v26, %v2510_v26 }
 0x3f0   : > { %v2173_v57 = vunpack.c.l.b16 %v2125_v47  ;;  %v2813_v15 = vpack.c.b16 %v2812_v5, %v2812_v5  ;;  %v2127_v50 = vshrl.u32 %v2090_v39, 16  ;;  %v2149_v12 = vunpack.c.l.b16 %v5239_v2 }
 0x3f1   : > { %v2126_v26 = vshrl.u32 %v2062_v9, 16 }
 0x3f2   : > { %v2174_v48 = vpack.c.b16 %v2173_v57, %v2173_v57 }
 0x3f3   : > { %v2128_v57 = vpack.i.b16 %v2127_v50, %v2126_v26  ;;  %v2789_v50 = vpack.c.b16 %v2788_v55, %v2788_v55 }
 0x3f4   : > { %3100 = vrot.lane.b32.xlu2 %v3099_v6, %s3568_s26  ;;  %v2438_v6 = vshrl.u32 %v5266_v40, 16 }
 0x3f5   : > { %2810 = vrot.lane.b32.xlu0 %v2809_v0, %s3569_s27  ;;  %3072 = vrot.lane.b32.xlu1 %v3071_v43, %s3568_s26  ;;  %v5783_v43 = vpack.i.b16 %v5230_v62, %v5227_v7  ;;  %v2150_v7 = vpack.c.b16 %v2149_v12, %v2149_v12  ;;  %v3103_v62 = vpack.c.b16 %v3102_v58, %v3102_v58  ;;  %v2177_v2 = vunpack.c.l.b16 %v2128_v57 }
 0x3f6   : > { %v2439_v0 = vpack.i.b16 %v2438_v6, %v2437_v36  ;;  %v2514_v36 = vunpack.c.l.b16 %v2463_v38  ;;  %v2336_v6 = vrot.slane %v5262_v60, 4  ;;  %v2392_v60 = vrot.slane %v5337_v63, 4 }
 0x3f7   : > { %v2784_v47 = vunpack.c.l.b16 %v5783_v43  ;;  %v2178_v5 = vpack.c.b16 %v2177_v2, %v2177_v2  ;;  %v5785_v63 = vpack.i.b16 %v5291_v21, %v5288_v28  ;;  %v2817_v58 = vpack.c.b16 %v2816_v14, %v2816_v14 }
 0x3f8   : > { %v2486_v39 = vunpack.c.l.b16 %v2439_v0  ;;  %v2515_v16 = vpack.c.b16 %v2514_v36, %v2514_v36  ;;  %v2393_v0 = vsel %vm325_vm0, 0, %v2392_v60  ;;  %v5787_v28 = vpack.i.b16 %v5324_v42, %v5315_v27 }
 0x3f9   : > { %v2785_v11 = vpack.c.b16 %v2784_v47, %v2784_v47  ;;  %v5789_v57 = vpack.i.b16 %v5257_v23, %v5253_v35  ;;  %v2718_v42 = vpack.i.b16 %v5014_v17, %v4944_v56  ;;  %v3082_v35 = vunpack.c.l.b16 %v5318_v3 }
 0x3fa   : > { %v3106_v21 = vunpack.c.l.b16 %v5787_v28  ;;  %v3110_v17 = vunpack.c.l.b16 %v5406_v53  ;;  %v2193_v28 = vunpack.c.l.b16 %v5378_v30 }
 0x3fc   : > { %2484 = vrot.lane.b32.xlu2 %v2483_v19, %s3568_s26  ;;  %v2364_v19 = vrot.slane %v5266_v40, 4  ;;  %v2420_v40 = vrot.slane %v5341_v49, 4  ;;  %v3078_v49 = vunpack.c.l.b16 %v5785_v63 }
 0x3fd   : > { %2147 = vrot.lane.b32.xlu0 %v2146_v41, %s3571_s29  ;;  %2175 = vrot.lane.b32.xlu1 %v2174_v48, %s3571_s29  ;;  %v2337_v41 = vsel %vm325_vm0, 0, %v2336_v6  ;;  %v3107_v6 = vpack.c.b16 %v3106_v21, %v3106_v21 }
 0x3fe   : > { %v2365_v48 = vsel %vm325_vm0, 0, %v2364_v19  ;;  %v2421_v43 = vsel %vm325_vm0, 0, %v2420_v40  ;;  %v3079_v12 = vpack.c.b16 %v3078_v49, %v3078_v49  ;;  %v2443_v51 = vshrl.u32 %v2337_v41, 16 }
 0x3ff   : > { %v2442_v38 = vpack.i.b16 %v2365_v48, %v2337_v41  ;;  %v2466_v45 = vpack.i.b16 %v2421_v43, %v2393_v0  ;;  %v2444_v26 = vshrl.u32 %v2365_v48, 16  ;;  %v2468_v36 = vshrl.u32 %v2421_v43, 16 }
 0x400   : > { %v2448_v41 = vpack.i.b16 %v4874_v22, %v4866_v44  ;;  %v2185_v44 = vunpack.c.l.b16 %v5332_v61  ;;  %v3111_v43 = vpack.c.b16 %v3110_v17, %v3110_v17  ;;  %v5790_v49 = vpack.i.b16 %v5094_v33, %v5080_v52 }
 0x401   : > { %v2490_v27 = vunpack.c.l.b16 %v2442_v38  ;;  %v2119_v52 = vpack.i.b16 %v5204_v10, %v5198_v1  ;;  %v2194_v10 = vpack.c.b16 %v2193_v28, %v2193_v28  ;;  %vm3261_vm0 = vcmask 1041408  }
 0x404   : > { %2814 = vrot.lane.b32.xlu2 %v2813_v15, %s3572_s30  ;;  %v5786_v15 = vpack.i.b16 %v5004_v4, %v5047_v24  ;;  %v5788_v24 = vpack.i.b16 %v5270_v31, %v5245_v20  ;;  %v2518_v20 = vunpack.c.l.b16 %v2466_v45  ;;  %v2186_v45 = vpack.c.b16 %v2185_v44, %v2185_v44 }
 0x405   : > { %2512 = vrot.lane.b32.xlu0 %v2511_v46, %s3568_s26  ;;  %2786 = vrot.lane.b32.xlu1 %v2785_v11, %s3572_s30  ;;  %v2487_v46 = vpack.c.b16 %v2486_v39, %v2486_v39 }
 0x406   : > { %v2181_v37 = vunpack.c.l.b16 %v5788_v24  ;;  %v2519_v60 = vpack.c.b16 %v2518_v20, %v2518_v20  ;;  %v2165_v24 = vunpack.c.l.b16 %v5374_v18 }
 0x40c   : > { %2151 = vrot.lane.b32.xlu2 %v2150_v7, %s3574_s7  ;;  %v2153_v7 = vunpack.c.l.b16 %v5789_v57  ;;  %v5794_v57 = vld [vmem:[#allocation42_spill] sm:$0xff] }
 0x40d   : > { %3076 = vrot.lane.b32.xlu0 %v3075_v8, %s3569_s27  ;;  %v2795_v59 = vpop.permute.xlu2 %2794  ;;  %3104 = vrot.lane.b32.xlu1 %v3103_v62, %s3569_s27  ;;  %v2445_v8 = vpack.i.b16 %v2444_v26, %v2443_v51  ;;  %v2467_v62 = vshrl.u32 %v2393_v0, 16 }
 0x40e   : > { %v5434_v9 = vsel %vm541_vm4, %v5784_v34, %v2795_v59  ;;  %v2182_v59 = vpack.c.b16 %v2181_v37, %v2181_v37  ;;  %v2154_v2 = vpack.c.b16 %v2153_v7, %v2153_v7  ;;  %v2491_v34 = vpack.c.b16 %v2490_v27, %v2490_v27 }
 0x40f   : > { %v2469_v19 = vpack.i.b16 %v2468_v36, %v2467_v62 }
 0x411   : > { %v2522_v53 = vunpack.c.l.b16 %v2469_v19 }
 0x414   : > { %2516 = vrot.lane.b32.xlu2 %v2515_v16, %s3569_s27  ;;  %v3083_v16 = vpack.c.b16 %v3082_v35, %v3082_v35 }
 0x415   : > { %2179 = vrot.lane.b32.xlu0 %v2178_v5, %s3574_s7  ;;  %2488 = vrot.lane.b32.xlu1 %v2487_v46, %s3569_s27  ;;  %v2157_v46 = vunpack.c.l.b16 %v5343_v29 }
 0x416   : > { %v3061_v47 = vpop.permute.xlu2 %3060 }
 0x417   : > { %v3116_v11 = vsel %vm541_vm4, %v5786_v15, %v3061_v47  ;;  %v2158_v55 = vpack.c.b16 %v2157_v46, %v2157_v46  ;;  %v2494_v47 = vunpack.c.l.b16 %v2445_v8  ;;  %v5793_v8 = vld [vmem:[#allocation38_spill] sm:$0xff] }
 0x418   : > { %v2424_v7 = vpack.i.b16 %v5794_v57, %v5793_v8 }
 0x41c   : > { %3080 = vrot.lane.b32.xlu2 %v3079_v12, %s3572_s30  ;;  %v2523_v12 = vpack.c.b16 %v2522_v53, %v2522_v53 }
 0x41d   : > { %2790 = vrot.lane.b32.xlu0 %v2789_v50, %s3573_s6  ;;  %2818 = vrot.lane.b32.xlu1 %v2817_v58, %s3573_s6  ;;  %v2495_v50 = vpack.c.b16 %v2494_v47, %v2494_v47 }
 0x41e   : > { %v2501_v4 = vpop.permute.xlu2 %2500 }
 0x41f   : > { %v2543_v56 = vsel %vm541_vm4, %v2448_v41, %v2501_v4  ;;  %v5796_v41 = vld [vmem:[#allocation39_spill] sm:$0xff] }
 0x424   : > { %2183 = vrot.lane.b32.xlu2 %v2182_v59, %s3568_s26 }
 0x425   : > { %3108 = vrot.lane.b32.xlu0 %v3107_v6, %s3572_s30  ;;  %2155 = vrot.lane.b32.xlu1 %v2154_v2, %s3568_s26  ;;  %s298_s26 = scalar_lea.vmem %s5689_s5, %s3476_s14 }
 0x426   : > { %v3065_v31 = vpop.permute.xlu2 %3064 }
 0x427   : > { %v3118_v23 = vsel %vm545_vm5, %v3116_v11, %v3065_v31  ;;  %v2767_v39 = vpop.permute.xlu1 %2766 }
 0x428   : > { %v2822_v48 = vsel %vm541_vm4, %v2718_v42, %v2767_v39 }
 0x429   : > { %v2771_v38 = vpop.permute.xlu0 %2770 }
 0x42a   : > { %v2824_v40 = vsel %vm545_vm5, %v2822_v48, %v2771_v38 }
 0x42c   : > { %3084 = vrot.lane.b32.xlu2 %v3083_v16, %s3573_s6 }
 0x42d   : > { %2492 = vrot.lane.b32.xlu0 %v2491_v34, %s3572_s30  ;;  %2520 = vrot.lane.b32.xlu1 %v2519_v60, %s3572_s30  ;;  %v5795_v34 = vld [vmem:[#allocation43_spill] sm:$0xff] }
 0x42e   : > { %v2505_v3 = vpop.permute.xlu2 %2504  ;;  %v5797_v48 = vpack.i.b16 %v5795_v34, %v5796_v41  ;;  %v5806_v34 = vld [vmem:[#allocation4_spill] sm:$0xff]  ;;  %v5807_v41 = vld [vmem:[#allocation5_spill] sm:$0xff] }
 0x42f   : > { %v5484_v22 = vsel %vm545_vm5, %v2543_v56, %v2505_v3  ;;  %v2799_v5 = vpop.permute.xlu1 %2798 }
 0x430   : > { %v2839_v0 = vsel %vm545_vm5, %v5434_v9, %v2799_v5  ;;  %v5791_v9 = vpack.i.b16 %v5350_v54, %v5347_v13  ;;  %v5792_v13 = vpack.i.b16 %v5363_v25, %v5360_v32  ;;  %v2166_v32 = vpack.c.b16 %v2165_v24, %v2165_v24 }
 0x432   : > { %v2161_v15 = vunpack.c.l.b16 %v5791_v9  ;;  %v2189_v54 = vunpack.c.l.b16 %v5792_v13 }
 0x434   : > { %2187 = vrot.lane.b32.xlu2 %v2186_v45, %s3569_s27  ;;  %v2162_v58 = vpack.c.b16 %v2161_v15, %v2161_v15  ;;  %v2190_v1 = vpack.c.b16 %v2189_v54, %v2189_v54 }
 0x435   : > { %3112 = vrot.lane.b32.xlu0 %v3111_v43, %s3573_s6  ;;  %2159 = vrot.lane.b32.xlu1 %v2158_v55, %s3569_s27 }
 0x436   : > { %v3069_v63 = vpop.permute.xlu2 %3068 }
 0x437   : > { %v3089_v61 = vpop.permute.xlu0 %3088  ;;  %v5500_v11 = vsel %vm548_vm6, %v3118_v23, %v3069_v63  ;;  %v2473_v14 = vpop.permute.xlu1 %2472 }
 0x438   : > { %v3132_v29 = vsel %vm541_vm4, %v5790_v49, %v3089_v61  ;;  %v2528_v18 = vsel %vm541_vm4, %v2424_v7, %v2473_v14 }
 0x43c   : > { %2163 = vrot.lane.b32.xlu2 %v2162_v58, %s3572_s30 }
 0x43d   : > { %2496 = vrot.lane.b32.xlu0 %v2495_v50, %s3573_s6  ;;  %2524 = vrot.lane.b32.xlu1 %v2523_v12, %s3573_s6 }
 0x43e   : > { %v2172_v51 = vpop.permute.xlu2 %2171 }
 0x43f   : > { %v2775_v33 = vpop.permute.xlu0 %2774  ;;  %v2214_v21 = vsel %vm541_vm4, %v2119_v52, %v2172_v51  ;;  %v2803_v4 = vpop.permute.xlu1 %2802 }
 0x440   : > { %v2826_v26 = vsel %vm548_vm6, %v2824_v40, %v2775_v33  ;;  %v2841_v37 = vsel %vm548_vm6, %v2839_v0, %v2803_v4 }
 0x444   : > { %2195 = vrot.lane.b32.xlu2 %v2194_v10, %s3573_s6 }
 0x445   : > { %2191 = vrot.lane.b32.xlu0 %v2190_v1, %s3572_s30  ;;  %2167 = vrot.lane.b32.xlu1 %v2166_v32, %s3573_s6 }
 0x446   : > { %v2783_v25 = vpop.permute.xlu2 %2782 }
 0x447   : > { %v3093_v30 = vpop.permute.xlu0 %3092  ;;  %v2477_v36 = vpop.permute.xlu1 %2476 }
 0x448   : > { %v3134_v62 = vsel %vm545_vm5, %v3132_v29, %v3093_v30  ;;  %v2530_v6 = vsel %vm545_vm5, %v2528_v18, %v2477_v36  ;;  %v5800_v18 = vld [vmem:[#allocation22_spill] sm:$0xff] }
 0x44e   : > { %v3101_v59 = vpop.permute.xlu2 %3100 }
 0x44f   : > { %v2779_v19 = vpop.permute.xlu0 %2778  ;;  %v2807_v27 = vpop.permute.xlu1 %2806 }
 0x450   : > { %v2828_v2 = vsel %vm551_vm7, %v2826_v26, %v2779_v19  ;;  %v2843_v20 = vsel %vm551_vm7, %v2841_v37, %v2807_v27  ;;  %v5803_v27 = vld [vmem:[#allocation21_spill] sm:$0xff] }
 0x451   : > { %v2830_v39 = vsel %vm554_vm8, %v2828_v2, %v2783_v25  ;;  %v5798_v25 = vld [vmem:[#allocation33_spill] sm:$0xff] }
 0x452   : > { %v5802_v2 = vld [vmem:[#allocation29_spill] sm:$0xff] }
 0x456   : > { %v2485_v42 = vpop.permute.xlu2 %2484 }
 0x457   : > { %v3097_v31 = vpop.permute.xlu0 %3096  ;;  %v2144_v23 = vpop.permute.xlu1 %2143 }
 0x458   : > { %v3136_v35 = vsel %vm548_vm6, %v3134_v62, %v3097_v31  ;;  %v2199_v38 = vsel %vm541_vm4, %v5797_v48, %v2144_v23  ;;  %v5799_v62 = vld [vmem:[#allocation23_spill] sm:$0xff]  ;;  %v3577_v23 = vmov 0   ;;  %v463_v48 = vpack.i.b16 %v5807_v41, %v5806_v34  ;;  %v5824_v34 = vld [vmem:[#allocation32_spill] sm:$0xff] }
 0x459   : > { %v3138_v17 = vsel %vm551_vm7, %v3136_v35, %v3101_v59  ;;  %v5801_v36 = vpack.i.b16 %v5799_v62, %v5800_v18  ;;  %v3206_v59 = vld [vmem:[%s5686_s2] sm:$0xf]  ;;  %3514 = vset.pattern.permute.xlu0 %v3577_v23  ;;  %v5820_v18 = vld [vmem:[#allocation16_spill] sm:$0xff] }
 0x45a   : > { %3209 = vperm.xlu0 %3514, %v3206_v59  }
 0x45e   : > { %v2815_v40 = vpop.permute.xlu2 %2814 }
 0x45f   : > { %v2481_v60 = vpop.permute.xlu0 %2480  ;;  %v2509_v56 = vpop.permute.xlu1 %2508 }
 0x460   : > { %v2532_v16 = vsel %vm548_vm6, %v2530_v6, %v2481_v60  ;;  %v2547_v3 = vsel %vm548_vm6, %v5484_v22, %v2509_v56  ;;  %v875_v6 = vsel %vm541_vm4, %v5801_v36, %v5798_v25 }
 0x461   : > { %v2534_v43 = vsel %vm551_vm7, %v2532_v16, %v2485_v42 }
 0x466   : > { %v2152_v5 = vpop.permute.xlu2 %2151 }
 0x467   : > { %v2811_v44 = vpop.permute.xlu0 %2810  ;;  %v3073_v0 = vpop.permute.xlu1 %3072 }
 0x468   : > { %v2845_v46 = vsel %vm554_vm8, %v2843_v20, %v2811_v44  ;;  %v3122_v12 = vsel %vm551_vm7, %v5500_v11, %v3073_v0  ;;  %v5804_v20 = vld [vmem:[#allocation20_spill] sm:$0xff] }
 0x469   : > { %v2847_v53 = vsel %vm557_vm9, %v2845_v46, %v2815_v40  ;;  %v5805_v31 = vpack.i.b16 %v5803_v27, %v5804_v20  ;;  %v5809_v40 = vld [vmem:[#allocation27_spill] sm:$0xff] }
 0x46a   : > { %v877_v16 = vsel %vm545_vm5, %v875_v6, %v5809_v40  ;;  %v5811_v46 = vld [vmem:[#allocation3_spill] sm:$0xff]  ;;  %v5821_v6 = vld [vmem:[#allocation24_spill] sm:$0xff] }
 0x46b   : > { %v860_v42 = vsel %vm541_vm4, %v5805_v31, %v5802_v2  ;;  %v5823_v31 = vld [vmem:[#allocation17_spill] sm:$0xff] }
 0x46e   : > { %v2517_v55 = vpop.permute.xlu2 %2516 }
 0x46f   : > { %v2148_v45 = vpop.permute.xlu0 %2147  ;;  %v2176_v61 = vpop.permute.xlu1 %2175 }
 0x470   : > { %v2201_v47 = vsel %vm545_vm5, %v2199_v38, %v2148_v45  ;;  %v5540_v63 = vsel %vm545_vm5, %v2214_v21, %v2176_v61  ;;  %v5808_v38 = vld [vmem:[#allocation35_spill] sm:$0xff]  ;;  %v5812_v45 = vld [vmem:[#allocation36_spill] sm:$0xff] }
 0x471   : > { %v5543_v9 = vsel %vm548_vm6, %v2201_v47, %v2152_v5  ;;  %v5810_v5 = vld [vmem:[#allocation2_spill] sm:$0xff]  ;;  %v879_v47 = vsel %vm548_vm6, %v877_v16, %v5812_v45 }
 0x472   : > { %v439_v0 = vpack.i.b16 %v5811_v46, %v5810_v5  ;;  %v5828_v5 = vld [vmem:[#allocation37_spill] sm:$0xff]  ;;  %v5829_v45 = vld [vmem:[#allocation6_spill] sm:$0xff] }
 0x476   : > { %v3081_v29 = vpop.permute.xlu2 %3080 }
 0x477   : > { %v2513_v49 = vpop.permute.xlu0 %2512  ;;  %v2787_v22 = vpop.permute.xlu1 %2786 }
 0x478   : > { %v2832_v19 = vsel %vm557_vm9, %v2830_v39, %v2787_v22  ;;  %v862_v39 = vsel %vm545_vm5, %v860_v42, %v5808_v38  ;;  %v2549_v60 = vsel %vm551_vm7, %v2547_v3, %v2513_v49  ;;  %v5813_v3 = vld [vmem:[#allocation30_spill] sm:$0xff] }
 0x479   : > { %v864_v49 = vsel %vm548_vm6, %v862_v39, %v5813_v3  ;;  %v5832_v3 = vld [vmem:[#allocation7_spill] sm:$0xff] }
 0x47e   : > { %v5545_v14 = vpop.permute.xlu2 %2183 }
 0x47f   : > { %v3077_v15 = vpop.permute.xlu0 %3076  ;;  %v3105_v50 = vpop.permute.xlu1 %3104 }
 0x480   : > { %v3124_v58 = vsel %vm554_vm8, %v3122_v12, %v3077_v15  ;;  %v3140_v11 = vsel %vm554_vm8, %v3138_v17, %v3105_v50  ;;  %v2551_v15 = vsel %vm554_vm8, %v2549_v60, %v2517_v55  ;;  %v5814_v50 = vld [vmem:[#allocation14_spill] sm:$0xff]  ;;  %v5826_v60 = vld [vmem:[#allocation25_spill] sm:$0xff] }
 0x481   : > { %v3126_v13 = vsel %vm557_vm9, %v3124_v58, %v3081_v29 }
 0x486   : > { %v3085_v33 = vpop.permute.xlu2 %3084 }
 0x487   : > { %v2180_v52 = vpop.permute.xlu0 %2179  ;;  %v2489_v54 = vpop.permute.xlu1 %2488  ;;  %v3128_v51 = vsel %vm560_vm10, %v3126_v13, %v3085_v33 }
 0x488   : > { %v3203_v26 = vunpack.c.l.bf16 %v3128_v51  ;;  %v2536_v56 = vsel %vm554_vm8, %v2534_v43, %v2489_v54  ;;  %v5815_v54 = vld [vmem:[#allocation28_spill] sm:$0xff] }
 0x489   : > { %v881_v51 = vsel %vm551_vm7, %v879_v47, %v5815_v54  ;;  %v5835_v54 = vld [vmem:[#allocation8_spill] sm:$0xff] }
 0x48a   : > { %3223 = vmatpush.msra.mxu0 %v3203_v26 }
 0x48e   : > { %v2188_v10 = vpop.permute.xlu2 %2187 }
 0x48f   : > { %v2791_v28 = vpop.permute.xlu0 %2790  ;;  %v2819_v21 = vpop.permute.xlu1 %2818 }
 0x490   : > { %v2834_v35 = vsel %vm560_vm10, %v2832_v19, %v2791_v28  ;;  %v2849_v17 = vsel %vm560_vm10, %v2847_v53, %v2819_v21  ;;  %v565_v53 = vsel %vm541_vm4, %v463_v48, %v5814_v50  ;;  %v5816_v21 = vld [vmem:[#allocation10_spill] sm:$0xff]  ;;  %v883_v19 = vsel %vm554_vm8, %v881_v51, %v5821_v6  ;;  %v5825_v48 = vld [vmem:[#allocation9_spill] sm:$0xff] }
 0x491   : > { %v3160_v61 = vrot.slane %v2834_v35, 4  ;;  %v3161_v12 = vrot.slane %v2849_v17, 4  ;;  %v544_v55 = vsel %vm541_vm4, %v439_v0, %v5816_v21  ;;  %v5836_v21 = vld [vmem:[#allocation18_spill] sm:$0xff] }
 0x496   : > { %v2164_v44 = vpop.permute.xlu2 %2163 }
 0x497   : > { %v3109_v4 = vpop.permute.xlu0 %3108  ;;  %v2156_v24 = vpop.permute.xlu1 %2155 }
 0x498   : > { %v3142_v8 = vsel %vm557_vm9, %v3140_v11, %v3109_v4  ;;  %v5817_v4 = vld [vmem:[#allocation26_spill] sm:$0xff]  ;;  %v2218_v11 = vsel %vm548_vm6, %v5540_v63, %v2180_v52  ;;  %v2205_v63 = vsel %vm551_vm7, %v5543_v9, %v2156_v24  ;;  %v5822_v52 = vld [vmem:[#allocation31_spill] sm:$0xff]  ;;  %v885_v9 = vsel %vm557_vm9, %v883_v19, %v5824_v34 }
 0x499   : > { %v2220_v2 = vsel %vm551_vm7, %v2218_v11, %v5545_v14  ;;  %v887_v46 = vsel %vm560_vm10, %v885_v9, %v5828_v5  ;;  %v5838_v11 = vld [vmem:[#allocation44_spill] sm:$0xff]  ;;  %v3205_v19 = vld [vmem:[%s5685_s1] sm:$0xf] }
 0x49a   : > { %v2222_v35 = vsel %vm554_vm8, %v2220_v2, %v2188_v10  ;;  %v5827_v10 = vld [vmem:[#allocation12_spill] sm:$0xff] }
 0x49e   : > { %v2196_v24 = vpop.permute.xlu2 %2195 }
 0x49f   : > { %v2493_v37 = vpop.permute.xlu0 %2492  ;;  %v2521_v1 = vpop.permute.xlu1 %2520 }
 0x4a0   : > { %v2538_v29 = vsel %vm557_vm9, %v2536_v56, %v2493_v37  ;;  %v2553_v58 = vsel %vm557_vm9, %v2551_v15, %v2521_v1  ;;  %v866_v37 = vsel %vm551_vm7, %v864_v49, %v5817_v4  ;;  %v5837_v4 = vld [vmem:[#allocation45_spill] sm:$0xff] }
 0x4a1   : > { %v868_v59 = vsel %vm554_vm8, %v866_v37, %v5822_v52  ;;  %v3194_v37 = vunpack.c.h.bf16 %v5837_v4 }
 0x4a2   : > { %v870_v40 = vsel %vm557_vm9, %v868_v59, %v5826_v60 }
 0x4a7   : > { %v3113_v57 = vpop.permute.xlu0 %3112  ;;  %v2160_v32 = vpop.permute.xlu1 %2159 }
 0x4a8   : > { %v3144_v7 = vsel %vm560_vm10, %v3142_v8, %v3113_v57  ;;  %v5818_v8 = vld [vmem:[#allocation13_spill] sm:$0xff]  ;;  %v2207_v27 = vsel %vm554_vm8, %v2205_v63, %v2160_v32 }
 0x4a9   : > { %v3204_v30 = vunpack.c.l.bf16 %v3144_v7  ;;  %v547_v57 = vsel %vm545_vm5, %v544_v55, %v5818_v8  ;;  %v5819_v7 = vld [vmem:[#allocation11_spill] sm:$0xff]  ;;  %v2209_v39 = vsel %vm557_vm9, %v2207_v27, %v2164_v44  ;;  %v5831_v44 = vld [vmem:[#allocation34_spill] sm:$0xff] }
 0x4aa   : > { %v550_v36 = vsel %vm548_vm6, %v547_v57, %v5820_v18  ;;  %v5839_v57 = vld [vmem:[#allocation15_spill] sm:$0xff] }
 0x4ab   : > { %3243 = vmatpush.msra.mxu1 %v3204_v30  ;;  %v567_v30 = vsel %vm545_vm5, %v565_v53, %v5819_v7  ;;  %v553_v14 = vsel %vm551_vm7, %v550_v36, %v5825_v48  ;;  %v5834_v53 = vld [vmem:[#allocation19_spill] sm:$0xff] }
 0x4ac   : > { %v569_v42 = vsel %vm548_vm6, %v567_v30, %v5823_v31  ;;  %v556_v47 = vsel %vm554_vm8, %v553_v14, %v5829_v45  ;;  %v3192_v30 = vunpack.c.l.bf16 %v5837_v4 }
 0x4ad   : > { %v571_v16 = vsel %vm551_vm7, %v569_v42, %v5827_v10  ;;  %v559_v51 = vsel %vm557_vm9, %v556_v47, %v5835_v54 }
 0x4ae   : > { %v573_v49 = vsel %vm554_vm8, %v571_v16, %v5832_v3  ;;  %v562_v7 = vsel %vm560_vm10, %v559_v51, %v5839_v57 }
 0x4af   : > { %v2497_v22 = vpop.permute.xlu0 %2496  ;;  %v2525_v33 = vpop.permute.xlu1 %2524 }
 0x4b0   : > { %v2540_v43 = vsel %vm560_vm10, %v2538_v29, %v2497_v22  ;;  %v2555_v26 = vsel %vm560_vm10, %v2553_v58, %v2525_v33  ;;  %v872_v22 = vsel %vm560_vm10, %v870_v40, %v5831_v44  ;;  %v3149_v58 = vrot.slane %v887_v46, 4 }
 0x4b1   : > { %v3182_v13 = vsel %vm3162_vm11, %v2540_v43, %v3160_v61  ;;  %v3185_v1 = vsel %vm3162_vm11, %v2555_v26, %v3161_v12  ;;  %v5830_v61 = vld [vmem:[#allocation41_spill] sm:$0xff]  ;;  %v5833_v43 = vld [vmem:[#allocation40_spill] sm:$0xff]  ;;  %v575_v12 = vsel %vm557_vm9, %v573_v49, %v5834_v53  ;;  %v3148_v26 = vrot.slane %v872_v22, 4 }
 0x4b2   : > { %v3201_v28 = vunpack.c.h.bf16 %v3182_v13  ;;  %v3199_v25 = vunpack.c.l.bf16 %v3182_v13  ;;  %v3202_v62 = vunpack.c.h.bf16 %v3185_v1  ;;  %v3200_v20 = vunpack.c.l.bf16 %v3185_v1 }
 0x4b3   : > { %v577_v55 = vsel %vm560_vm10, %v575_v12, %v5836_v21  ;;  %v3193_v1 = vunpack.c.h.bf16 %v5838_v11 }
 0x4b4   : > { %3224 = vmatpush.msra.mxu0 %v3201_v28  ;;  %3244 = vmatpush.msra.mxu1 %v3202_v62  ;;  %v3167_v8 = vsel %vm3162_vm11, %v577_v55, %v3149_v58  ;;  %v3191_v62 = vunpack.c.l.bf16 %v5838_v11 }
 0x4b5   : > { %v3190_v18 = vunpack.c.h.bf16 %v3167_v8  ;;  %v3188_v6 = vunpack.c.l.bf16 %v3167_v8 }
 0x4b6   : > { %3225 = vmatpush.msra.mxu0 %v3199_v25  ;;  %3245 = vmatpush.msra.mxu1 %v3200_v20  ;;  %v3164_v25 = vsel %vm3162_vm11, %v562_v7, %v3148_v26 }
 0x4b7   : > { %v2192_v23 = vpop.permute.xlu0 %2191  ;;  %v2168_v38 = vpop.permute.xlu1 %2167  ;;  %v3189_v36 = vunpack.c.h.bf16 %v3164_v25  ;;  %v3187_v63 = vunpack.c.l.bf16 %v3164_v25 }
 0x4b8   : > { %v2224_v41 = vsel %vm557_vm9, %v2222_v35, %v2192_v23  ;;  %v2211_v17 = vsel %vm560_vm10, %v2209_v39, %v2168_v38 }
 0x4b9   : > { %v2226_v32 = vsel %vm560_vm10, %v2224_v41, %v2196_v24  ;;  %v3156_v0 = vrot.slane %v2211_v17, 4 }
 0x4ba   : > { %v3157_v56 = vrot.slane %v2226_v32, 4 }
 0x4bb   : > { %v3176_v50 = vsel %vm3162_vm11, %v5833_v43, %v3156_v0 }
 0x4bc   : > { %v3179_v29 = vsel %vm3162_vm11, %v5830_v61, %v3157_v56  ;;  %v3197_v33 = vunpack.c.h.bf16 %v3176_v50  ;;  %v3195_v28 = vunpack.c.l.bf16 %v3176_v50 }
 0x4bd   : > { %v3198_v15 = vunpack.c.h.bf16 %v3179_v29  ;;  %v3196_v13 = vunpack.c.l.bf16 %v3179_v29 }
 0x4be   : > { %3226 = vmatpush.msra.mxu0 %v3197_v33 }
 0x4bf   : > { %3246 = vmatpush.msra.mxu1 %v3198_v15 }
 0x4c0   : > { %3227 = vmatpush.msra.mxu0 %v3195_v28 }
 0x4c1   : > { %3247 = vmatpush.msra.mxu1 %v3196_v13 }
 0x4c2   : > { %3228 = vmatpush.msra.mxu0 %v3193_v1 }
 0x4c3   : > { %3248 = vmatpush.msra.mxu1 %v3194_v37 }
 0x4c4   : > { %3229 = vmatpush.msra.mxu0 %v3191_v62 }
 0x4c5   : > { %3249 = vmatpush.msra.mxu1 %v3192_v30 }
 0x4c6   : > { %3230 = vmatpush.msra.mxu0 %v3189_v36 }
 0x4c7   : > { %3250 = vmatpush.msra.mxu1 %v3190_v18 }
 0x4c8   : > { %3231 = vmatpush.msra.mxu0 %v3187_v63 }
 0x4c9   : > { %3251 = vmatpush.msra.mxu1 %v3188_v6  ;;  %3472 = vmatmul.msk.f32.vlgmr.msra.gmra.mxu0 %vm3212_vm15, %v3205_v19 }
 0x4ca   : > { %3473 = vmatmul.msk.f32.vlgmr.msra.gmra.mxu1 %vm3212_vm15, %v3205_v19 }
 0x4cc   : > { %v3210_v52 = vpop.permute.xlu0 %3209 }
 0x546   : > { %v3233_v2 = vpop.f32.mrf.mxu0 }
 0x547   : > { %v3253_v59 = vpop.f32.mrf.mxu1  ;;  %v3234_v20 = vadd.f32 %v3233_v2, %v3210_v52 }
 0x548   : > { %v3254_v27 = vadd.f32 %v3253_v59, %v3210_v52 }
 0x549   : > { %v3256_v42 = vmax.f32 %v3234_v20, 0.0 }
 0x54a   : > { %v3257_v31 = vmax.f32 %v3254_v27, 0.0 }
 0x54b   : > { %v3274_v9 = vmul.f32 %v3256_v42, %v3256_v42  ;;  %v3267_v24 = vsel %vm3162_vm11, %v3256_v42, 0.0 }
 0x54c   : > { %v3275_v35 = vmul.f32 %v3257_v31, %v3257_v31  ;;  %v3268_v23 = vsel %vm3162_vm11, %v3257_v31, 0.0  ;;  %v3258_v34 = vpack.c.bf16 %v3257_v31, %v3256_v42 }
 0x54d   : > { %v3269_v41 = vadd.f32 %v3268_v23, %v3267_v24  ;;  %v3276_v32 = vsel %vm3162_vm11, %v3274_v9, 0.0 }
 0x54e   : > { %v3277_v48 = vsel %vm3162_vm11, %v3275_v35, 0.0  ;;  %v3260_v14 = vrot.slane %v3258_v34, 2 }
 0x54f   : > { %3270 = vadd.xlane.f32.xlu1 %v3269_v41  ;;  %v3278_v38 = vadd.f32 %v3277_v48, %v3276_v32 }
 0x550   : > { %v3264_v39 = vsel %vm3261_vm0, %v3258_v34, %v3260_v14 }
 0x551   : > { %3279 = vadd.xlane.f32.xlu2 %v3278_v38  ;;  %3266 = vst [vmem:[%s283_s17] sm:$0xf] %v3264_v39 }
 0x5c2   : > { %v3271_v60 = vpop.xlane.xlu1 %3270 }
 0x5c3   : > { %3273 = vst.msk [vmem:[%s291_s23] sm:$0xf] %vm3272_vm1, %v3271_v60 }
 0x5c4   : > { %v3280_v40 = vpop.xlane.xlu2 %3279 }
 0x5c5   : > { %3281 = vst.msk [vmem:[%s298_s26] sm:$0xf] %vm3272_vm1, %v3280_v40 }
 0x5c6 PF: > { %s16_s20 = sadd.s32 1, %s3564_s20   ;;  %s5840_s18 = smov %s3560_s19 }
 0x5c7   : > { %p13_p5 = scmp.ge.s32.totalorder %s16_s20, 4   ;;  %s5841_s19 = smov %s5843_s21 }
 0x5c9   :  { %15 = sbr.rel (!%p13_p5) target bundleno = 2 (0x2), region = 86 }

</bundles_post_ra>
